<compile_context>
chip_gen: v6e
topology: v6e:2x2x1
jax: 0.10.0
libtpu: 0.0.40
codegen_flags: <defaults>
</compile_context>

<pallas_src>
import math

import jax
import jax.numpy as jnp
from jax.experimental import pallas as pl
from jax.experimental.pallas import tpu as pltpu

HIDDEN = 1024  # w1 == w2 == 1024 in the PyTorch module
LANE = 128


def _round_up(v, m):
    return ((v + m - 1) // m) * m


def _mlp_kernel(x_ref, w1_ref, b1_ref, w2_ref, b2_ref, w3_ref, b3_ref, o_ref):
    # x_ref: [tm, Fp] bf16 ; w*: bf16 ; b*: f32 ; o_ref: [tm, Np] f32
    x = x_ref[...]

    h1 = jnp.dot(x, w1_ref[...], preferred_element_type=jnp.float32) + b1_ref[...]
    h1 = jnp.maximum(h1, 0.0).astype(jnp.bfloat16)

    h2 = jnp.dot(h1, w2_ref[...], preferred_element_type=jnp.float32) + b2_ref[...]
    h2 = jnp.maximum(h2, 0.0).astype(jnp.bfloat16)

    y = jnp.dot(h2, w3_ref[...], preferred_element_type=jnp.float32) + b3_ref[...]
    o_ref[...] = y.astype(o_ref.dtype)


def prediction_model_quadruped_forward(x, prepared, output_size):
    """x: [B, input_size] f32. prepared: dict from prepare_params (padded, bf16 weights)."""
    B, F = x.shape
    w1, b1 = prepared["w1"], prepared["b1"]
    w2, b2 = prepared["w2"], prepared["b2"]
    w3, b3 = prepared["w3"], prepared["b3"]
    Fp = w1.shape[0]          # padded input feature dim (multiple of 128)
    Np = w3.shape[1]          # padded output feature dim (multiple of 128)

    # Batch tile: 128 rows when there is enough batch, else the (8-aligned) batch.
    tm = 128 if B >= 128 else _round_up(max(B, 1), 8)
    Bp = _round_up(B, tm)

    # Pad batch + features with zeros; extra rows/cols do not affect valid outputs.
    xp = jnp.zeros((Bp, Fp), jnp.bfloat16).at[:B, :F].set(x.astype(jnp.bfloat16))

    out = pl.pallas_call(
        _mlp_kernel,
        out_shape=jax.ShapeDtypeStruct((Bp, Np), jnp.float32),
        grid=(Bp // tm,),
        in_specs=[
            pl.BlockSpec((tm, Fp), lambda i: (i, 0)),          # x: tiled on batch
            pl.BlockSpec((Fp, HIDDEN), lambda i: (0, 0)),      # W1: VMEM-resident
            pl.BlockSpec((1, HIDDEN), lambda i: (0, 0)),       # b1
            pl.BlockSpec((HIDDEN, HIDDEN), lambda i: (0, 0)),  # W2: VMEM-resident
            pl.BlockSpec((1, HIDDEN), lambda i: (0, 0)),       # b2
            pl.BlockSpec((HIDDEN, Np), lambda i: (0, 0)),      # W3: VMEM-resident
            pl.BlockSpec((1, Np), lambda i: (0, 0)),           # b3
        ],
        out_specs=pl.BlockSpec((tm, Np), lambda i: (i, 0)),
        compiler_params=pltpu.CompilerParams(
            dimension_semantics=("parallel",),
            vmem_limit_bytes=24 << 20,
        ),
    )(xp, w1, b1, w2, b2, w3, b3)

    return out[:B, :output_size]


def init_params(key, input_size, output_size):
    """f32 params matching PyTorch nn.Linear default init, weights stored [in, out]."""
    keys = jax.random.split(key, 6)

    def linear(kw, kb, fan_in, fan_out):
        bound = 1.0 / math.sqrt(fan_in)
        w = jax.random.uniform(kw, (fan_in, fan_out), jnp.float32, -bound, bound)
        b = jax.random.uniform(kb, (1, fan_out), jnp.float32, -bound, bound)
        return w, b

    w1, b1 = linear(keys[0], keys[1], input_size, HIDDEN)
    w2, b2 = linear(keys[2], keys[3], HIDDEN, HIDDEN)
    w3, b3 = linear(keys[4], keys[5], HIDDEN, output_size)
    return {"w1": w1, "b1": b1, "w2": w2, "b2": b2, "w3": w3, "b3": b3}


def prepare_params(params):
    """Zero-pad input/output feature dims to multiples of 128 and cast weights to bf16."""
    w1, b1 = params["w1"], params["b1"]
    w2, b2 = params["w2"], params["b2"]
    w3, b3 = params["w3"], params["b3"]
    F = w1.shape[0]
    N = w3.shape[1]
    Fp = _round_up(F, LANE)
    Np = _round_up(N, LANE)

    w1p = jnp.zeros((Fp, HIDDEN), jnp.bfloat16).at[:F, :].set(w1.astype(jnp.bfloat16))
    w3p = jnp.zeros((HIDDEN, Np), jnp.bfloat16).at[:, :N].set(w3.astype(jnp.bfloat16))
    b3p = jnp.zeros((1, Np), jnp.float32).at[:, :N].set(b3)

    return {
        "w1": w1p, "b1": b1.astype(jnp.float32),
        "w2": w2.astype(jnp.bfloat16), "b2": b2.astype(jnp.float32),
        "w3": w3p, "b3": b3p,
    }


def reference_forward_f32(x, p):
    h1 = jnp.maximum(x @ p["w1"] + p["b1"], 0.0)
    h2 = jnp.maximum(h1 @ p["w2"] + p["b2"], 0.0)
    return h2 @ p["w3"] + p["b3"]


def reference_forward_bf16(x, p):
    """Same mixed precision as the kernel (bf16 operands, f32 accumulate)."""
    h1 = jnp.dot(x.astype(jnp.bfloat16), p["w1"].astype(jnp.bfloat16),
                 preferred_element_type=jnp.float32) + p["b1"]
    h1 = jnp.maximum(h1, 0.0).astype(jnp.bfloat16)
    h2 = jnp.dot(h1, p["w2"].astype(jnp.bfloat16),
                 preferred_element_type=jnp.float32) + p["b2"]
    h2 = jnp.maximum(h2, 0.0).astype(jnp.bfloat16)
    return jnp.dot(h2, p["w3"].astype(jnp.bfloat16),
                   preferred_element_type=jnp.float32) + p["b3"]


if __name__ == "__main__":
    key = jax.random.PRNGKey(0)
    k_param, k_x = jax.random.split(key)

    batch = 8
    input_size = 32    # e.g. quadruped state vector
    output_size = 16   # e.g. predicted next-state / constraint vector

    params = init_params(k_param, input_size, output_size)
    prepared = prepare_params(params)
    x = jax.random.normal(k_x, (batch, input_size), dtype=jnp.float32)

    out = prediction_model_quadruped_forward(x, prepared, output_size)
    out = jax.block_until_ready(out)
    assert out.shape == (batch, output_size)

    # Exact-semantics check (bf16 operands, f32 accumulation).
    ref_bf16 = reference_forward_bf16(x, params)
    assert jnp.allclose(out, ref_bf16, atol=1e-2, rtol=1e-2), "mismatch vs bf16 reference"

    # Loose check against the full-f32 PyTorch-equivalent forward.
    ref_f32 = reference_forward_f32(x, params)
    assert jnp.allclose(out, ref_f32, atol=1e-1, rtol=1e-1), "mismatch vs f32 reference"

    print("KERNEL_OK")
</pallas_src>

<mosaic_0001>
module attributes {stable_mosaic.version = 11 : i64} {
  func.func @_mlp_kernel(%arg0: i32, %arg1: memref<8x128xbf16, #tpu.memory_space<vmem>>, %arg2: memref<128x1024xbf16, #tpu.memory_space<vmem>>, %arg3: memref<1x1024xf32, #tpu.memory_space<vmem>>, %arg4: memref<1024x1024xbf16, #tpu.memory_space<vmem>>, %arg5: memref<1x1024xf32, #tpu.memory_space<vmem>>, %arg6: memref<1024x128xbf16, #tpu.memory_space<vmem>>, %arg7: memref<1x128xf32, #tpu.memory_space<vmem>>, %arg8: memref<8x128xf32, #tpu.memory_space<vmem>>) attributes {dimension_semantics = [#tpu.dimension_semantics<parallel>], iteration_bounds = array<i64: 1>, scalar_prefetch = 0 : i64, scratch_operands = 0 : i64, tpu.core_type = #tpu.core_type<tc>, window_params = [{transform_indices = @transform_0, window_bounds = array<i64: 8, 128>}, {pipeline_mode = #tpu.pipeline_mode<synchronous>, transform_indices = @transform_1, window_bounds = array<i64: 128, 1024>}, {pipeline_mode = #tpu.pipeline_mode<synchronous>, transform_indices = @transform_2, window_bounds = array<i64: 1, 1024>}, {pipeline_mode = #tpu.pipeline_mode<synchronous>, transform_indices = @transform_3, window_bounds = array<i64: 1024, 1024>}, {pipeline_mode = #tpu.pipeline_mode<synchronous>, transform_indices = @transform_4, window_bounds = array<i64: 1, 1024>}, {pipeline_mode = #tpu.pipeline_mode<synchronous>, transform_indices = @transform_5, window_bounds = array<i64: 1024, 128>}, {pipeline_mode = #tpu.pipeline_mode<synchronous>, transform_indices = @transform_6, window_bounds = array<i64: 1, 128>}, {transform_indices = @transform_7, window_bounds = array<i64: 8, 128>}]} {
    %c0 = arith.constant 0 : index
    %c0_0 = arith.constant 0 : index
    %0 = vector.load %arg1[%c0, %c0_0] : memref<8x128xbf16, #tpu.memory_space<vmem>>, vector<8x128xbf16>
    %c0_1 = arith.constant 0 : index
    %c0_2 = arith.constant 0 : index
    %1 = vector.load %arg2[%c0_1, %c0_2] : memref<128x1024xbf16, #tpu.memory_space<vmem>>, vector<128x1024xbf16>
    %cst = arith.constant dense<0.000000e+00> : vector<8x1024xf32>
    %2 = tpu.matmul %0, %1, %cst {dimension_numbers = #tpu.dot_dimension_numbers<[1], [0], [0], [1], [0, 0, 1, 1], [], []>} : vector<8x128xbf16>, vector<128x1024xbf16>, vector<8x1024xf32> -> vector<8x1024xf32>
    %c0_3 = arith.constant 0 : index
    %c0_4 = arith.constant 0 : index
    %3 = vector.load %arg3[%c0_3, %c0_4] : memref<1x1024xf32, #tpu.memory_space<vmem>>, vector<1x1024xf32>
    %4 = vector.broadcast %3 : vector<1x1024xf32> to vector<8x1024xf32>
    %5 = arith.addf %2, %4 : vector<8x1024xf32>
    %cst_5 = arith.constant 0.000000e+00 : f32
    %6 = vector.broadcast %cst_5 : f32 to vector<8x1024xf32>
    %7 = arith.maximumf %5, %6 : vector<8x1024xf32>
    %8 = arith.truncf %7 : vector<8x1024xf32> to vector<8x1024xbf16>
    %c0_6 = arith.constant 0 : index
    %c0_7 = arith.constant 0 : index
    %9 = vector.load %arg4[%c0_6, %c0_7] : memref<1024x1024xbf16, #tpu.memory_space<vmem>>, vector<1024x1024xbf16>
    %cst_8 = arith.constant dense<0.000000e+00> : vector<8x1024xf32>
    %10 = tpu.matmul %8, %9, %cst_8 {dimension_numbers = #tpu.dot_dimension_numbers<[1], [0], [0], [1], [0, 0, 1, 1], [], []>} : vector<8x1024xbf16>, vector<1024x1024xbf16>, vector<8x1024xf32> -> vector<8x1024xf32>
    %c0_9 = arith.constant 0 : index
    %c0_10 = arith.constant 0 : index
    %11 = vector.load %arg5[%c0_9, %c0_10] : memref<1x1024xf32, #tpu.memory_space<vmem>>, vector<1x1024xf32>
    %12 = vector.broadcast %11 : vector<1x1024xf32> to vector<8x1024xf32>
    %13 = arith.addf %10, %12 : vector<8x1024xf32>
    %cst_11 = arith.constant 0.000000e+00 : f32
    %14 = vector.broadcast %cst_11 : f32 to vector<8x1024xf32>
    %15 = arith.maximumf %13, %14 : vector<8x1024xf32>
    %16 = arith.truncf %15 : vector<8x1024xf32> to vector<8x1024xbf16>
    %c0_12 = arith.constant 0 : index
    %c0_13 = arith.constant 0 : index
    %17 = vector.load %arg6[%c0_12, %c0_13] : memref<1024x128xbf16, #tpu.memory_space<vmem>>, vector<1024x128xbf16>
    %cst_14 = arith.constant dense<0.000000e+00> : vector<8x128xf32>
    %18 = tpu.matmul %16, %17, %cst_14 {dimension_numbers = #tpu.dot_dimension_numbers<[1], [0], [0], [1], [0, 0, 1, 1], [], []>} : vector<8x1024xbf16>, vector<1024x128xbf16>, vector<8x128xf32> -> vector<8x128xf32>
    %c0_15 = arith.constant 0 : index
    %c0_16 = arith.constant 0 : index
    %19 = vector.load %arg7[%c0_15, %c0_16] : memref<1x128xf32, #tpu.memory_space<vmem>>, vector<1x128xf32>
    %20 = vector.broadcast %19 : vector<1x128xf32> to vector<8x128xf32>
    %21 = arith.addf %18, %20 : vector<8x128xf32>
    %c0_17 = arith.constant 0 : index
    %c0_18 = arith.constant 0 : index
    %22 = vector.load %arg8[%c0_17, %c0_18] : memref<8x128xf32, #tpu.memory_space<vmem>>, vector<8x128xf32>
    tpu.vector_store %arg8[%c0_17, %c0_18], %21 {strides = array<i32>} : memref<8x128xf32, #tpu.memory_space<vmem>>, vector<8x128xf32>,
    return
  }
  func.func @transform_0(%arg0: i32) -> (i32, i32) {
    %c0_i32 = arith.constant 0 : i32
    %c0_i32_0 = arith.constant 0 : i32
    return %arg0, %c0_i32 : i32, i32
  }
  func.func @transform_1(%arg0: i32) -> (i32, i32) {
    %c0_i32 = arith.constant 0 : i32
    %c0_i32_0 = arith.constant 0 : i32
    %c0_i32_1 = arith.constant 0 : i32
    return %c0_i32, %c0_i32_0 : i32, i32
  }
  func.func @transform_2(%arg0: i32) -> (i32, i32) {
    %c0_i32 = arith.constant 0 : i32
    %c0_i32_0 = arith.constant 0 : i32
    %c0_i32_1 = arith.constant 0 : i32
    return %c0_i32, %c0_i32_0 : i32, i32
  }
  func.func @transform_3(%arg0: i32) -> (i32, i32) {
    %c0_i32 = arith.constant 0 : i32
    %c0_i32_0 = arith.constant 0 : i32
    %c0_i32_1 = arith.constant 0 : i32
    return %c0_i32, %c0_i32_0 : i32, i32
  }
  func.func @transform_4(%arg0: i32) -> (i32, i32) {
    %c0_i32 = arith.constant 0 : i32
    %c0_i32_0 = arith.constant 0 : i32
    %c0_i32_1 = arith.constant 0 : i32
    return %c0_i32, %c0_i32_0 : i32, i32
  }
  func.func @transform_5(%arg0: i32) -> (i32, i32) {
    %c0_i32 = arith.constant 0 : i32
    %c0_i32_0 = arith.constant 0 : i32
    %c0_i32_1 = arith.constant 0 : i32
    return %c0_i32, %c0_i32_0 : i32, i32
  }
  func.func @transform_6(%arg0: i32) -> (i32, i32) {
    %c0_i32 = arith.constant 0 : i32
    %c0_i32_0 = arith.constant 0 : i32
    %c0_i32_1 = arith.constant 0 : i32
    return %c0_i32, %c0_i32_0 : i32, i32
  }
  func.func @transform_7(%arg0: i32) -> (i32, i32) {
    %c0_i32 = arith.constant 0 : i32
    %c0_i32_0 = arith.constant 0 : i32
    return %arg0, %c0_i32 : i32, i32
  }
}

</mosaic_0001>

<bundles_post_ra>
// kernel: tpu_custom_call.1
= control target key start
LH: loop header
LB: loop body
LE: loop exit
PB: predicated region body
PF: predicated region fallthrough
CT: control target
= control target key end

     0   :  { %12 = vsyncpa [#allocation3], 0  ;;  %s6443_s0 = inlined_call_operand.hbm [shape: bf16[8,128], index: 0, kind: input, shape index: {}]   ;;  %s6444_s1 = inlined_call_operand.hbm [shape: bf16[128,1024], index: 1, kind: input, shape index: {}]   ;;  %s6445_s2 = inlined_call_operand.hbm [shape: f32[1,1024], index: 2, kind: input, shape index: {}]   ;;  %s6446_s3 = inlined_call_operand.hbm [shape: bf16[1024,1024], index: 3, kind: input, shape index: {}]   ;;  %s6447_s4 = inlined_call_operand.hbm [shape: f32[1,1024], index: 4, kind: input, shape index: {}]   ;;  %s6448_s5 = inlined_call_operand.hbm [shape: bf16[1024,128], index: 5, kind: input, shape index: {}]   ;;  %s6449_s6 = inlined_call_operand.hbm [shape: f32[1,128], index: 6, kind: input, shape index: {}]   ;;  %s6450_s7 = inlined_call_operand.hbm [shape: f32[8,128], index: 7, kind: output, shape index: {}]  }
   0x1   :  { %13 = vsyncpa [#allocation6], 0 }
   0x2   :  { %14 = vsyncpa [#allocation9], 0 }
   0x3   :  { %15 = vsyncpa [#allocation12], 0 }
   0x4   :  { %16 = vsyncpa [#allocation4], 0  ;;  %s6183_s24 = smov [#allocation5]  }
   0x5   :  { %s32_s25 = sshll.u32 %s6183_s24, 4  ;;  %s33_s25 = int_to_ptr.vmem [resolvable:$true] %s32_s25 }
   0x6   :  { %s6021_s26 = scalar_lea.vmem %s33_s25, 8192  ;;  %p6026_p1 = scmp.lt.s32.totalorder %s33_s25, %s33_s25 }
   0x7   :  { %p6022_p0 = scmp.ne.s32.totalorder %s33_s25, %s6021_s26  ;;  %p6027_p2 = scmp.lt.s32.totalorder %s6021_s26, %s6021_s26 }
   0x9   :  { %p6028_p3 = por %p6027_p2, %p6026_p1 }
   0xb   :  { %p6029_p4 = pnand %p6028_p3, %p6022_p0 }
   0xd   :  { %6032 = shalt.err (!%p6029_p4)
}
   0xe   :  { %s6184_s27 = smov 512   ;;  %s6185_s28 = smov 32  }
   0xf   :  { %38 = dma.hbm_to_vmem [thread:$0]  %s6444_s1, 8192, %s33_s25, [#allocation6], %s6184_s27, %s6184_s27, %s6185_s28  }
  0x10   :  { %s6186_s8 = smov [#allocation8]   ;;  %s6187_s10 = smov [#allocation11]  }
  0x11   :  { %s54_s9 = sshll.u32 %s6186_s8, 4  ;;  %s76_s11 = sshll.u32 %s6187_s10, 4  ;;  %s55_s9 = int_to_ptr.vmem [resolvable:$true] %s54_s9  ;;  %s77_s11 = int_to_ptr.vmem [resolvable:$true] %s76_s11 }
  0x12   :  { %s6041_s12 = scalar_lea.vmem %s55_s9, 65536  ;;  %p6046_p6 = scmp.lt.s32.totalorder %s55_s9, %s55_s9 }
  0x13   :  { %p6042_p5 = scmp.ne.s32.totalorder %s55_s9, %s6041_s12  ;;  %p6047_p7 = scmp.lt.s32.totalorder %s6041_s12, %s6041_s12 }
  0x15   :  { %p6048_p8 = por %p6047_p7, %p6046_p6 }
  0x17   :  { %p6049_p9 = pnand %p6048_p8, %p6042_p5 }
  0x19   :  { %6052 = shalt.err (!%p6049_p9)
}
  0x1a   :  { %60 = dma.hbm_to_vmem [thread:$0]  %s6446_s3, 65536, %s55_s9, [#allocation9], %s6184_s27, %s6184_s27, %s6185_s28  }
  0x1b   :  { %s6061_s15 = scalar_lea.vmem %s77_s11, 8192  ;;  %p6066_p11 = scmp.lt.s32.totalorder %s77_s11, %s77_s11 }
  0x1c   :  { %p6062_p10 = scmp.ne.s32.totalorder %s77_s11, %s6061_s15  ;;  %p6067_p12 = scmp.lt.s32.totalorder %s6061_s15, %s6061_s15 }
  0x1e   :  { %p6068_p13 = por %p6067_p12, %p6066_p11 }
  0x20   :  { %p6069_p0 = pnand %p6068_p13, %p6062_p10 }
  0x22   :  { %6072 = shalt.err (!%p6069_p0)
}
  0x23   :  { %s6188_s1 = smov 64   ;;  %s6189_s16 = smov 4  }
  0x24   :  { %82 = dma.hbm_to_vmem [thread:$0]  %s6448_s5, 8192, %s77_s11, [#allocation12], %s6188_s1, %s6188_s1, %s6189_s16  }
  0x25   :  { %s6190_s19 = smov [#allocation2]   ;;  %s6191_s21 = smov [#allocation7]  }
  0x26   :  { %s23_s20 = sshll.u32 %s6190_s19, 4  ;;  %s45_s22 = sshll.u32 %s6191_s21, 4  ;;  %s24_s20 = int_to_ptr.vmem [resolvable:$true] %s23_s20  ;;  %s46_s22 = int_to_ptr.vmem [resolvable:$true] %s45_s22 }
  0x27   :  { %s6081_s3 = scalar_lea.vmem %s24_s20, 64  ;;  %p6086_p2 = scmp.lt.s32.totalorder %s24_s20, %s24_s20 }
  0x28   :  { %p6082_p1 = scmp.ne.s32.totalorder %s24_s20, %s6081_s3  ;;  %p6087_p3 = scmp.lt.s32.totalorder %s6081_s3, %s6081_s3 }
  0x2a   :  { %p6088_p4 = por %p6087_p3, %p6086_p2 }
  0x2c   :  { %p6089_p5 = pnand %p6088_p4, %p6082_p1 }
  0x2e   :  { %6092 = shalt.err (!%p6089_p5)
}
  0x2f   :  { %26 = dma.hbm_to_vmem [thread:$0]  %s6443_s0, 64, %s24_s20, [#allocation3]  }
  0x30   :  { %s6101_s25 = scalar_lea.vmem %s46_s22, 128  ;;  %p6106_p7 = scmp.lt.s32.totalorder %s46_s22, %s46_s22 }
  0x31   :  { %p6102_p6 = scmp.ne.s32.totalorder %s46_s22, %s6101_s25  ;;  %p6107_p8 = scmp.lt.s32.totalorder %s6101_s25, %s6101_s25 }
  0x33   :  { %p6108_p9 = por %p6107_p8, %p6106_p7 }
  0x35   :  { %p6109_p10 = pnand %p6108_p9, %p6102_p6 }
  0x37   :  { %6112 = shalt.err (!%p6109_p10)
}
  0x38   :  { %48 = dma.hbm_to_vmem [thread:$0]  %s6445_s2, 128, %s46_s22, [#allocation6]  }
  0x39   :  { %s6192_s27 = smov [#allocation10]   ;;  %s6193_s29 = smov [#allocation13]  }
  0x3a   :  { %s67_s28 = sshll.u32 %s6192_s27, 4  ;;  %s89_s30 = sshll.u32 %s6193_s29, 4  ;;  %s68_s28 = int_to_ptr.vmem [resolvable:$true] %s67_s28  ;;  %s90_s30 = int_to_ptr.vmem [resolvable:$true] %s89_s30 }
  0x3b   :  { %s6121_s8 = scalar_lea.vmem %s68_s28, 128  ;;  %p6126_p12 = scmp.lt.s32.totalorder %s68_s28, %s68_s28 }
  0x3c   :  { %p6122_p11 = scmp.ne.s32.totalorder %s68_s28, %s6121_s8  ;;  %p6127_p13 = scmp.lt.s32.totalorder %s6121_s8, %s6121_s8 }
  0x3e   :  { %p6128_p0 = por %p6127_p13, %p6126_p12 }
  0x40   :  { %p6129_p1 = pnand %p6128_p0, %p6122_p11 }
  0x42   :  { %6132 = shalt.err (!%p6129_p1)
}
  0x43   :  { %70 = dma.hbm_to_vmem [thread:$0]  %s6447_s4, 128, %s68_s28, [#allocation9]  }
  0x44   :  { %s6141_s10 = scalar_lea.vmem %s90_s30, 16  ;;  %s6145_s2 = scalar_lea.vmem %s90_s30, 32 }
  0x45   :  { %p6142_p2 = scmp.ne.s32.totalorder %s90_s30, %s6141_s10  ;;  %p6146_p3 = scmp.lt.s32.totalorder %s90_s30, %s90_s30 }
  0x46   :  { %p6147_p4 = scmp.lt.s32.totalorder %s6145_s2, %s6141_s10 }
  0x48   :  { %p6148_p5 = por %p6147_p4, %p6146_p3 }
  0x4a   :  { %p6149_p6 = pnand %p6148_p5, %p6142_p2 }
  0x4c   :  { %6152 = shalt.err (!%p6149_p6)
}
  0x4d   :  { %92 = dma.hbm_to_vmem [thread:$0]  %s6449_s6, 16, %s90_s30, [#allocation12]  }
  0x4e   :  { %6173 = dma.done.wait [#allocation3], 64  }
  0x4f   :  { %6174 = vsyncadd [#allocation3], 4294967232 }
  0x50   :  { %6175 = dma.done.wait [#allocation6], 8320  }
  0x51   :  { %6176 = vsyncadd [#allocation6], 4294958976 }
  0x52   :  { %6177 = dma.done.wait [#allocation9], 65664  }
  0x53   :  { %6178 = vsyncadd [#allocation9], 4294901632 }
  0x54   :  { %6179 = dma.done.wait [#allocation12], 8208  }
  0x55   :  { %6180 = vsyncadd [#allocation12], 4294959088  ;;  %v6194_v0 = vmov 0   ;;  %v172_v1 = vld [vmem:[#allocation5 + $0x1c0] sm:$0xff]  ;;  %v173_v3 = vld [vmem:[#allocation5 + $0x1c8] sm:$0xff]  ;;  %s6195_s4 = smov [#allocation14]  }
  0x56   :  { %574 = vmatprep.mubr.bf16.mxu0 %v6194_v0  ;;  %615 = vmatprep.mubr.bf16.mxu1 %v6194_v0  ;;  %v176_v2 = vld [vmem:[#allocation5 + $0x1e0] sm:$0xff]  ;;  %v177_v5 = vld [vmem:[#allocation5 + $0x1e8] sm:$0xff]  ;;  %v174_v63 = vld [vmem:[#allocation5 + $0x1d0] sm:$0xff]  ;;  %s5194_s6 = sshll.u32 %s6195_s4, 4  ;;  %s5195_s6 = int_to_ptr.vmem [resolvable:$true] %s5194_s6 }
  0x57   :  { %v5263_v4 = vcombine.high %v172_v1, %v176_v2  ;;  %v5262_v6 = vcombine.low %v172_v1, %v176_v2  ;;  %v164_v7 = vld [vmem:[#allocation5 + $0x180] sm:$0xff]  ;;  %v5265_v9 = vcombine.high %v173_v3, %v177_v5  ;;  %v5264_v10 = vcombine.low %v173_v3, %v177_v5  ;;  %v165_v12 = vld [vmem:[#allocation5 + $0x188] sm:$0xff]  ;;  %v178_v1 = vld [vmem:[#allocation5 + $0x1f0] sm:$0xff]  ;;  %s6153_s13 = scalar_lea.vmem %s5195_s6, 128  ;;  %p6158_p8 = scmp.lt.s32.totalorder %s5195_s6, %s5195_s6 }
  0x58   :  { %v168_v8 = vld [vmem:[#allocation5 + $0x1a0] sm:$0xff]  ;;  %v169_v13 = vld [vmem:[#allocation5 + $0x1a8] sm:$0xff]  ;;  %v175_v2 = vld [vmem:[#allocation5 + $0x1d8] sm:$0xff]  ;;  %p6154_p7 = scmp.ne.s32.totalorder %s5195_s6, %s6153_s13  ;;  %p6159_p9 = scmp.lt.s32.totalorder %s6153_s13, %s6153_s13 }
  0x59   :  { %v5255_v11 = vcombine.high %v164_v7, %v168_v8  ;;  %v156_v14 = vld [vmem:[#allocation5 + $0x140] sm:$0xff]  ;;  %542 = vmatprep.subr.bf16.mxu0 %v5263_v4  ;;  %v5257_v15 = vcombine.high %v165_v12, %v169_v13  ;;  %v157_v17 = vld [vmem:[#allocation5 + $0x148] sm:$0xff]  ;;  %583 = vmatprep.subr.bf16.mxu1 %v5265_v9  ;;  %v5254_v19 = vcombine.low %v164_v7, %v168_v8  ;;  %v179_v3 = vld [vmem:[#allocation5 + $0x1f8] sm:$0xff] }
  0x5a   :  { %v160_v16 = vld [vmem:[#allocation5 + $0x160] sm:$0xff]  ;;  %v161_v18 = vld [vmem:[#allocation5 + $0x168] sm:$0xff]  ;;  %543 = vmatpush1.bf16.msra.mxu0 %v5262_v6  ;;  %584 = vmatpush1.bf16.msra.mxu1 %v5264_v10  ;;  %v5256_v20 = vcombine.low %v165_v12, %v169_v13  ;;  %v5267_v6 = vcombine.high %v174_v63, %v178_v1  ;;  %v5269_v7 = vcombine.high %v175_v2, %v179_v3  ;;  %v166_v8 = vld [vmem:[#allocation5 + $0x190] sm:$0xff]  ;;  %p6160_p10 = por %p6159_p9, %p6158_p8 }
  0x5b   :  { %544 = vmatprep.subr.bf16.mxu0 %v5255_v11  ;;  %v5247_v21 = vcombine.high %v156_v14, %v160_v16  ;;  %585 = vmatprep.subr.bf16.mxu1 %v5257_v15  ;;  %v5249_v22 = vcombine.high %v157_v17, %v161_v18  ;;  %v148_v23 = vld [vmem:[#allocation5 + $0x100] sm:$0xff]  ;;  %v149_v25 = vld [vmem:[#allocation5 + $0x108] sm:$0xff]  ;;  %v5246_v27 = vcombine.low %v156_v14, %v160_v16  ;;  %v170_v9 = vld [vmem:[#allocation5 + $0x1b0] sm:$0xff] }
  0x5c   :  { %v152_v24 = vld [vmem:[#allocation5 + $0x120] sm:$0xff]  ;;  %v153_v26 = vld [vmem:[#allocation5 + $0x128] sm:$0xff]  ;;  %v5248_v28 = vcombine.low %v157_v17, %v161_v18  ;;  %v167_v10 = vld [vmem:[#allocation5 + $0x198] sm:$0xff]  ;;  %v5266_v13 = vcombine.low %v174_v63, %v178_v1  ;;  %v5268_v14 = vcombine.low %v175_v2, %v179_v3  ;;  %v5259_v15 = vcombine.high %v166_v8, %v170_v9  ;;  %p6161_p11 = pnand %p6160_p10, %p6154_p7 }
  0x5d   :  { %v5239_v29 = vcombine.high %v148_v23, %v152_v24  ;;  %v5241_v30 = vcombine.high %v149_v25, %v153_v26  ;;  %v140_v31 = vld [vmem:[#allocation5 + $0xc0] sm:$0xff]  ;;  %v141_v33 = vld [vmem:[#allocation5 + $0xc8] sm:$0xff]  ;;  %v5238_v35 = vcombine.low %v148_v23, %v152_v24  ;;  %v5240_v36 = vcombine.low %v149_v25, %v153_v26  ;;  %v171_v11 = vld [vmem:[#allocation5 + $0x1b8] sm:$0xff] }
  0x5e   :  { %545 = vmatpush1.bf16.msra.mxu0 %v5254_v19  ;;  %586 = vmatpush1.bf16.msra.mxu1 %v5256_v20  ;;  %v144_v32 = vld [vmem:[#allocation5 + $0xe0] sm:$0xff]  ;;  %v145_v34 = vld [vmem:[#allocation5 + $0xe8] sm:$0xff]  ;;  %v6259_v12 = vld [vmem:[#allocation2] sm:$0xf]  ;;  %v5261_v16 = vcombine.high %v167_v10, %v171_v11 }
  0x5f   :  { %546 = vmatprep.subr.bf16.mxu0 %v5247_v21  ;;  %587 = vmatprep.subr.bf16.mxu1 %v5249_v22  ;;  %v5231_v37 = vcombine.high %v140_v31, %v144_v32  ;;  %v5233_v38 = vcombine.high %v141_v33, %v145_v34  ;;  %v132_v39 = vld [vmem:[#allocation5 + $0x80] sm:$0xff]  ;;  %v133_v41 = vld [vmem:[#allocation5 + $0x88] sm:$0xff]  ;;  %v5230_v43 = vcombine.low %v140_v31, %v144_v32  ;;  %v158_v17 = vld [vmem:[#allocation5 + $0x150] sm:$0xff] }
  0x60   :  { %v136_v40 = vld [vmem:[#allocation5 + $0xa0] sm:$0xff]  ;;  %v137_v42 = vld [vmem:[#allocation5 + $0xa8] sm:$0xff]  ;;  %v5232_v44 = vcombine.low %v141_v33, %v145_v34  ;;  %v162_v18 = vld [vmem:[#allocation5 + $0x170] sm:$0xff]  ;;  %v5258_v21 = vcombine.low %v166_v8, %v170_v9  ;;  %v5260_v22 = vcombine.low %v167_v10, %v171_v11 }
  0x61   :  { %v5223_v45 = vcombine.high %v132_v39, %v136_v40  ;;  %v5225_v46 = vcombine.high %v133_v41, %v137_v42  ;;  %v124_v47 = vld [vmem:[#allocation5 + $0x40] sm:$0xff]  ;;  %v125_v49 = vld [vmem:[#allocation5 + $0x48] sm:$0xff]  ;;  %v5222_v51 = vcombine.low %v132_v39, %v136_v40  ;;  %v5224_v52 = vcombine.low %v133_v41, %v137_v42  ;;  %v159_v19 = vld [vmem:[#allocation5 + $0x158] sm:$0xff] }
  0x62   :  { %547 = vmatpush1.bf16.msra.mxu0 %v5246_v27  ;;  %588 = vmatpush1.bf16.msra.mxu1 %v5248_v28  ;;  %v128_v48 = vld [vmem:[#allocation5 + $0x60] sm:$0xff]  ;;  %v129_v50 = vld [vmem:[#allocation5 + $0x68] sm:$0xff]  ;;  %v163_v20 = vld [vmem:[#allocation5 + $0x178] sm:$0xff]  ;;  %v5251_v23 = vcombine.high %v158_v17, %v162_v18 }
  0x63   :  { %548 = vmatprep.subr.bf16.mxu0 %v5239_v29  ;;  %589 = vmatprep.subr.bf16.mxu1 %v5241_v30  ;;  %v5215_v53 = vcombine.high %v124_v47, %v128_v48  ;;  %v5217_v54 = vcombine.high %v125_v49, %v129_v50  ;;  %v116_v55 = vld [vmem:[#allocation5] sm:$0xff]  ;;  %v117_v57 = vld [vmem:[#allocation5 + $0x8] sm:$0xff]  ;;  %v5214_v59 = vcombine.low %v124_v47, %v128_v48  ;;  %v150_v25 = vld [vmem:[#allocation5 + $0x110] sm:$0xff] }
  0x64   :  { %v120_v56 = vld [vmem:[#allocation5 + $0x20] sm:$0xff]  ;;  %v121_v58 = vld [vmem:[#allocation5 + $0x28] sm:$0xff]  ;;  %v5216_v60 = vcombine.low %v125_v49, %v129_v50  ;;  %v5253_v24 = vcombine.high %v159_v19, %v163_v20  ;;  %v154_v26 = vld [vmem:[#allocation5 + $0x130] sm:$0xff]  ;;  %v5250_v29 = vcombine.low %v158_v17, %v162_v18  ;;  %v5252_v32 = vcombine.low %v159_v19, %v163_v20 }
  0x65   :  { %v5207_v61 = vcombine.high %v116_v55, %v120_v56  ;;  %v5209_v62 = vcombine.high %v117_v57, %v121_v58  ;;  %v5206_v4 = vcombine.low %v116_v55, %v120_v56  ;;  %v5208_v5 = vcombine.low %v117_v57, %v121_v58  ;;  %v151_v27 = vld [vmem:[#allocation5 + $0x118] sm:$0xff]  ;;  %v142_v30 = vld [vmem:[#allocation5 + $0xd0] sm:$0xff]  ;;  %v906_v2 = vld [vmem:[#allocation8 + $0x5c0] sm:$0xff] }
  0x66   :  { %549 = vmatpush1.bf16.msra.mxu0 %v5238_v35  ;;  %590 = vmatpush1.bf16.msra.mxu1 %v5240_v36  ;;  %v155_v28 = vld [vmem:[#allocation5 + $0x138] sm:$0xff]  ;;  %v146_v31 = vld [vmem:[#allocation5 + $0xf0] sm:$0xff]  ;;  %v5243_v33 = vcombine.high %v150_v25, %v154_v26  ;;  %v910_v3 = vld [vmem:[#allocation8 + $0x5e0] sm:$0xff] }
  0x67   :  { %550 = vmatprep.subr.bf16.mxu0 %v5231_v37  ;;  %591 = vmatprep.subr.bf16.mxu1 %v5233_v38  ;;  %v143_v34 = vld [vmem:[#allocation5 + $0xd8] sm:$0xff]  ;;  %v5245_v36 = vcombine.high %v151_v27, %v155_v28  ;;  %v5242_v37 = vcombine.low %v150_v25, %v154_v26  ;;  %v134_v38 = vld [vmem:[#allocation5 + $0x90] sm:$0xff]  ;;  %v5244_v40 = vcombine.low %v151_v27, %v155_v28  ;;  %v898_v10 = vld [vmem:[#allocation8 + $0x580] sm:$0xff] }
  0x68   :  { %v147_v35 = vld [vmem:[#allocation5 + $0xf8] sm:$0xff]  ;;  %v138_v39 = vld [vmem:[#allocation5 + $0xb0] sm:$0xff]  ;;  %v902_v11 = vld [vmem:[#allocation8 + $0x5a0] sm:$0xff]  ;;  %v5454_v17 = vcombine.low %v906_v2, %v910_v3 }
  0x69   :  { %v135_v41 = vld [vmem:[#allocation5 + $0x98] sm:$0xff]  ;;  %v5236_v47 = vcombine.low %v143_v34, %v147_v35  ;;  %v5227_v48 = vcombine.high %v134_v38, %v138_v39  ;;  %v890_v19 = vld [vmem:[#allocation8 + $0x540] sm:$0xff]  ;;  %v5446_v25 = vcombine.low %v898_v10, %v902_v11 }
  0x6a   :  { %551 = vmatpush1.bf16.msra.mxu0 %v5230_v43  ;;  %592 = vmatpush1.bf16.msra.mxu1 %v5232_v44  ;;  %v139_v42 = vld [vmem:[#allocation5 + $0xb8] sm:$0xff]  ;;  %v5237_v43 = vcombine.high %v143_v34, %v147_v35  ;;  %v5234_v44 = vcombine.low %v142_v30, %v146_v31  ;;  %v894_v20 = vld [vmem:[#allocation8 + $0x560] sm:$0xff] }
  0x6b   :  { %552 = vmatprep.subr.bf16.mxu0 %v5223_v45  ;;  %593 = vmatprep.subr.bf16.mxu1 %v5225_v46  ;;  %v126_v45 = vld [vmem:[#allocation5 + $0x50] sm:$0xff]  ;;  %v127_v49 = vld [vmem:[#allocation5 + $0x58] sm:$0xff]  ;;  %v5228_v55 = vcombine.low %v135_v41, %v139_v42  ;;  %v882_v27 = vld [vmem:[#allocation8 + $0x500] sm:$0xff] }
  0x6c   :  { %v130_v46 = vld [vmem:[#allocation5 + $0x70] sm:$0xff]  ;;  %v131_v50 = vld [vmem:[#allocation5 + $0x78] sm:$0xff]  ;;  %v886_v28 = vld [vmem:[#allocation8 + $0x520] sm:$0xff] }
  0x6d   :  { %v5219_v56 = vcombine.high %v126_v45, %v130_v46  ;;  %v119_v57 = vld [vmem:[#allocation5 + $0x18] sm:$0xff]  ;;  %v5220_v63 = vcombine.low %v127_v49, %v131_v50  ;;  %v874_v34 = vld [vmem:[#allocation8 + $0x4c0] sm:$0xff] }
  0x6e   :  { %553 = vmatpush1.bf16.msra.mxu0 %v5222_v51  ;;  %594 = vmatpush1.bf16.msra.mxu1 %v5224_v52  ;;  %v5229_v51 = vcombine.high %v135_v41, %v139_v42  ;;  %v5226_v52 = vcombine.low %v134_v38, %v138_v39  ;;  %v123_v58 = vld [vmem:[#allocation5 + $0x38] sm:$0xff]  ;;  %v878_v35 = vld [vmem:[#allocation8 + $0x4e0] sm:$0xff] }
  0x6f   :  { %554 = vmatprep.subr.bf16.mxu0 %v5215_v53  ;;  %595 = vmatprep.subr.bf16.mxu1 %v5217_v54  ;;  %v118_v53 = vld [vmem:[#allocation5 + $0x10] sm:$0xff]  ;;  %v5212_v8 = vcombine.low %v119_v57, %v123_v58  ;;  %v738_v38 = vld [vmem:[#allocation8 + $0x80] sm:$0xff] }
  0x70   :  { %v122_v54 = vld [vmem:[#allocation5 + $0x30] sm:$0xff]  ;;  %v742_v39 = vld [vmem:[#allocation8 + $0xa0] sm:$0xff] }
  0x71   :  { %v5211_v1 = vcombine.high %v118_v53, %v122_v54  ;;  %v866_v41 = vld [vmem:[#allocation8 + $0x480] sm:$0xff] }
  0x72   :  { %555 = vmatpush1.bf16.msra.mxu0 %v5214_v59  ;;  %596 = vmatpush1.bf16.msra.mxu1 %v5216_v60  ;;  %v5221_v59 = vcombine.high %v127_v49, %v131_v50  ;;  %v5218_v60 = vcombine.low %v126_v45, %v130_v46  ;;  %v870_v42 = vld [vmem:[#allocation8 + $0x4a0] sm:$0xff] }
  0x73   :  { %556 = vmatprep.subr.bf16.mxu0 %v5207_v61  ;;  %597 = vmatprep.subr.bf16.mxu1 %v5209_v62  ;;  %v778_v61 = vld [vmem:[#allocation8 + $0x1c0] sm:$0xff]  ;;  %v5415_v49 = vcombine.high %v866_v41, %v870_v42 }
  0x74   :  { %v782_v62 = vld [vmem:[#allocation8 + $0x1e0] sm:$0xff] }
  0x75   :  { %v5327_v9 = vcombine.high %v778_v61, %v782_v62  ;;  %v730_v45 = vld [vmem:[#allocation8 + $0x40] sm:$0xff] }
  0x76   :  { %557 = vmatpush1.bf16.msra.mxu0 %v5206_v4  ;;  %598 = vmatpush1.bf16.msra.mxu1 %v5208_v5  ;;  %v5213_v4 = vcombine.high %v119_v57, %v123_v58  ;;  %v5210_v5 = vcombine.low %v118_v53, %v122_v54  ;;  %v734_v46 = vld [vmem:[#allocation8 + $0x60] sm:$0xff]  ;;  %v5414_v53 = vcombine.low %v866_v41, %v870_v42 }
  0x77   :  { %624 = vmatprep.subr.bf16.mxu0 %v5267_v6  ;;  %665 = vmatprep.subr.bf16.mxu1 %v5269_v7  ;;  %v770_v6 = vld [vmem:[#allocation8 + $0x180] sm:$0xff]  ;;  %v5279_v54 = vcombine.high %v730_v45, %v734_v46 }
  0x78   :  { %v774_v7 = vld [vmem:[#allocation8 + $0x1a0] sm:$0xff] }
  0x79   :  { %575 = vmatmul.mubr.bf16.vlgmr.msra.gmra.mxu0 %v6259_v12  ;;  %616 = vmatmul.mubr.bf16.vlgmr.msra.gmra.mxu1 %v6259_v12  ;;  %v5319_v18 = vcombine.high %v770_v6, %v774_v7  ;;  %v858_v50 = vld [vmem:[#allocation8 + $0x440] sm:$0xff] }
  0x7a   :  { %625 = vmatpush1.bf16.msra.mxu0 %v5266_v13  ;;  %666 = vmatpush1.bf16.msra.mxu1 %v5268_v14  ;;  %v5455_v13 = vcombine.high %v906_v2, %v910_v3  ;;  %v5326_v14 = vcombine.low %v778_v61, %v782_v62  ;;  %v726_v57 = vld [vmem:[#allocation8 + $0x20] sm:$0xff] }
  0x7b   :  { %626 = vmatprep.subr.bf16.mxu0 %v5259_v15  ;;  %667 = vmatprep.subr.bf16.mxu1 %v5261_v16  ;;  %v762_v15 = vld [vmem:[#allocation8 + $0x140] sm:$0xff] }
  0x7c   :  { %656 = vmatprep.mubr.bf16.mxu0 %v6194_v0  ;;  %697 = vmatprep.mubr.bf16.mxu1 %v6194_v0  ;;  %v5235_v0 = vcombine.high %v142_v30, %v146_v31  ;;  %v766_v16 = vld [vmem:[#allocation8 + $0x160] sm:$0xff] }
  0x7d   :  { %v5311_v26 = vcombine.high %v762_v15, %v766_v16  ;;  %v5310_v30 = vcombine.low %v762_v15, %v766_v16  ;;  %v746_v31 = vld [vmem:[#allocation8 + $0xc0] sm:$0xff] }
  0x7e   :  { %627 = vmatpush1.bf16.msra.mxu0 %v5258_v21  ;;  %668 = vmatpush1.bf16.msra.mxu1 %v5260_v22  ;;  %v5447_v21 = vcombine.high %v898_v10, %v902_v11  ;;  %v5318_v22 = vcombine.low %v770_v6, %v774_v7  ;;  %v850_v58 = vld [vmem:[#allocation8 + $0x400] sm:$0xff] }
  0x7f   :  { %628 = vmatprep.subr.bf16.mxu0 %v5251_v23  ;;  %669 = vmatprep.subr.bf16.mxu1 %v5253_v24  ;;  %v754_v23 = vld [vmem:[#allocation8 + $0x100] sm:$0xff] }
  0x80   :  { %v758_v24 = vld [vmem:[#allocation8 + $0x120] sm:$0xff] }
  0x81   :  { %v846_v2 = vld [vmem:[#allocation8 + $0x3e0] sm:$0xff] }
  0x82   :  { %629 = vmatpush1.bf16.msra.mxu0 %v5250_v29  ;;  %670 = vmatpush1.bf16.msra.mxu1 %v5252_v32  ;;  %v5439_v29 = vcombine.high %v890_v19, %v894_v20  ;;  %v750_v32 = vld [vmem:[#allocation8 + $0xe0] sm:$0xff] }
  0x83   :  { %630 = vmatprep.subr.bf16.mxu0 %v5243_v33  ;;  %671 = vmatprep.subr.bf16.mxu1 %v5245_v36  ;;  %v5438_v33 = vcombine.low %v890_v19, %v894_v20  ;;  %v5431_v36 = vcombine.high %v882_v27, %v886_v28  ;;  %v970_v3 = vld [vmem:[#allocation8 + $0x7c0] sm:$0xff] }
  0x84   :  { %v838_v10 = vld [vmem:[#allocation8 + $0x3a0] sm:$0xff] }
  0x85   :  { %v962_v11 = vld [vmem:[#allocation8 + $0x780] sm:$0xff] }
  0x86   :  { %631 = vmatpush1.bf16.msra.mxu0 %v5242_v37  ;;  %672 = vmatpush1.bf16.msra.mxu1 %v5244_v40  ;;  %v5302_v37 = vcombine.low %v754_v23, %v758_v24  ;;  %v5430_v40 = vcombine.low %v882_v27, %v886_v28  ;;  %v830_v19 = vld [vmem:[#allocation8 + $0x360] sm:$0xff] }
  0x87   :  { %632 = vmatprep.subr.bf16.mxu0 %v5235_v0  ;;  %673 = vmatprep.subr.bf16.mxu1 %v5237_v43  ;;  %v5295_v0 = vcombine.high %v746_v31, %v750_v32  ;;  %v5423_v43 = vcombine.high %v874_v34, %v878_v35  ;;  %v954_v20 = vld [vmem:[#allocation8 + $0x740] sm:$0xff] }
  0x88   :  { %v822_v27 = vld [vmem:[#allocation8 + $0x320] sm:$0xff] }
  0x89   :  { %v946_v28 = vld [vmem:[#allocation8 + $0x700] sm:$0xff] }
  0x8a   :  { %633 = vmatpush1.bf16.msra.mxu0 %v5234_v44  ;;  %674 = vmatpush1.bf16.msra.mxu1 %v5236_v47  ;;  %v5294_v44 = vcombine.low %v746_v31, %v750_v32  ;;  %v5422_v47 = vcombine.low %v874_v34, %v878_v35  ;;  %v6267_v35 = vld [vmem:[#allocation8 + $0x9c0] sm:$0xff] }
  0x8b   :  { %634 = vmatprep.subr.bf16.mxu0 %v5227_v48  ;;  %675 = vmatprep.subr.bf16.mxu1 %v5229_v51  ;;  %v5287_v48 = vcombine.high %v738_v38, %v742_v39  ;;  %v862_v51 = vld [vmem:[#allocation8 + $0x460] sm:$0xff] }
  0x8c   :  { %v5406_v61 = vcombine.low %v858_v50, %v862_v51 }
  0x8e   :  { %635 = vmatpush1.bf16.msra.mxu0 %v5226_v52  ;;  %676 = vmatpush1.bf16.msra.mxu1 %v5228_v55  ;;  %v5286_v52 = vcombine.low %v738_v38, %v742_v39  ;;  %v5407_v55 = vcombine.high %v858_v50, %v862_v51  ;;  %v938_v38 = vld [vmem:[#allocation8 + $0x6c0] sm:$0xff] }
  0x8f   :  { %636 = vmatprep.subr.bf16.mxu0 %v5219_v56  ;;  %677 = vmatprep.subr.bf16.mxu1 %v5221_v59  ;;  %v722_v56 = vld [vmem:[#allocation8] sm:$0xff] }
  0x90   :  { %v854_v59 = vld [vmem:[#allocation8 + $0x420] sm:$0xff]  ;;  %v5271_v62 = vcombine.high %v722_v56, %v726_v57 }
  0x91   :  { %v5398_v6 = vcombine.low %v850_v58, %v854_v59  ;;  %v942_v39 = vld [vmem:[#allocation8 + $0x6e0] sm:$0xff] }
  0x92   :  { %637 = vmatpush1.bf16.msra.mxu0 %v5218_v60  ;;  %678 = vmatpush1.bf16.msra.mxu1 %v5220_v63  ;;  %v5278_v60 = vcombine.low %v730_v45, %v734_v46  ;;  %v5399_v63 = vcombine.high %v850_v58, %v854_v59  ;;  %v5487_v45 = vcombine.high %v938_v38, %v942_v39  ;;  %v802_v46 = vld [vmem:[#allocation8 + $0x280] sm:$0xff] }
  0x93   :  { %638 = vmatprep.subr.bf16.mxu0 %v5211_v1  ;;  %679 = vmatprep.subr.bf16.mxu1 %v5213_v4  ;;  %v842_v1 = vld [vmem:[#allocation8 + $0x3c0] sm:$0xff]  ;;  %v5486_v51 = vcombine.low %v938_v38, %v942_v39 }
  0x94   :  { %v974_v4 = vld [vmem:[#allocation8 + $0x7e0] sm:$0xff]  ;;  %v5391_v7 = vcombine.high %v842_v1, %v846_v2 }
  0x95   :  { %v5518_v15 = vcombine.low %v970_v3, %v974_v4  ;;  %v1026_v38 = vld [vmem:[#allocation8 + $0x980] sm:$0xff] }
  0x96   :  { %639 = vmatpush1.bf16.msra.mxu0 %v5210_v5  ;;  %680 = vmatpush1.bf16.msra.mxu1 %v5212_v8  ;;  %v5270_v5 = vcombine.low %v722_v56, %v726_v57  ;;  %v5519_v8 = vcombine.high %v970_v3, %v974_v4  ;;  %v922_v56 = vld [vmem:[#allocation8 + $0x640] sm:$0xff] }
  0x97   :  { %3836 = vmatprep.subr.bf16.mxu0 %v5327_v9  ;;  %3877 = vmatprep.subr.bf16.mxu1 %v5455_v13  ;;  %v834_v9 = vld [vmem:[#allocation8 + $0x380] sm:$0xff] }
  0x98   :  { %v966_v13 = vld [vmem:[#allocation8 + $0x7a0] sm:$0xff]  ;;  %v5383_v16 = vcombine.high %v834_v9, %v838_v10 }
  0x99   :  { %657 = vmatmul.mubr.bf16.vlgmr.msra.gmra.mxu0 %v6259_v12  ;;  %698 = vmatmul.mubr.bf16.vlgmr.msra.gmra.mxu1 %v6259_v12  ;;  %v5303_v12 = vcombine.high %v754_v23, %v758_v24  ;;  %v5510_v23 = vcombine.low %v962_v11, %v966_v13  ;;  %v926_v57 = vld [vmem:[#allocation8 + $0x660] sm:$0xff] }
  0x9a   :  { %3837 = vmatpush1.bf16.msra.mxu0 %v5326_v14  ;;  %3878 = vmatpush1.bf16.msra.mxu1 %v5454_v17  ;;  %v5390_v14 = vcombine.low %v842_v1, %v846_v2  ;;  %v5511_v17 = vcombine.high %v962_v11, %v966_v13  ;;  %v914_v1 = vld [vmem:[#allocation8 + $0x600] sm:$0xff]  ;;  %v5470_v4 = vcombine.low %v922_v56, %v926_v57  ;;  %v182_v11 = vlaneseq }
  0x9b   :  { %3838 = vmatprep.subr.bf16.mxu0 %v5319_v18  ;;  %3879 = vmatprep.subr.bf16.mxu1 %v5447_v21  ;;  %v826_v18 = vld [vmem:[#allocation8 + $0x340] sm:$0xff] }
  0x9c   :  { %v958_v21 = vld [vmem:[#allocation8 + $0x760] sm:$0xff]  ;;  %v5375_v24 = vcombine.high %v826_v18, %v830_v19  ;;  %v6283_v13 = vshrl.u32 %v182_v11, 7 }
  0x9d   :  { %v5502_v31 = vcombine.low %v954_v20, %v958_v21  ;;  %v918_v2 = vld [vmem:[#allocation8 + $0x620] sm:$0xff] }
  0x9e   :  { %3839 = vmatpush1.bf16.msra.mxu0 %v5318_v22  ;;  %3880 = vmatpush1.bf16.msra.mxu1 %v5446_v25  ;;  %v5382_v22 = vcombine.low %v834_v9, %v838_v10  ;;  %v5503_v25 = vcombine.high %v954_v20, %v958_v21  ;;  %v1030_v39 = vld [vmem:[#allocation8 + $0x9a0] sm:$0xff] }
  0x9f   :  { %3840 = vmatprep.subr.bf16.mxu0 %v5311_v26  ;;  %3881 = vmatprep.subr.bf16.mxu1 %v5439_v29  ;;  %v818_v26 = vld [vmem:[#allocation8 + $0x300] sm:$0xff] }
  0xa0   :  { %v950_v29 = vld [vmem:[#allocation8 + $0x720] sm:$0xff]  ;;  %v5367_v32 = vcombine.high %v818_v26, %v822_v27 }
  0xa1   :  { %v5495_v34 = vcombine.high %v946_v28, %v950_v29  ;;  %v1126_v11 = vld [vmem:[#allocation8 + $0xca0] sm:$0xff] }
  0xa2   :  { %3841 = vmatpush1.bf16.msra.mxu0 %v5310_v30  ;;  %3882 = vmatpush1.bf16.msra.mxu1 %v5438_v33  ;;  %v5374_v30 = vcombine.low %v826_v18, %v830_v19  ;;  %v810_v33 = vld [vmem:[#allocation8 + $0x2c0] sm:$0xff]  ;;  %v196_v18 = vsub.s32 3, %v6283_v13 }
  0xa3   :  { %3842 = vmatprep.subr.bf16.mxu0 %v5303_v12  ;;  %3883 = vmatprep.subr.bf16.mxu1 %v5431_v36  ;;  %v814_v12 = vld [vmem:[#allocation8 + $0x2e0] sm:$0xff] }
  0xa4   :  { %v6269_v36 = vld [vmem:[#allocation8 + $0x9e0] sm:$0xff]  ;;  %v5358_v50 = vcombine.low %v810_v33, %v814_v12 }
  0xa5   :  { %v5582_v41 = vcombine.low %v6267_v35, %v6269_v36  ;;  %v5583_v9 = vcombine.high %v6267_v35, %v6269_v36 }
  0xa6   :  { %3843 = vmatpush1.bf16.msra.mxu0 %v5302_v37  ;;  %3884 = vmatpush1.bf16.msra.mxu1 %v5430_v40  ;;  %v6271_v37 = vld [vmem:[#allocation8 + $0xdc0] sm:$0xff] }
  0xa7   :  { %3844 = vmatprep.subr.bf16.mxu0 %v5295_v0  ;;  %3885 = vmatprep.subr.bf16.mxu1 %v5423_v43  ;;  %v6273_v40 = vld [vmem:[#allocation8 + $0xde0] sm:$0xff]  ;;  %v5366_v0 = vcombine.low %v818_v26, %v822_v27  ;;  %v5494_v43 = vcombine.low %v946_v28, %v950_v29 }
  0xa8   :  { %v5710_v42 = vcombine.low %v6271_v37, %v6273_v40  ;;  %v5711_v10 = vcombine.high %v6271_v37, %v6273_v40  ;;  %v1006_v37 = vld [vmem:[#allocation8 + $0x8e0] sm:$0xff] }
  0xa9   :  { %v1130_v40 = vld [vmem:[#allocation8 + $0xcc0] sm:$0xff] }
  0xaa   :  { %3845 = vmatpush1.bf16.msra.mxu0 %v5294_v44  ;;  %3886 = vmatpush1.bf16.msra.mxu1 %v5422_v47  ;;  %v5359_v44 = vcombine.high %v810_v33, %v814_v12  ;;  %v806_v47 = vld [vmem:[#allocation8 + $0x2a0] sm:$0xff] }
  0xab   :  { %3846 = vmatprep.subr.bf16.mxu0 %v5287_v48  ;;  %3887 = vmatprep.subr.bf16.mxu1 %v5415_v49  ;;  %v930_v48 = vld [vmem:[#allocation8 + $0x680] sm:$0xff]  ;;  %v5350_v58 = vcombine.low %v802_v46, %v806_v47 }
  0xac   :  { %v934_v49 = vld [vmem:[#allocation8 + $0x6a0] sm:$0xff] }
  0xad   :  { %v5478_v59 = vcombine.low %v930_v48, %v934_v49 }
  0xae   :  { %3847 = vmatpush1.bf16.msra.mxu0 %v5286_v52  ;;  %3888 = vmatpush1.bf16.msra.mxu1 %v5414_v53  ;;  %v5351_v52 = vcombine.high %v802_v46, %v806_v47  ;;  %v5479_v53 = vcombine.high %v930_v48, %v934_v49 }
  0xaf   :  { %3848 = vmatprep.subr.bf16.mxu0 %v5279_v54  ;;  %3889 = vmatprep.subr.bf16.mxu1 %v5407_v55  ;;  %v794_v54 = vld [vmem:[#allocation8 + $0x240] sm:$0xff] }
  0xb0   :  { %v798_v55 = vld [vmem:[#allocation8 + $0x260] sm:$0xff] }
  0xb1   :  { %v5342_v3 = vcombine.low %v794_v54, %v798_v55 }
  0xb2   :  { %3849 = vmatpush1.bf16.msra.mxu0 %v5278_v60  ;;  %3890 = vmatpush1.bf16.msra.mxu1 %v5406_v61  ;;  %v5343_v60 = vcombine.high %v794_v54, %v798_v55  ;;  %v5471_v61 = vcombine.high %v922_v56, %v926_v57  ;;  %v1022_v54 = vld [vmem:[#allocation8 + $0x960] sm:$0xff]  ;;  %v5574_v57 = vcombine.low %v1026_v38, %v1030_v39 }
  0xb3   :  { %3850 = vmatprep.subr.bf16.mxu0 %v5271_v62  ;;  %3891 = vmatprep.subr.bf16.mxu1 %v5399_v63  ;;  %v786_v62 = vld [vmem:[#allocation8 + $0x200] sm:$0xff] }
  0xb4   :  { %v790_v63 = vld [vmem:[#allocation8 + $0x220] sm:$0xff] }
  0xb5   :  { %v1146_v55 = vld [vmem:[#allocation8 + $0xd40] sm:$0xff] }
  0xb6   :  { %3851 = vmatpush1.bf16.msra.mxu0 %v5270_v5  ;;  %3892 = vmatpush1.bf16.msra.mxu1 %v5398_v6  ;;  %v5335_v5 = vcombine.high %v786_v62, %v790_v63  ;;  %v5463_v6 = vcombine.high %v914_v1, %v918_v2  ;;  %v1150_v56 = vld [vmem:[#allocation8 + $0xd60] sm:$0xff] }
  0xb7   :  { %3852 = vmatprep.subr.bf16.mxu0 %v5391_v7  ;;  %3893 = vmatprep.subr.bf16.mxu1 %v5519_v8  ;;  %v5334_v7 = vcombine.low %v786_v62, %v790_v63  ;;  %v5462_v8 = vcombine.low %v914_v1, %v918_v2  ;;  %v1014_v62 = vld [vmem:[#allocation8 + $0x920] sm:$0xff]  ;;  %v5694_v35 = vcombine.low %v1146_v55, %v1150_v56 }
  0xb8   :  { %v1138_v63 = vld [vmem:[#allocation8 + $0xd00] sm:$0xff] }
  0xb9   :  { %v1142_v1 = vld [vmem:[#allocation8 + $0xd20] sm:$0xff] }
  0xba   :  { %3853 = vmatpush2.bf16.msra.mxu0 %v5390_v14  ;;  %3894 = vmatpush2.bf16.msra.mxu1 %v5518_v15  ;;  %v184_v14 = vsub.s32 0, %v6283_v13  ;;  %v6286_v15 = vld [vmem:[#allocation7] sm:$0xff] }
  0xbb   :  { %3854 = vmatprep.subr.bf16.mxu0 %v5383_v16  ;;  %3895 = vmatprep.subr.bf16.mxu1 %v5511_v17  ;;  %v192_v16 = vsub.s32 2, %v6283_v13  ;;  %v188_v17 = vsub.s32 1, %v6283_v13 }
  0xbc   :  { %v185_v19 = vrot.slane %v6286_v15, %v184_v14 }
  0xbd   :  { %v193_v20 = vrot.slane %v6286_v15, %v192_v16  ;;  %v189_v21 = vrot.slane %v6286_v15, %v188_v17 }
  0xbe   :  { %3855 = vmatpush2.bf16.msra.mxu0 %v5382_v22  ;;  %3896 = vmatpush2.bf16.msra.mxu1 %v5510_v23  ;;  %v197_v23 = vrot.slane %v6286_v15, %v196_v18 }
  0xbf   :  { %3856 = vmatprep.subr.bf16.mxu0 %v5375_v24  ;;  %3897 = vmatprep.subr.bf16.mxu1 %v5503_v25 }
  0xc2   :  { %3857 = vmatpush2.bf16.msra.mxu0 %v5374_v30  ;;  %3898 = vmatpush2.bf16.msra.mxu1 %v5502_v31 }
  0xc3   :  { %3858 = vmatprep.subr.bf16.mxu0 %v5367_v32  ;;  %3899 = vmatprep.subr.bf16.mxu1 %v5495_v34 }
  0xc6   :  { %3859 = vmatpush2.bf16.msra.mxu0 %v5366_v0  ;;  %3900 = vmatpush2.bf16.msra.mxu1 %v5494_v43 }
  0xc7   :  { %3860 = vmatprep.subr.bf16.mxu0 %v5359_v44  ;;  %3901 = vmatprep.subr.bf16.mxu1 %v5487_v45  ;;  %v1154_v44 = vld [vmem:[#allocation8 + $0xd80] sm:$0xff] }
  0xc8   :  { %v1158_v45 = vld [vmem:[#allocation8 + $0xda0] sm:$0xff] }
  0xca   :  { %3861 = vmatpush2.bf16.msra.mxu0 %v5358_v50  ;;  %3902 = vmatpush2.bf16.msra.mxu1 %v5486_v51  ;;  %v5575_v51 = vcombine.high %v1026_v38, %v1030_v39  ;;  %v1110_v38 = vld [vmem:[#allocation8 + $0xc20] sm:$0xff] }
  0xcb   :  { %3862 = vmatprep.subr.bf16.mxu0 %v5351_v52  ;;  %3903 = vmatprep.subr.bf16.mxu1 %v5479_v53  ;;  %v5703_v52 = vcombine.high %v1154_v44, %v1158_v45  ;;  %v1018_v53 = vld [vmem:[#allocation8 + $0x940] sm:$0xff] }
  0xcc   :  { %v5566_v2 = vcombine.low %v1018_v53, %v1022_v54 }
  0xce   :  { %3863 = vmatpush2.bf16.msra.mxu0 %v5350_v58  ;;  %3904 = vmatpush2.bf16.msra.mxu1 %v5478_v59  ;;  %v5702_v58 = vcombine.low %v1154_v44, %v1158_v45  ;;  %v5567_v59 = vcombine.high %v1018_v53, %v1022_v54  ;;  %v1102_v53 = vld [vmem:[#allocation8 + $0xbe0] sm:$0xff] }
  0xcf   :  { %3864 = vmatprep.subr.bf16.mxu0 %v5343_v60  ;;  %3905 = vmatprep.subr.bf16.mxu1 %v5471_v61  ;;  %v5695_v60 = vcombine.high %v1146_v55, %v1150_v56  ;;  %v1010_v61 = vld [vmem:[#allocation8 + $0x900] sm:$0xff] }
  0xd0   :  { %v5559_v36 = vcombine.high %v1010_v61, %v1014_v62  ;;  %v1226_v55 = vld [vmem:[#allocation8 + $0xfc0] sm:$0xff] }
  0xd1   :  { %v1230_v56 = vld [vmem:[#allocation8 + $0xfe0] sm:$0xff] }
  0xd2   :  { %3865 = vmatpush2.bf16.msra.mxu0 %v5342_v3  ;;  %3906 = vmatpush2.bf16.msra.mxu1 %v5470_v4  ;;  %v1002_v3 = vld [vmem:[#allocation8 + $0x8c0] sm:$0xff]  ;;  %v5558_v4 = vcombine.low %v1010_v61, %v1014_v62 }
  0xd3   :  { %3866 = vmatprep.subr.bf16.mxu0 %v5335_v5  ;;  %3907 = vmatprep.subr.bf16.mxu1 %v5463_v6  ;;  %v5686_v5 = vcombine.low %v1138_v63, %v1142_v1  ;;  %v5551_v6 = vcombine.high %v1002_v3, %v1006_v37 }
  0xd6   :  { %3867 = vmatpush2.bf16.msra.mxu0 %v5334_v7  ;;  %3908 = vmatpush2.bf16.msra.mxu1 %v5462_v8  ;;  %v994_v8 = vld [vmem:[#allocation8 + $0x880] sm:$0xff] }
  0xd7   :  { %3918 = vmatprep.subr.bf16.mxu0 %v5583_v9  ;;  %3959 = vmatprep.subr.bf16.mxu1 %v5711_v10  ;;  %v998_v9 = vld [vmem:[#allocation8 + $0x8a0] sm:$0xff] }
  0xd8   :  { %v1122_v10 = vld [vmem:[#allocation8 + $0xc80] sm:$0xff] }
 0x139   :  { %v576_v22 = vpop.f32.mrf.mxu0  ;;  %v617_v25 = vpop.f32.mrf.mxu1 }
 0x13a   :  { %v577_v24 = vadd.f32 %v576_v22, %v185_v19  ;;  %v618_v26 = vadd.f32 %v617_v25, %v193_v20  ;;  %v5550_v19 = vcombine.low %v1002_v3, %v1006_v37  ;;  %v5671_v22 = vcombine.high %v1122_v10, %v1126_v11  ;;  %v1114_v25 = vld [vmem:[#allocation8 + $0xc40] sm:$0xff] }
 0x13b   :  { %v578_v27 = vpop.f32.mrf.mxu0  ;;  %v619_v29 = vpop.f32.mrf.mxu1  ;;  %v1218_v37 = vld [vmem:[#allocation8 + $0xf80] sm:$0xff] }
 0x13c   :  { %v579_v28 = vadd.f32 %v578_v27, %v189_v21  ;;  %v706_v30 = vmax.f32 %v577_v24, 0.0  ;;  %v708_v31 = vmax.f32 %v618_v26, 0.0  ;;  %v620_v32 = vadd.f32 %v619_v29, %v197_v23  ;;  %v986_v23 = vld [vmem:[#allocation8 + $0x840] sm:$0xff] }
 0x13d   :  { %v580_v33 = vpop.f32.mrf.mxu0  ;;  %v621_v34 = vpop.f32.mrf.mxu1  ;;  %v5543_v21 = vcombine.high %v994_v8, %v998_v9  ;;  %v990_v24 = vld [vmem:[#allocation8 + $0x860] sm:$0xff]  ;;  %v5542_v27 = vcombine.low %v994_v8, %v998_v9  ;;  %v5670_v29 = vcombine.low %v1122_v10, %v1126_v11  ;;  %v5774_v8 = vcombine.low %v1226_v55, %v1230_v56 }
 0x13e   :  { %v707_v12 = vmax.f32 %v579_v28, 0.0  ;;  %v709_v0 = vmax.f32 %v620_v32, 0.0  ;;  %v6303_v46 = vpack.c.bf16 %v708_v31, %v708_v31  ;;  %v6307_v49 = vpack.c.bf16 %v706_v30, %v706_v30  ;;  %v1118_v26 = vld [vmem:[#allocation8 + $0xc60] sm:$0xff] }
 0x13f   :  { %v581_v43 = vpop.f32.mrf.mxu0  ;;  %v622_v48 = vpop.f32.mrf.mxu1  ;;  %v204_v28 = vsub.s32 5, %v6283_v13  ;;  %v5535_v30 = vcombine.high %v986_v23, %v990_v24  ;;  %v212_v31 = vsub.s32 7, %v6283_v13  ;;  %v5663_v32 = vcombine.high %v1114_v25, %v1118_v26  ;;  %v978_v33 = vld [vmem:[#allocation8 + $0x800] sm:$0xff] }
 0x140   :  { %v6305_v47 = vpack.c.bf16 %v707_v12, %v707_v12  ;;  %v6309_v50 = vpack.c.bf16 %v709_v0, %v709_v0  ;;  %v982_v12 = vld [vmem:[#allocation8 + $0x820] sm:$0xff]  ;;  %v5534_v39 = vcombine.low %v986_v23, %v990_v24  ;;  %v5662_v43 = vcombine.low %v1114_v25, %v1118_v26 }
 0x141   :  { %v1106_v34 = vld [vmem:[#allocation8 + $0xc00] sm:$0xff]  ;;  %v205_v0 = vrot.slane %v6286_v15, %v204_v28  ;;  %v5527_v44 = vcombine.high %v978_v33, %v982_v12  ;;  %v213_v48 = vrot.slane %v6286_v15, %v212_v31 }
 0x142   :  { %3868 = vmatprep.mubr.bf16.mxu0 %v6305_v47  ;;  %3909 = vmatprep.mubr.bf16.mxu1 %v6309_v50  ;;  %v5654_v61 = vcombine.low %v1106_v34, %v1110_v38 }
 0x143   :  { %3869 = vmatmul.mubr.bf16.vlgmr.msra.gmra.mxu0 %v6307_v49  ;;  %3910 = vmatmul.mubr.bf16.vlgmr.msra.gmra.mxu1 %v6303_v46 }
 0x144   :  { %3919 = vmatpush1.bf16.msra.mxu0 %v5582_v41  ;;  %3960 = vmatpush1.bf16.msra.mxu1 %v5710_v42  ;;  %v5687_v41 = vcombine.high %v1138_v63, %v1142_v1  ;;  %v1134_v42 = vld [vmem:[#allocation8 + $0xce0] sm:$0xff] }
 0x145   :  { %3920 = vmatprep.subr.bf16.mxu0 %v5575_v51  ;;  %3961 = vmatprep.subr.bf16.mxu1 %v5703_v52  ;;  %v5679_v7 = vcombine.high %v1130_v40, %v1134_v42  ;;  %v5678_v20 = vcombine.low %v1130_v40, %v1134_v42  ;;  %v5655_v51 = vcombine.high %v1106_v34, %v1110_v38  ;;  %v1098_v52 = vld [vmem:[#allocation8 + $0xbc0] sm:$0xff] }
 0x146   :  { %v5647_v62 = vcombine.high %v1098_v52, %v1102_v53  ;;  %v1222_v40 = vld [vmem:[#allocation8 + $0xfa0] sm:$0xff] }
 0x147   :  { %v5767_v11 = vcombine.high %v1218_v37, %v1222_v40  ;;  %v5766_v24 = vcombine.low %v1218_v37, %v1222_v40 }
 0x148   :  { %3921 = vmatpush1.bf16.msra.mxu0 %v5574_v57  ;;  %3962 = vmatpush1.bf16.msra.mxu1 %v5702_v58  ;;  %v5526_v58 = vcombine.low %v978_v33, %v982_v12 }
 0x149   :  { %3922 = vmatprep.subr.bf16.mxu0 %v5567_v59  ;;  %3963 = vmatprep.subr.bf16.mxu1 %v5695_v60 }
 0x14c   :  { %3923 = vmatpush1.bf16.msra.mxu0 %v5566_v2  ;;  %3964 = vmatpush1.bf16.msra.mxu1 %v5694_v35  ;;  %v5775_v2 = vcombine.high %v1226_v55, %v1230_v56  ;;  %v1090_v35 = vld [vmem:[#allocation8 + $0xb80] sm:$0xff] }
 0x14d   :  { %3924 = vmatprep.subr.bf16.mxu0 %v5559_v36  ;;  %3965 = vmatprep.subr.bf16.mxu1 %v5687_v41  ;;  %v1094_v36 = vld [vmem:[#allocation8 + $0xba0] sm:$0xff] }
 0x14e   :  { %v5639_v9 = vcombine.high %v1090_v35, %v1094_v36  ;;  %v5638_v23 = vcombine.low %v1090_v35, %v1094_v36  ;;  %v1058_v55 = vld [vmem:[#allocation8 + $0xa80] sm:$0xff] }
 0x14f   :  { %v1062_v56 = vld [vmem:[#allocation8 + $0xaa0] sm:$0xff] }
 0x150   :  { %3925 = vmatpush1.bf16.msra.mxu0 %v5558_v4  ;;  %3966 = vmatpush1.bf16.msra.mxu1 %v5686_v5  ;;  %v5646_v5 = vcombine.low %v1098_v52, %v1102_v53  ;;  %v1054_v35 = vld [vmem:[#allocation8 + $0xa60] sm:$0xff]  ;;  %v5606_v37 = vcombine.low %v1058_v55, %v1062_v56 }
 0x151   :  { %3926 = vmatprep.subr.bf16.mxu0 %v5551_v6  ;;  %3967 = vmatprep.subr.bf16.mxu1 %v5679_v7  ;;  %v1178_v36 = vld [vmem:[#allocation8 + $0xe40] sm:$0xff] }
 0x154   :  { %3927 = vmatpush1.bf16.msra.mxu0 %v5550_v19  ;;  %3968 = vmatpush1.bf16.msra.mxu1 %v5678_v20  ;;  %v1082_v19 = vld [vmem:[#allocation8 + $0xb40] sm:$0xff] }
 0x155   :  { %3928 = vmatprep.subr.bf16.mxu0 %v5543_v21  ;;  %3969 = vmatprep.subr.bf16.mxu1 %v5671_v22  ;;  %v1086_v20 = vld [vmem:[#allocation8 + $0xb60] sm:$0xff] }
 0x156   :  { %v1210_v21 = vld [vmem:[#allocation8 + $0xf40] sm:$0xff]  ;;  %v5631_v25 = vcombine.high %v1082_v19, %v1086_v20  ;;  %v5630_v33 = vcombine.low %v1082_v19, %v1086_v20 }
 0x157   :  { %v1214_v22 = vld [vmem:[#allocation8 + $0xf60] sm:$0xff] }
 0x158   :  { %3929 = vmatpush1.bf16.msra.mxu0 %v5542_v27  ;;  %3970 = vmatpush1.bf16.msra.mxu1 %v5670_v29  ;;  %v5759_v26 = vcombine.high %v1210_v21, %v1214_v22  ;;  %v1074_v27 = vld [vmem:[#allocation8 + $0xb00] sm:$0xff]  ;;  %v5758_v12 = vcombine.low %v1210_v21, %v1214_v22 }
 0x159   :  { %3930 = vmatprep.subr.bf16.mxu0 %v5535_v30  ;;  %v6326_v45 = vpop.f32.mrf.mxu0  ;;  %3971 = vmatprep.subr.bf16.mxu1 %v5663_v32  ;;  %v6331_v54 = vpop.f32.mrf.mxu1  ;;  %v1078_v29 = vld [vmem:[#allocation8 + $0xb20] sm:$0xff] }
 0x15a   :  { %v1202_v30 = vld [vmem:[#allocation8 + $0xf00] sm:$0xff]  ;;  %v5623_v34 = vcombine.high %v1074_v27, %v1078_v29 }
 0x15b   :  { %v660_v57 = vpop.f32.mrf.mxu0  ;;  %v701_v60 = vpop.f32.mrf.mxu1  ;;  %v1206_v32 = vld [vmem:[#allocation8 + $0xf20] sm:$0xff] }
 0x15c   :  { %3931 = vmatpush1.bf16.msra.mxu0 %v5534_v39  ;;  %v661_v59 = vadd.f32 %v660_v57, %v205_v0  ;;  %3972 = vmatpush1.bf16.msra.mxu1 %v5662_v43  ;;  %v702_v1 = vadd.f32 %v701_v60, %v213_v48  ;;  %v5751_v38 = vcombine.high %v1202_v30, %v1206_v32  ;;  %v1066_v39 = vld [vmem:[#allocation8 + $0xac0] sm:$0xff]  ;;  %v208_v60 = vsub.s32 6, %v6283_v13 }
 0x15d   :  { %3932 = vmatprep.subr.bf16.mxu0 %v5527_v44  ;;  %v662_v63 = vpop.f32.mrf.mxu0  ;;  %3973 = vmatprep.subr.bf16.mxu1 %v5655_v51  ;;  %v703_v3 = vpop.f32.mrf.mxu1  ;;  %v1070_v0 = vld [vmem:[#allocation8 + $0xae0] sm:$0xff]  ;;  %v5622_v48 = vcombine.low %v1074_v27, %v1078_v29  ;;  %v5750_v51 = vcombine.low %v1202_v30, %v1206_v32  ;;  %v911_v27 = vld [vmem:[#allocation8 + $0x5e8] sm:$0xff] }
 0x15e   :  { %v711_v41 = vmax.f32 %v661_v59, 0.0  ;;  %v713_v42 = vmax.f32 %v702_v1, 0.0  ;;  %v1194_v43 = vld [vmem:[#allocation8 + $0xec0] sm:$0xff]  ;;  %v5615_v52 = vcombine.high %v1066_v39, %v1070_v0  ;;  %v5614_v59 = vcombine.low %v1066_v39, %v1070_v0  ;;  %v899_v0 = vld [vmem:[#allocation8 + $0x588] sm:$0xff] }
 0x15f   :  { %v663_v4 = vpop.f32.mrf.mxu0  ;;  %v704_v7 = vpop.f32.mrf.mxu1  ;;  %v1198_v44 = vld [vmem:[#allocation8 + $0xee0] sm:$0xff]  ;;  %v5607_v63 = vcombine.high %v1058_v55, %v1062_v56  ;;  %v209_v3 = vrot.slane %v6286_v15, %v208_v60  ;;  %v891_v56 = vld [vmem:[#allocation8 + $0x548] sm:$0xff] }
 0x160   :  { %3933 = vmatpush1.bf16.msra.mxu0 %v5526_v58  ;;  %v6333_v6 = vpack.c.bf16 %v711_v41, %v711_v41  ;;  %3974 = vmatpush1.bf16.msra.mxu1 %v5654_v61  ;;  %v6335_v10 = vpack.c.bf16 %v713_v42, %v713_v42  ;;  %v5743_v53 = vcombine.high %v1194_v43, %v1198_v44  ;;  %v1186_v57 = vld [vmem:[#allocation8 + $0xe80] sm:$0xff] }
 0x161   :  { %3934 = vmatprep.subr.bf16.mxu0 %v5647_v62  ;;  %3975 = vmatprep.subr.bf16.mxu1 %v5775_v2  ;;  %v1190_v58 = vld [vmem:[#allocation8 + $0xea0] sm:$0xff]  ;;  %v5742_v61 = vcombine.low %v1194_v43, %v1198_v44  ;;  %v200_v62 = vsub.s32 4, %v6283_v13  ;;  %v700_v19 = vadd.f32 %v6331_v54, %v209_v3  ;;  %v903_v43 = vld [vmem:[#allocation8 + $0x5a8] sm:$0xff] }
 0x162   :  { %3950 = vmatprep.mubr.bf16.mxu0 %v6333_v6  ;;  %3991 = vmatprep.mubr.bf16.mxu1 %v6335_v10  ;;  %v5735_v1 = vcombine.high %v1186_v57, %v1190_v58  ;;  %v1050_v2 = vld [vmem:[#allocation8 + $0xa40] sm:$0xff]  ;;  %v5734_v42 = vcombine.low %v1186_v57, %v1190_v58  ;;  %v5449_v55 = vcombine.high %v899_v0, %v903_v43  ;;  %v895_v57 = vld [vmem:[#allocation8 + $0x568] sm:$0xff] }
 0x163   :  { %v1182_v41 = vld [vmem:[#allocation8 + $0xe60] sm:$0xff]  ;;  %v201_v40 = vrot.slane %v6286_v15, %v200_v62  ;;  %v5599_v4 = vcombine.high %v1050_v2, %v1054_v35  ;;  %v5598_v20 = vcombine.low %v1050_v2, %v1054_v35  ;;  %v712_v29 = vmax.f32 %v700_v19, 0.0  ;;  %v759_v2 = vld [vmem:[#allocation8 + $0x128] sm:$0xff] }
 0x164   :  { %3935 = vmatpush2.bf16.msra.mxu0 %v5646_v5  ;;  %3976 = vmatpush2.bf16.msra.mxu1 %v5774_v8  ;;  %v5727_v5 = vcombine.high %v1178_v36, %v1182_v41  ;;  %v1042_v7 = vld [vmem:[#allocation8 + $0xa00] sm:$0xff]  ;;  %v5726_v22 = vcombine.low %v1178_v36, %v1182_v41  ;;  %v883_v35 = vld [vmem:[#allocation8 + $0x508] sm:$0xff]  ;;  %v5440_v3 = vcombine.low %v891_v56, %v895_v57 }
 0x165   :  { %3936 = vmatprep.subr.bf16.mxu0 %v5639_v9  ;;  %3977 = vmatprep.subr.bf16.mxu1 %v5767_v11  ;;  %v1046_v8 = vld [vmem:[#allocation8 + $0xa20] sm:$0xff]  ;;  %v659_v21 = vadd.f32 %v6326_v45, %v201_v40  ;;  %v887_v36 = vld [vmem:[#allocation8 + $0x528] sm:$0xff] }
 0x166   :  { %v1170_v9 = vld [vmem:[#allocation8 + $0xe00] sm:$0xff]  ;;  %v5591_v15 = vcombine.high %v1042_v7, %v1046_v8  ;;  %v5590_v30 = vcombine.low %v1042_v7, %v1046_v8  ;;  %v5433_v40 = vcombine.high %v883_v35, %v887_v36  ;;  %v879_v7 = vld [vmem:[#allocation8 + $0x4e8] sm:$0xff] }
 0x167   :  { %v1174_v11 = vld [vmem:[#allocation8 + $0xe20] sm:$0xff]  ;;  %v710_v32 = vmax.f32 %v659_v21, 0.0  ;;  %v743_v21 = vld [vmem:[#allocation8 + $0xa8] sm:$0xff] }
 0x168   :  { %3937 = vmatpush2.bf16.msra.mxu0 %v5638_v23  ;;  %3978 = vmatpush2.bf16.msra.mxu1 %v5766_v24  ;;  %v5719_v23 = vcombine.high %v1170_v9, %v1174_v11  ;;  %v779_v24 = vld [vmem:[#allocation8 + $0x1c8] sm:$0xff]  ;;  %v5718_v54 = vcombine.low %v1170_v9, %v1174_v11  ;;  %v5432_v9 = vcombine.low %v883_v35, %v887_v36 }
 0x169   :  { %3938 = vmatprep.subr.bf16.mxu0 %v5631_v25  ;;  %3979 = vmatprep.subr.bf16.mxu1 %v5759_v26  ;;  %v783_v25 = vld [vmem:[#allocation8 + $0x1e8] sm:$0xff]  ;;  %v6351_v44 = vpack.c.bf16 %v710_v32, %v710_v32 }
 0x16a   :  { %v907_v26 = vld [vmem:[#allocation8 + $0x5c8] sm:$0xff]  ;;  %v5328_v39 = vcombine.low %v779_v24, %v783_v25 }
 0x16b   :  { %v5457_v45 = vcombine.high %v907_v26, %v911_v27  ;;  %v863_v32 = vld [vmem:[#allocation8 + $0x468] sm:$0xff] }
 0x16c   :  { %3939 = vmatpush2.bf16.msra.mxu0 %v5630_v33  ;;  %3980 = vmatpush2.bf16.msra.mxu1 %v5758_v12  ;;  %v5329_v33 = vcombine.high %v779_v24, %v783_v25  ;;  %v771_v12 = vld [vmem:[#allocation8 + $0x188] sm:$0xff] }
 0x16d   :  { %3940 = vmatprep.subr.bf16.mxu0 %v5623_v34  ;;  %3981 = vmatprep.subr.bf16.mxu1 %v5751_v38  ;;  %v775_v34 = vld [vmem:[#allocation8 + $0x1a8] sm:$0xff]  ;;  %v6349_v38 = vpack.c.bf16 %v712_v29, %v712_v29 }
 0x16e   :  { %v5320_v58 = vcombine.low %v771_v12, %v775_v34  ;;  %v735_v29 = vld [vmem:[#allocation8 + $0x68] sm:$0xff] }
 0x16f   :  { %v839_v35 = vld [vmem:[#allocation8 + $0x3a8] sm:$0xff] }
 0x170   :  { %3941 = vmatpush2.bf16.msra.mxu0 %v5622_v48  ;;  %3982 = vmatpush2.bf16.msra.mxu1 %v5750_v51  ;;  %v5456_v48 = vcombine.low %v907_v26, %v911_v27  ;;  %v5321_v51 = vcombine.high %v771_v12, %v775_v34  ;;  %v731_v27 = vld [vmem:[#allocation8 + $0x48] sm:$0xff] }
 0x171   :  { %3942 = vmatprep.subr.bf16.mxu0 %v5615_v52  ;;  %3983 = vmatprep.subr.bf16.mxu1 %v5743_v53  ;;  %v763_v52 = vld [vmem:[#allocation8 + $0x148] sm:$0xff] }
 0x172   :  { %v767_v53 = vld [vmem:[#allocation8 + $0x168] sm:$0xff] }
 0x173   :  { %v5312_v41 = vcombine.low %v763_v52, %v767_v53  ;;  %v723_v34 = vld [vmem:[#allocation8 + $0x8] sm:$0xff] }
 0x174   :  { %3943 = vmatpush2.bf16.msra.mxu0 %v5614_v59  ;;  %3984 = vmatpush2.bf16.msra.mxu1 %v5742_v61  ;;  %v5448_v59 = vcombine.low %v899_v0, %v903_v43  ;;  %v5313_v61 = vcombine.high %v763_v52, %v767_v53  ;;  %v851_v0 = vld [vmem:[#allocation8 + $0x408] sm:$0xff] }
 0x175   :  { %3944 = vmatprep.subr.bf16.mxu0 %v5607_v63  ;;  %3985 = vmatprep.subr.bf16.mxu1 %v5735_v1  ;;  %v5441_v63 = vcombine.high %v891_v56, %v895_v57  ;;  %v755_v1 = vld [vmem:[#allocation8 + $0x108] sm:$0xff] }
 0x176   :  { %v5304_v8 = vcombine.low %v755_v1, %v759_v2  ;;  %v855_v43 = vld [vmem:[#allocation8 + $0x428] sm:$0xff] }
 0x177   :  { %v5401_v53 = vcombine.high %v851_v0, %v855_v43  ;;  %v847_v56 = vld [vmem:[#allocation8 + $0x3e8] sm:$0xff] }
 0x178   :  { %3945 = vmatpush2.bf16.msra.mxu0 %v5606_v37  ;;  %3986 = vmatpush2.bf16.msra.mxu1 %v5734_v42  ;;  %v5305_v37 = vcombine.high %v755_v1, %v759_v2  ;;  %v747_v42 = vld [vmem:[#allocation8 + $0xc8] sm:$0xff] }
 0x179   :  { %3946 = vmatprep.subr.bf16.mxu0 %v5599_v4  ;;  %3987 = vmatprep.subr.bf16.mxu1 %v5727_v5  ;;  %v751_v4 = vld [vmem:[#allocation8 + $0xe8] sm:$0xff] }
 0x17a   :  { %v875_v5 = vld [vmem:[#allocation8 + $0x4c8] sm:$0xff]  ;;  %v5297_v11 = vcombine.high %v747_v42, %v751_v4 }
 0x17b   :  { %v5425_v19 = vcombine.high %v875_v5, %v879_v7  ;;  %v5424_v24 = vcombine.low %v875_v5, %v879_v7  ;;  %v971_v57 = vld [vmem:[#allocation8 + $0x7c8] sm:$0xff] }
 0x17c   :  { %3947 = vmatpush2.bf16.msra.mxu0 %v5598_v20  ;;  %3988 = vmatpush2.bf16.msra.mxu1 %v5726_v22  ;;  %v739_v20 = vld [vmem:[#allocation8 + $0x88] sm:$0xff] }
 0x17d   :  { %3948 = vmatprep.subr.bf16.mxu0 %v5591_v15  ;;  %3989 = vmatprep.subr.bf16.mxu1 %v5719_v23  ;;  %v867_v22 = vld [vmem:[#allocation8 + $0x488] sm:$0xff]  ;;  %v5296_v23 = vcombine.low %v747_v42, %v751_v4  ;;  %v5289_v25 = vcombine.high %v739_v20, %v743_v21 }
 0x17e   :  { %v871_v15 = vld [vmem:[#allocation8 + $0x4a8] sm:$0xff] }
 0x17f   :  { %v5417_v26 = vcombine.high %v867_v22, %v871_v15  ;;  %v835_v2 = vld [vmem:[#allocation8 + $0x388] sm:$0xff] }
 0x180   :  { %3949 = vmatpush2.bf16.msra.mxu0 %v5590_v30  ;;  %3990 = vmatpush2.bf16.msra.mxu1 %v5718_v54  ;;  %v859_v30 = vld [vmem:[#allocation8 + $0x448] sm:$0xff]  ;;  %v5288_v54 = vcombine.low %v739_v20, %v743_v21 }
 0x181   :  { %4000 = vmatprep.subr.bf16.mxu0 %v5329_v33  ;;  %4041 = vmatprep.subr.bf16.mxu1 %v5457_v45  ;;  %v5416_v33 = vcombine.low %v867_v22, %v871_v15  ;;  %v5281_v45 = vcombine.high %v731_v27, %v735_v29  ;;  %v5409_v12 = vcombine.high %v859_v30, %v863_v32  ;;  %v963_v36 = vld [vmem:[#allocation8 + $0x788] sm:$0xff] }
 0x182   :  { %v827_v4 = vld [vmem:[#allocation8 + $0x348] sm:$0xff] }
 0x183   :  { %3951 = vmatmul.mubr.bf16.vlgmr.msra.gmra.mxu0 %v6351_v44  ;;  %3992 = vmatmul.mubr.bf16.vlgmr.msra.gmra.mxu1 %v6349_v38  ;;  %v831_v5 = vld [vmem:[#allocation8 + $0x368] sm:$0xff] }
 0x184   :  { %4001 = vmatpush1.bf16.msra.mxu0 %v5328_v39  ;;  %4032 = vmatprep.mubr.bf16.mxu0 %v6305_v47  ;;  %v727_v39 = vld [vmem:[#allocation8 + $0x28] sm:$0xff] }
 0x185   :  { %4042 = vmatpush1.bf16.msra.mxu1 %v5456_v48  ;;  %4073 = vmatprep.mubr.bf16.mxu1 %v6309_v50  ;;  %v5280_v48 = vcombine.low %v731_v27, %v735_v29  ;;  %v5273_v52 = vcombine.high %v723_v34, %v727_v39  ;;  %v955_v7 = vld [vmem:[#allocation8 + $0x748] sm:$0xff] }
 0x186   :  { %4002 = vmatprep.subr.bf16.mxu0 %v5321_v51  ;;  %4043 = vmatprep.subr.bf16.mxu1 %v5449_v55  ;;  %v5408_v51 = vcombine.low %v859_v30, %v863_v32  ;;  %v843_v55 = vld [vmem:[#allocation8 + $0x3c8] sm:$0xff] }
 0x187   :  { %v819_v21 = vld [vmem:[#allocation8 + $0x308] sm:$0xff] }
 0x188   :  { %4003 = vmatpush1.bf16.msra.mxu0 %v5320_v58  ;;  %v975_v58 = vld [vmem:[#allocation8 + $0x7e8] sm:$0xff] }
 0x189   :  { %4044 = vmatpush1.bf16.msra.mxu1 %v5448_v59  ;;  %4004 = vmatprep.subr.bf16.mxu0 %v5313_v61  ;;  %v5272_v59 = vcombine.low %v723_v34, %v727_v39  ;;  %v5400_v61 = vcombine.low %v851_v0, %v855_v43  ;;  %v5521_v1 = vcombine.high %v971_v57, %v975_v58  ;;  %v823_v22 = vld [vmem:[#allocation8 + $0x328] sm:$0xff] }
 0x18a   :  { %4045 = vmatprep.subr.bf16.mxu1 %v5441_v63  ;;  %v5393_v63 = vcombine.high %v843_v55, %v847_v56  ;;  %v947_v15 = vld [vmem:[#allocation8 + $0x708] sm:$0xff] }
 0x18b   :  { %v811_v29 = vld [vmem:[#allocation8 + $0x2c8] sm:$0xff] }
 0x18c   :  { %4005 = vmatpush1.bf16.msra.mxu0 %v5312_v41  ;;  %v967_v41 = vld [vmem:[#allocation8 + $0x7a8] sm:$0xff] }
 0x18d   :  { %4046 = vmatpush1.bf16.msra.mxu1 %v5440_v3  ;;  %4006 = vmatprep.subr.bf16.mxu0 %v5305_v37  ;;  %v5392_v3 = vcombine.low %v843_v55, %v847_v56  ;;  %v5520_v37 = vcombine.low %v971_v57, %v975_v58  ;;  %v5513_v42 = vcombine.high %v963_v36, %v967_v41  ;;  %v815_v30 = vld [vmem:[#allocation8 + $0x2e8] sm:$0xff] }
 0x18e   :  { %4047 = vmatprep.subr.bf16.mxu1 %v5433_v40  ;;  %v5385_v40 = vcombine.high %v835_v2, %v839_v35  ;;  %v939_v32 = vld [vmem:[#allocation8 + $0x6c8] sm:$0xff] }
 0x18f   :  { %v803_v39 = vld [vmem:[#allocation8 + $0x288] sm:$0xff] }
 0x190   :  { %4007 = vmatpush1.bf16.msra.mxu0 %v5304_v8  ;;  %v959_v8 = vld [vmem:[#allocation8 + $0x768] sm:$0xff] }
 0x191   :  { %4048 = vmatpush1.bf16.msra.mxu1 %v5432_v9  ;;  %4008 = vmatprep.subr.bf16.mxu0 %v5297_v11  ;;  %v5384_v9 = vcombine.low %v835_v2, %v839_v35  ;;  %v5512_v11 = vcombine.low %v963_v36, %v967_v41  ;;  %v5505_v20 = vcombine.high %v955_v7, %v959_v8  ;;  %v807_v0 = vld [vmem:[#allocation8 + $0x2a8] sm:$0xff] }
 0x192   :  { %4049 = vmatprep.subr.bf16.mxu1 %v5425_v19  ;;  %v5377_v19 = vcombine.high %v827_v4, %v831_v5  ;;  %v931_v43 = vld [vmem:[#allocation8 + $0x688] sm:$0xff] }
 0x193   :  { %v795_v56 = vld [vmem:[#allocation8 + $0x248] sm:$0xff] }
 0x194   :  { %4009 = vmatpush1.bf16.msra.mxu0 %v5296_v23  ;;  %v951_v23 = vld [vmem:[#allocation8 + $0x728] sm:$0xff] }
 0x195   :  { %4050 = vmatpush1.bf16.msra.mxu1 %v5424_v24  ;;  %4010 = vmatprep.subr.bf16.mxu0 %v5289_v25  ;;  %v5376_v24 = vcombine.low %v827_v4, %v831_v5  ;;  %v5504_v25 = vcombine.low %v955_v7, %v959_v8  ;;  %v5497_v27 = vcombine.high %v947_v15, %v951_v23  ;;  %v799_v57 = vld [vmem:[#allocation8 + $0x268] sm:$0xff] }
 0x196   :  { %4051 = vmatprep.subr.bf16.mxu1 %v5417_v26  ;;  %v5369_v26 = vcombine.high %v819_v21, %v823_v22  ;;  %v923_v58 = vld [vmem:[#allocation8 + $0x648] sm:$0xff] }
 0x197   :  { %v787_v35 = vld [vmem:[#allocation8 + $0x208] sm:$0xff] }
 0x198   :  { %4011 = vmatpush1.bf16.msra.mxu0 %v5288_v54  ;;  %v943_v54 = vld [vmem:[#allocation8 + $0x6e8] sm:$0xff] }
 0x199   :  { %4052 = vmatpush1.bf16.msra.mxu1 %v5416_v33  ;;  %4012 = vmatprep.subr.bf16.mxu0 %v5281_v45  ;;  %v5368_v33 = vcombine.low %v819_v21, %v823_v22  ;;  %v5496_v45 = vcombine.low %v947_v15, %v951_v23  ;;  %v5489_v34 = vcombine.high %v939_v32, %v943_v54  ;;  %v791_v36 = vld [vmem:[#allocation8 + $0x228] sm:$0xff] }
 0x19a   :  { %4053 = vmatprep.subr.bf16.mxu1 %v5409_v12  ;;  %v5361_v12 = vcombine.high %v811_v29, %v815_v30  ;;  %v915_v41 = vld [vmem:[#allocation8 + $0x608] sm:$0xff] }
 0x19b   :  { %v1035_v5 = vld [vmem:[#allocation8 + $0x9c8] sm:$0xff] }
 0x19c   :  { %4013 = vmatpush1.bf16.msra.mxu0 %v5280_v48  ;;  %v935_v48 = vld [vmem:[#allocation8 + $0x6a8] sm:$0xff] }
 0x19d   :  { %4054 = vmatpush1.bf16.msra.mxu1 %v5408_v51  ;;  %4014 = vmatprep.subr.bf16.mxu0 %v5273_v52  ;;  %v5360_v51 = vcombine.low %v811_v29, %v815_v30  ;;  %v5488_v52 = vcombine.low %v939_v32, %v943_v54  ;;  %v5481_v55 = vcombine.high %v931_v43, %v935_v48  ;;  %v1039_v7 = vld [vmem:[#allocation8 + $0x9e8] sm:$0xff] }
 0x19e   :  { %4055 = vmatprep.subr.bf16.mxu1 %v5401_v53  ;;  %v5353_v53 = vcombine.high %v803_v39, %v807_v0  ;;  %v1163_v8 = vld [vmem:[#allocation8 + $0xdc8] sm:$0xff]  ;;  %v5584_v23 = vcombine.low %v1035_v5, %v1039_v7 }
 0x19f   :  { %v1027_v22 = vld [vmem:[#allocation8 + $0x988] sm:$0xff] }
 0x1a0   :  { %4015 = vmatpush1.bf16.msra.mxu0 %v5272_v59  ;;  %v927_v59 = vld [vmem:[#allocation8 + $0x668] sm:$0xff] }
 0x1a1   :  { %4056 = vmatpush1.bf16.msra.mxu1 %v5400_v61  ;;  %4016 = vmatprep.subr.bf16.mxu0 %v5393_v63  ;;  %v5352_v61 = vcombine.low %v803_v39, %v807_v0  ;;  %v5480_v63 = vcombine.low %v931_v43, %v935_v48  ;;  %v5473_v2 = vcombine.high %v923_v58, %v927_v59  ;;  %v1031_v15 = vld [vmem:[#allocation8 + $0x9a8] sm:$0xff] }
 0x1a2   :  { %4057 = vmatprep.subr.bf16.mxu1 %v5521_v1  ;;  %v5345_v1 = vcombine.high %v795_v56, %v799_v57  ;;  %v1019_v29 = vld [vmem:[#allocation8 + $0x948] sm:$0xff] }
 0x1a3   :  { %v1023_v30 = vld [vmem:[#allocation8 + $0x968] sm:$0xff] }
 0x1a4   :  { %4017 = vmatpush2.bf16.msra.mxu0 %v5392_v3  ;;  %v919_v3 = vld [vmem:[#allocation8 + $0x628] sm:$0xff] }
 0x1a5   :  { %4058 = vmatpush2.bf16.msra.mxu1 %v5520_v37  ;;  %4018 = vmatprep.subr.bf16.mxu0 %v5385_v40  ;;  %v5344_v37 = vcombine.low %v795_v56, %v799_v57  ;;  %v5472_v40 = vcombine.low %v923_v58, %v927_v59  ;;  %v5465_v4 = vcombine.high %v915_v41, %v919_v3  ;;  %v1147_v54 = vld [vmem:[#allocation8 + $0xd48] sm:$0xff] }
 0x1a6   :  { %4059 = vmatprep.subr.bf16.mxu1 %v5513_v42  ;;  %v5337_v42 = vcombine.high %v787_v35, %v791_v36  ;;  %v1011_v0 = vld [vmem:[#allocation8 + $0x908] sm:$0xff] }
 0x1a7   :  { %v1015_v43 = vld [vmem:[#allocation8 + $0x928] sm:$0xff] }
 0x1a8   :  { %4019 = vmatpush2.bf16.msra.mxu0 %v5384_v9  ;;  %v1167_v9 = vld [vmem:[#allocation8 + $0xde8] sm:$0xff] }
 0x1a9   :  { %4060 = vmatpush2.bf16.msra.mxu1 %v5512_v11  ;;  %4020 = vmatprep.subr.bf16.mxu0 %v5377_v19  ;;  %v5336_v11 = vcombine.low %v787_v35, %v791_v36  ;;  %v5464_v19 = vcombine.low %v915_v41, %v919_v3  ;;  %v5713_v21 = vcombine.high %v1163_v8, %v1167_v9  ;;  %v1139_v48 = vld [vmem:[#allocation8 + $0xd08] sm:$0xff] }
 0x1aa   :  { %4061 = vmatprep.subr.bf16.mxu1 %v5505_v20  ;;  %v5585_v20 = vcombine.high %v1035_v5, %v1039_v7  ;;  %v1003_v57 = vld [vmem:[#allocation8 + $0x8c8] sm:$0xff] }
 0x1ab   :  { %v1007_v58 = vld [vmem:[#allocation8 + $0x8e8] sm:$0xff] }
 0x1ac   :  { %4021 = vmatpush2.bf16.msra.mxu0 %v5376_v24  ;;  %v1155_v24 = vld [vmem:[#allocation8 + $0xd88] sm:$0xff] }
 0x1ad   :  { %4062 = vmatpush2.bf16.msra.mxu1 %v5504_v25  ;;  %4022 = vmatprep.subr.bf16.mxu0 %v5369_v26  ;;  %v1159_v25 = vld [vmem:[#allocation8 + $0xda8] sm:$0xff]  ;;  %v5712_v26 = vcombine.low %v1163_v8, %v1167_v9 }
 0x1ae   :  { %4063 = vmatprep.subr.bf16.mxu1 %v5497_v27  ;;  %v5577_v27 = vcombine.high %v1027_v22, %v1031_v15  ;;  %v5705_v32 = vcombine.high %v1155_v24, %v1159_v25  ;;  %v1131_v59 = vld [vmem:[#allocation8 + $0xcc8] sm:$0xff] }
 0x1af   :  { %v995_v36 = vld [vmem:[#allocation8 + $0x888] sm:$0xff] }
 0x1b0   :  { %4023 = vmatpush2.bf16.msra.mxu0 %v5368_v33  ;;  %v1151_v33 = vld [vmem:[#allocation8 + $0xd68] sm:$0xff] }
 0x1b1   :  { %4064 = vmatpush2.bf16.msra.mxu1 %v5496_v45  ;;  %4024 = vmatprep.subr.bf16.mxu0 %v5361_v12  ;;  %v5576_v45 = vcombine.low %v1027_v22, %v1031_v15  ;;  %v5704_v12 = vcombine.low %v1155_v24, %v1159_v25  ;;  %v5697_v39 = vcombine.high %v1147_v54, %v1151_v33  ;;  %v999_v41 = vld [vmem:[#allocation8 + $0x8a8] sm:$0xff] }
 0x1b2   :  { %4065 = vmatprep.subr.bf16.mxu1 %v5489_v34  ;;  %v5569_v34 = vcombine.high %v1019_v29, %v1023_v30  ;;  %v1123_v3 = vld [vmem:[#allocation8 + $0xc88] sm:$0xff] }
 0x1b3   :  { %v987_v7 = vld [vmem:[#allocation8 + $0x848] sm:$0xff] }
 0x1b4   :  { %4025 = vmatpush2.bf16.msra.mxu0 %v5360_v51  ;;  %v1143_v51 = vld [vmem:[#allocation8 + $0xd28] sm:$0xff] }
 0x1b5   :  { %4066 = vmatpush2.bf16.msra.mxu1 %v5488_v52  ;;  %4026 = vmatprep.subr.bf16.mxu0 %v5353_v53  ;;  %v5568_v52 = vcombine.low %v1019_v29, %v1023_v30  ;;  %v5696_v53 = vcombine.low %v1147_v54, %v1151_v33  ;;  %v5689_v56 = vcombine.high %v1139_v48, %v1143_v51  ;;  %v991_v8 = vld [vmem:[#allocation8 + $0x868] sm:$0xff] }
 0x1b6   :  { %4067 = vmatprep.subr.bf16.mxu1 %v5481_v55  ;;  %v5561_v55 = vcombine.high %v1011_v0, %v1015_v43  ;;  %v1115_v9 = vld [vmem:[#allocation8 + $0xc48] sm:$0xff] }
 0x1b7   :  { %v979_v15 = vld [vmem:[#allocation8 + $0x808] sm:$0xff] }
 0x1b8   :  { %4027 = vmatpush2.bf16.msra.mxu0 %v5352_v61  ;;  %v1135_v61 = vld [vmem:[#allocation8 + $0xce8] sm:$0xff] }
 0x1b9   :  { %4068 = vmatpush2.bf16.msra.mxu1 %v5480_v63  ;;  %4028 = vmatprep.subr.bf16.mxu0 %v5345_v1  ;;  %v5560_v63 = vcombine.low %v1011_v0, %v1015_v43  ;;  %v5688_v1 = vcombine.low %v1139_v48, %v1143_v51  ;;  %v5681_v35 = vcombine.high %v1131_v59, %v1135_v61  ;;  %v1107_v24 = vld [vmem:[#allocation8 + $0xc08] sm:$0xff] }
 0x1ba   :  { %4069 = vmatprep.subr.bf16.mxu1 %v5473_v2  ;;  %v5553_v2 = vcombine.high %v1003_v57, %v1007_v58  ;;  %v1111_v25 = vld [vmem:[#allocation8 + $0xc28] sm:$0xff] }
 0x1bb   :  { %v5657_v30 = vcombine.high %v1107_v24, %v1111_v25  ;;  %v1103_v54 = vld [vmem:[#allocation8 + $0xbe8] sm:$0xff] }
 0x1bc   :  { %4029 = vmatpush2.bf16.msra.mxu0 %v5344_v37  ;;  %v1127_v37 = vld [vmem:[#allocation8 + $0xca8] sm:$0xff] }
 0x1bd   :  { %4070 = vmatpush2.bf16.msra.mxu1 %v5472_v40  ;;  %4030 = vmatprep.subr.bf16.mxu0 %v5337_v42  ;;  %v5552_v40 = vcombine.low %v1003_v57, %v1007_v58  ;;  %v5680_v42 = vcombine.low %v1131_v59, %v1135_v61  ;;  %v5673_v5 = vcombine.high %v1123_v3, %v1127_v37  ;;  %v1227_v33 = vld [vmem:[#allocation8 + $0xfc8] sm:$0xff] }
 0x1be   :  { %4071 = vmatprep.subr.bf16.mxu1 %v5465_v4  ;;  %v5545_v4 = vcombine.high %v995_v36, %v999_v41  ;;  %v1091_v43 = vld [vmem:[#allocation8 + $0xb88] sm:$0xff] }
 0x1bf   :  { %v1095_v48 = vld [vmem:[#allocation8 + $0xba8] sm:$0xff] }
 0x1c0   :  { %4031 = vmatpush2.bf16.msra.mxu0 %v5336_v11  ;;  %v1119_v11 = vld [vmem:[#allocation8 + $0xc68] sm:$0xff] }
 0x1c1   :  { %4072 = vmatpush2.bf16.msra.mxu1 %v5464_v19  ;;  %4082 = vmatprep.subr.bf16.mxu0 %v5585_v20  ;;  %v5544_v19 = vcombine.low %v995_v36, %v999_v41  ;;  %v5672_v20 = vcombine.low %v1123_v3, %v1127_v37  ;;  %v5665_v22 = vcombine.high %v1115_v9, %v1119_v11  ;;  %v1219_v51 = vld [vmem:[#allocation8 + $0xf88] sm:$0xff] }
 0x1c2   :  { %4123 = vmatprep.subr.bf16.mxu1 %v5713_v21  ;;  %v5537_v21 = vcombine.high %v987_v7, %v991_v8  ;;  %v1083_v58 = vld [vmem:[#allocation8 + $0xb48] sm:$0xff] }
 0x1c3   :  { %4033 = vmatmul.mubr.bf16.vlgmr.msra.gmra.mxu0 %v6307_v49  ;;  %v1087_v59 = vld [vmem:[#allocation8 + $0xb68] sm:$0xff] }
 0x1c4   :  { %4074 = vmatmul.mubr.bf16.vlgmr.msra.gmra.mxu1 %v6303_v46  ;;  %4083 = vmatpush1.bf16.msra.mxu0 %v5584_v23  ;;  %v983_v23 = vld [vmem:[#allocation8 + $0x828] sm:$0xff] }
 0x1c5   :  { %4114 = vmatprep.mubr.bf16.mxu0 %v6333_v6  ;;  %4124 = vmatpush1.bf16.msra.mxu1 %v5712_v26  ;;  %v5536_v26 = vcombine.low %v987_v7, %v991_v8  ;;  %v5529_v29 = vcombine.high %v979_v15, %v983_v23  ;;  %v1211_v61 = vld [vmem:[#allocation8 + $0xf48] sm:$0xff] }
 0x1c6   :  { %4155 = vmatprep.mubr.bf16.mxu1 %v6335_v10  ;;  %4084 = vmatprep.subr.bf16.mxu0 %v5577_v27  ;;  %v5664_v27 = vcombine.low %v1115_v9, %v1119_v11  ;;  %v1075_v41 = vld [vmem:[#allocation8 + $0xb08] sm:$0xff] }
 0x1c7   :  { %4125 = vmatprep.subr.bf16.mxu1 %v5705_v32  ;;  %v1099_v32 = vld [vmem:[#allocation8 + $0xbc8] sm:$0xff] }
 0x1c8   :  { %4085 = vmatpush1.bf16.msra.mxu0 %v5576_v45  ;;  %v1231_v45 = vld [vmem:[#allocation8 + $0xfe8] sm:$0xff] }
 0x1c9   :  { %4126 = vmatpush1.bf16.msra.mxu1 %v5704_v12  ;;  %4086 = vmatprep.subr.bf16.mxu0 %v5569_v34  ;;  %v5528_v12 = vcombine.low %v979_v15, %v983_v23  ;;  %v5656_v34 = vcombine.low %v1107_v24, %v1111_v25  ;;  %v5777_v0 = vcombine.high %v1227_v33, %v1231_v45  ;;  %v1079_v3 = vld [vmem:[#allocation8 + $0xb28] sm:$0xff] }
 0x1ca   :  { %4127 = vmatprep.subr.bf16.mxu1 %v5697_v39  ;;  %v5649_v39 = vcombine.high %v1099_v32, %v1103_v54  ;;  %v1203_v37 = vld [vmem:[#allocation8 + $0xf08] sm:$0xff] }
 0x1cb   :  { %v1067_v8 = vld [vmem:[#allocation8 + $0xac8] sm:$0xff] }
 0x1cc   :  { %4087 = vmatpush1.bf16.msra.mxu0 %v5568_v52  ;;  %v1223_v52 = vld [vmem:[#allocation8 + $0xfa8] sm:$0xff] }
 0x1cd   :  { %4128 = vmatpush1.bf16.msra.mxu1 %v5696_v53  ;;  %4088 = vmatprep.subr.bf16.mxu0 %v5561_v55  ;;  %v5648_v53 = vcombine.low %v1099_v32, %v1103_v54  ;;  %v5776_v55 = vcombine.low %v1227_v33, %v1231_v45  ;;  %v5769_v57 = vcombine.high %v1219_v51, %v1223_v52  ;;  %v1071_v9 = vld [vmem:[#allocation8 + $0xae8] sm:$0xff] }
 0x1ce   :  { %4129 = vmatprep.subr.bf16.mxu1 %v5689_v56  ;;  %v5641_v56 = vcombine.high %v1091_v43, %v1095_v48  ;;  %v1195_v11 = vld [vmem:[#allocation8 + $0xec8] sm:$0xff] }
 0x1cf   :  { %v1059_v23 = vld [vmem:[#allocation8 + $0xa88] sm:$0xff] }
 0x1d0   :  { %4089 = vmatpush1.bf16.msra.mxu0 %v5560_v63  ;;  %v1215_v63 = vld [vmem:[#allocation8 + $0xf68] sm:$0xff] }
 0x1d1   :  { %4130 = vmatpush1.bf16.msra.mxu1 %v5688_v1  ;;  %4090 = vmatprep.subr.bf16.mxu0 %v5553_v2  ;;  %v5640_v1 = vcombine.low %v1091_v43, %v1095_v48  ;;  %v5768_v2 = vcombine.low %v1219_v51, %v1223_v52  ;;  %v5761_v36 = vcombine.high %v1211_v61, %v1215_v63  ;;  %v1063_v24 = vld [vmem:[#allocation8 + $0xaa8] sm:$0xff] }
 0x1d2   :  { %4131 = vmatprep.subr.bf16.mxu1 %v5681_v35  ;;  %v5633_v35 = vcombine.high %v1083_v58, %v1087_v59  ;;  %v1187_v25 = vld [vmem:[#allocation8 + $0xe88] sm:$0xff] }
 0x1d3   :  { %v1051_v54 = vld [vmem:[#allocation8 + $0xa48] sm:$0xff] }
 0x1d4   :  { %4091 = vmatpush1.bf16.msra.mxu0 %v5552_v40  ;;  %v1207_v40 = vld [vmem:[#allocation8 + $0xf28] sm:$0xff] }
 0x1d5   :  { %4132 = vmatpush1.bf16.msra.mxu1 %v5680_v42  ;;  %4092 = vmatprep.subr.bf16.mxu0 %v5545_v4  ;;  %v5632_v42 = vcombine.low %v1083_v58, %v1087_v59  ;;  %v5760_v4 = vcombine.low %v1211_v61, %v1215_v63  ;;  %v5753_v7 = vcombine.high %v1203_v37, %v1207_v40  ;;  %v1055_v33 = vld [vmem:[#allocation8 + $0xa68] sm:$0xff]  ;;  %v780_v59 = vld [vmem:[#allocation8 + $0x1d0] sm:$0xff] }
 0x1d6   :  { %4133 = vmatprep.subr.bf16.mxu1 %v5673_v5  ;;  %v5625_v5 = vcombine.high %v1075_v41, %v1079_v3  ;;  %v1179_v45 = vld [vmem:[#allocation8 + $0xe48] sm:$0xff]  ;;  %v784_v61 = vld [vmem:[#allocation8 + $0x1f0] sm:$0xff] }
 0x1d7   :  { %v1043_v48 = vld [vmem:[#allocation8 + $0xa08] sm:$0xff]  ;;  %v908_v63 = vld [vmem:[#allocation8 + $0x5d0] sm:$0xff] }
 0x1d8   :  { %4093 = vmatpush1.bf16.msra.mxu0 %v5544_v19  ;;  %v1199_v19 = vld [vmem:[#allocation8 + $0xee8] sm:$0xff] }
 0x1d9   :  { %4134 = vmatpush1.bf16.msra.mxu1 %v5672_v20  ;;  %4094 = vmatprep.subr.bf16.mxu0 %v5537_v21  ;;  %v5624_v20 = vcombine.low %v1075_v41, %v1079_v3  ;;  %v5752_v21 = vcombine.low %v1203_v37, %v1207_v40  ;;  %v5745_v15 = vcombine.high %v1195_v11, %v1199_v19  ;;  %v1047_v51 = vld [vmem:[#allocation8 + $0xa28] sm:$0xff]  ;;  %v6361_v41 = vld [vmem:[#allocation10] sm:$0xff]  ;;  %v772_v37 = vld [vmem:[#allocation8 + $0x190] sm:$0xff] }
 0x1da   :  { %4135 = vmatprep.subr.bf16.mxu1 %v5665_v22  ;;  %v5617_v22 = vcombine.high %v1067_v8, %v1071_v9  ;;  %v1171_v52 = vld [vmem:[#allocation8 + $0xe08] sm:$0xff]  ;;  %v776_v40 = vld [vmem:[#allocation8 + $0x1b0] sm:$0xff] }
 0x1dc   :  { %4095 = vmatpush1.bf16.msra.mxu0 %v5536_v26  ;;  %v1191_v26 = vld [vmem:[#allocation8 + $0xea8] sm:$0xff] }
 0x1dd   :  { %4136 = vmatpush1.bf16.msra.mxu1 %v5664_v27  ;;  %4096 = vmatprep.subr.bf16.mxu0 %v5529_v29  ;;  %v5616_v27 = vcombine.low %v1067_v8, %v1071_v9  ;;  %v5744_v29 = vcombine.low %v1195_v11, %v1199_v19  ;;  %v5737_v32 = vcombine.high %v1187_v25, %v1191_v26  ;;  %v764_v19 = vld [vmem:[#allocation8 + $0x150] sm:$0xff] }
 0x1de   :  { %4137 = vmatprep.subr.bf16.mxu1 %v5657_v30  ;;  %v5609_v30 = vcombine.high %v1059_v23, %v1063_v24  ;;  %v1243_v9 = vrot.slane %v6361_v41, %v188_v17  ;;  %v5323_v11 = vcombine.high %v772_v37, %v776_v40 }
 0x1e0   :  { %4097 = vmatpush1.bf16.msra.mxu0 %v5528_v12  ;;  %v1183_v12 = vld [vmem:[#allocation8 + $0xe68] sm:$0xff] }
 0x1e1   :  { %4138 = vmatpush1.bf16.msra.mxu1 %v5656_v34  ;;  %4098 = vmatprep.subr.bf16.mxu0 %v5649_v39  ;;  %v5608_v34 = vcombine.low %v1059_v23, %v1063_v24  ;;  %v5736_v39 = vcombine.low %v1187_v25, %v1191_v26  ;;  %v5729_v43 = vcombine.high %v1179_v45, %v1183_v12  ;;  %v896_v23 = vld [vmem:[#allocation8 + $0x570] sm:$0xff] }
 0x1e2   :  { %4139 = vmatprep.subr.bf16.mxu1 %v5777_v0  ;;  %v5601_v0 = vcombine.high %v1051_v54, %v1055_v33  ;;  %v5322_v25 = vcombine.low %v772_v37, %v776_v40  ;;  %v868_v37 = vld [vmem:[#allocation8 + $0x490] sm:$0xff] }
 0x1e3   :  { %v872_v40 = vld [vmem:[#allocation8 + $0x4b0] sm:$0xff] }
 0x1e4   :  { %4099 = vmatpush2.bf16.msra.mxu0 %v5648_v53  ;;  %v1175_v53 = vld [vmem:[#allocation8 + $0xe28] sm:$0xff] }
 0x1e5   :  { %4140 = vmatpush2.bf16.msra.mxu1 %v5776_v55  ;;  %4100 = vmatprep.subr.bf16.mxu0 %v5641_v56  ;;  %v5600_v55 = vcombine.low %v1051_v54, %v1055_v33  ;;  %v5728_v56 = vcombine.low %v1179_v45, %v1183_v12  ;;  %v5721_v58 = vcombine.high %v1171_v52, %v1175_v53  ;;  %v756_v33 = vld [vmem:[#allocation8 + $0x110] sm:$0xff] }
 0x1e6   :  { %4141 = vmatprep.subr.bf16.mxu1 %v5769_v57  ;;  %v5593_v57 = vcombine.high %v1043_v48, %v1047_v51  ;;  %v760_v45 = vld [vmem:[#allocation8 + $0x130] sm:$0xff] }
 0x1e8   :  { %4101 = vmatpush2.bf16.msra.mxu0 %v5640_v1  ;;  %v912_v1 = vld [vmem:[#allocation8 + $0x5f0] sm:$0xff] }
 0x1e9   :  { %4142 = vmatpush2.bf16.msra.mxu1 %v5768_v2  ;;  %4102 = vmatprep.subr.bf16.mxu0 %v5633_v35  ;;  %v5592_v2 = vcombine.low %v1043_v48, %v1047_v51  ;;  %v5720_v35 = vcombine.low %v1171_v52, %v1175_v53  ;;  %v5459_v3 = vcombine.high %v908_v63, %v912_v1 }
 0x1ea   :  { %4143 = vmatprep.subr.bf16.mxu1 %v5761_v36  ;;  %v5331_v36 = vcombine.high %v780_v59, %v784_v61  ;;  %v5458_v8 = vcombine.low %v908_v63, %v912_v1  ;;  %v5307_v53 = vcombine.high %v756_v33, %v760_v45  ;;  %v5306_v63 = vcombine.low %v756_v33, %v760_v45  ;;  %v972_v33 = vld [vmem:[#allocation8 + $0x7d0] sm:$0xff] }
 0x1eb   :  { %v976_v45 = vld [vmem:[#allocation8 + $0x7f0] sm:$0xff] }
 0x1ec   :  { %4103 = vmatpush2.bf16.msra.mxu0 %v5632_v42  ;;  %v5330_v42 = vcombine.low %v780_v59, %v784_v61  ;;  %v876_v59 = vld [vmem:[#allocation8 + $0x4d0] sm:$0xff] }
 0x1ed   :  { %4144 = vmatpush2.bf16.msra.mxu1 %v5760_v4  ;;  %4104 = vmatprep.subr.bf16.mxu0 %v5625_v5  ;;  %v1239_v4 = vrot.slane %v6361_v41, %v184_v14  ;;  %v900_v5 = vld [vmem:[#allocation8 + $0x590] sm:$0xff] }
 0x1ee   :  { %4145 = vmatprep.subr.bf16.mxu1 %v5753_v7  ;;  %v904_v7 = vld [vmem:[#allocation8 + $0x5b0] sm:$0xff] }
 0x1ef   :  { %v5450_v17 = vcombine.low %v900_v5, %v904_v7  ;;  %v880_v61 = vld [vmem:[#allocation8 + $0x4f0] sm:$0xff] }
 0x1f0   :  { %4105 = vmatpush2.bf16.msra.mxu0 %v5624_v20  ;;  %v768_v20 = vld [vmem:[#allocation8 + $0x170] sm:$0xff] }
 0x1f1   :  { %4146 = vmatpush2.bf16.msra.mxu1 %v5752_v21  ;;  %4106 = vmatprep.subr.bf16.mxu0 %v5617_v22  ;;  %v5451_v22 = vcombine.high %v900_v5, %v904_v7  ;;  %v5314_v48 = vcombine.low %v764_v19, %v768_v20  ;;  %v5419_v7 = vcombine.high %v868_v37, %v872_v40 }
 0x1f2   :  { %4147 = vmatprep.subr.bf16.mxu1 %v5745_v15  ;;  %v892_v15 = vld [vmem:[#allocation8 + $0x550] sm:$0xff] }
 0x1f3   :  { %v5443_v54 = vcombine.high %v892_v15, %v896_v23  ;;  %v5442_v52 = vcombine.low %v892_v15, %v896_v23  ;;  %v724_v23 = vld [vmem:[#allocation8 + $0x10] sm:$0xff] }
 0x1f4   :  { %4107 = vmatpush2.bf16.msra.mxu0 %v5616_v27  ;;  %v5315_v27 = vcombine.high %v764_v19, %v768_v20  ;;  %v864_v19 = vld [vmem:[#allocation8 + $0x470] sm:$0xff] }
 0x1f5   :  { %4148 = vmatpush2.bf16.msra.mxu1 %v5744_v29  ;;  %4108 = vmatprep.subr.bf16.mxu0 %v5609_v30 }
 0x1f6   :  { %4149 = vmatprep.subr.bf16.mxu1 %v5737_v32 }
 0x1f8   :  { %4109 = vmatpush2.bf16.msra.mxu0 %v5608_v34  ;;  %v884_v34 = vld [vmem:[#allocation8 + $0x510] sm:$0xff] }
 0x1f9   :  { %4150 = vmatpush2.bf16.msra.mxu1 %v5736_v39  ;;  %4110 = vmatprep.subr.bf16.mxu0 %v5601_v0  ;;  %v888_v39 = vld [vmem:[#allocation8 + $0x530] sm:$0xff] }
 0x1fa   :  { %4151 = vmatprep.subr.bf16.mxu1 %v5729_v43  ;;  %v5434_v1 = vcombine.low %v884_v34, %v888_v39 }
 0x1fc   :  { %4111 = vmatpush2.bf16.msra.mxu0 %v5600_v55 }
 0x1fd   :  { %4152 = vmatpush2.bf16.msra.mxu1 %v5728_v56  ;;  %4112 = vmatprep.subr.bf16.mxu0 %v5593_v57  ;;  %v5435_v56 = vcombine.high %v884_v34, %v888_v39  ;;  %v748_v57 = vld [vmem:[#allocation8 + $0xd0] sm:$0xff] }
 0x1fe   :  { %4153 = vmatprep.subr.bf16.mxu1 %v5721_v58  ;;  %v752_v58 = vld [vmem:[#allocation8 + $0xf0] sm:$0xff] }
 0x200   :  { %4113 = vmatpush2.bf16.msra.mxu0 %v5592_v2  ;;  %v5299_v2 = vcombine.high %v748_v57, %v752_v58 }
 0x201   :  { %4154 = vmatpush2.bf16.msra.mxu1 %v5720_v35  ;;  %4164 = vmatprep.subr.bf16.mxu0 %v5331_v36  ;;  %v5427_v35 = vcombine.high %v876_v59, %v880_v61  ;;  %v740_v36 = vld [vmem:[#allocation8 + $0x90] sm:$0xff] }
 0x202   :  { %4205 = vmatprep.subr.bf16.mxu1 %v5459_v3  ;;  %v744_v3 = vld [vmem:[#allocation8 + $0xb0] sm:$0xff] }
 0x203   :  { %4115 = vmatmul.mubr.bf16.vlgmr.msra.gmra.mxu0 %v6351_v44  ;;  %v3870_v21 = vpop.f32.mrf.mxu0  ;;  %v3911_v24 = vpop.f32.mrf.mxu1  ;;  %v5291_v5 = vcombine.high %v740_v36, %v744_v3  ;;  %v5290_v20 = vcombine.low %v740_v36, %v744_v3 }
 0x204   :  { %4156 = vmatmul.mubr.bf16.vlgmr.msra.gmra.mxu1 %v6349_v38  ;;  %v3871_v14 = vadd.f32 %v3870_v21, %v1239_v4  ;;  %4165 = vmatpush1.bf16.msra.mxu0 %v5330_v42  ;;  %v5298_v42 = vcombine.low %v748_v57, %v752_v58  ;;  %v5426_v4 = vcombine.low %v876_v59, %v880_v61  ;;  %v828_v59 = vld [vmem:[#allocation8 + $0x350] sm:$0xff] }
 0x205   :  { %4196 = vmatprep.mubr.bf16.mxu0 %v6305_v47  ;;  %4206 = vmatpush1.bf16.msra.mxu1 %v5458_v8  ;;  %v3872_v26 = vpop.f32.mrf.mxu0  ;;  %v3913_v32 = vpop.f32.mrf.mxu1  ;;  %v732_v8 = vld [vmem:[#allocation8 + $0x50] sm:$0xff]  ;;  %v5418_v21 = vcombine.low %v868_v37, %v872_v40 }
 0x206   :  { %v6372_v29 = vadd.f32 %v3911_v24, %v3871_v14  ;;  %4237 = vmatprep.mubr.bf16.mxu1 %v6309_v50  ;;  %v3873_v30 = vadd.f32 %v3872_v26, %v1243_v9  ;;  %4166 = vmatprep.subr.bf16.mxu0 %v5323_v11  ;;  %v736_v9 = vld [vmem:[#allocation8 + $0x70] sm:$0xff] }
 0x207   :  { %4207 = vmatprep.subr.bf16.mxu1 %v5451_v22  ;;  %v3874_v12 = vpop.f32.mrf.mxu0  ;;  %v3915_v43 = vpop.f32.mrf.mxu1  ;;  %v860_v11 = vld [vmem:[#allocation8 + $0x450] sm:$0xff]  ;;  %v5283_v22 = vcombine.high %v732_v8, %v736_v9  ;;  %v5282_v26 = vcombine.low %v732_v8, %v736_v9 }
 0x208   :  { %v6375_v0 = vadd.f32 %v3913_v32, %v3873_v30  ;;  %4167 = vmatpush1.bf16.msra.mxu0 %v5322_v25  ;;  %v5411_v15 = vcombine.high %v860_v11, %v864_v19  ;;  %v728_v14 = vld [vmem:[#allocation8 + $0x30] sm:$0xff]  ;;  %v5523_v43 = vcombine.high %v972_v33, %v976_v45 }
 0x209   :  { %4208 = vmatpush1.bf16.msra.mxu1 %v5450_v17  ;;  %v3875_v51 = vpop.f32.mrf.mxu0  ;;  %4168 = vmatprep.subr.bf16.mxu0 %v5315_v27  ;;  %v3916_v55 = vpop.f32.mrf.mxu1  ;;  %v852_v24 = vld [vmem:[#allocation8 + $0x410] sm:$0xff]  ;;  %v5410_v17 = vcombine.low %v860_v11, %v864_v19  ;;  %v5275_v27 = vcombine.high %v724_v23, %v728_v14  ;;  %v5274_v12 = vcombine.low %v724_v23, %v728_v14 }
 0x20a   :  { %4209 = vmatprep.subr.bf16.mxu1 %v5443_v54  ;;  %v856_v25 = vld [vmem:[#allocation8 + $0x430] sm:$0xff] }
 0x20b   :  { %v5403_v30 = vcombine.high %v852_v24, %v856_v25  ;;  %v844_v32 = vld [vmem:[#allocation8 + $0x3d0] sm:$0xff]  ;;  %v5402_v34 = vcombine.low %v852_v24, %v856_v25 }
 0x20c   :  { %4169 = vmatpush1.bf16.msra.mxu0 %v5314_v48  ;;  %v848_v54 = vld [vmem:[#allocation8 + $0x3f0] sm:$0xff] }
 0x20d   :  { %4210 = vmatpush1.bf16.msra.mxu1 %v5442_v52  ;;  %4170 = vmatprep.subr.bf16.mxu0 %v5307_v53  ;;  %v5395_v39 = vcombine.high %v844_v32, %v848_v54  ;;  %v836_v48 = vld [vmem:[#allocation8 + $0x390] sm:$0xff]  ;;  %v5394_v55 = vcombine.low %v844_v32, %v848_v54 }
 0x20e   :  { %4211 = vmatprep.subr.bf16.mxu1 %v5435_v56  ;;  %v840_v51 = vld [vmem:[#allocation8 + $0x3b0] sm:$0xff]  ;;  %v5522_v56 = vcombine.low %v972_v33, %v976_v45 }
 0x20f   :  { %v964_v52 = vld [vmem:[#allocation8 + $0x790] sm:$0xff]  ;;  %v5387_v57 = vcombine.high %v836_v48, %v840_v51 }
 0x210   :  { %4171 = vmatpush1.bf16.msra.mxu0 %v5306_v63  ;;  %v968_v53 = vld [vmem:[#allocation8 + $0x7b0] sm:$0xff] }
 0x211   :  { %4212 = vmatpush1.bf16.msra.mxu1 %v5434_v1  ;;  %4172 = vmatprep.subr.bf16.mxu0 %v5299_v2  ;;  %v5515_v58 = vcombine.high %v964_v52, %v968_v53  ;;  %v832_v61 = vld [vmem:[#allocation8 + $0x370] sm:$0xff]  ;;  %v5386_v2 = vcombine.low %v836_v48, %v840_v51 }
 0x212   :  { %4213 = vmatprep.subr.bf16.mxu1 %v5427_v35  ;;  %v956_v63 = vld [vmem:[#allocation8 + $0x750] sm:$0xff]  ;;  %v5514_v35 = vcombine.low %v964_v52, %v968_v53  ;;  %v5379_v36 = vcombine.high %v828_v59, %v832_v61 }
 0x213   :  { %v960_v1 = vld [vmem:[#allocation8 + $0x770] sm:$0xff] }
 0x214   :  { %4173 = vmatpush1.bf16.msra.mxu0 %v5298_v42  ;;  %v5507_v3 = vcombine.high %v956_v63, %v960_v1  ;;  %v820_v37 = vld [vmem:[#allocation8 + $0x310] sm:$0xff] }
 0x215   :  { %4214 = vmatpush1.bf16.msra.mxu1 %v5426_v4  ;;  %4174 = vmatprep.subr.bf16.mxu0 %v5291_v5  ;;  %v824_v40 = vld [vmem:[#allocation8 + $0x330] sm:$0xff]  ;;  %v5378_v5 = vcombine.low %v828_v59, %v832_v61 }
 0x216   :  { %4215 = vmatprep.subr.bf16.mxu1 %v5419_v7  ;;  %v948_v42 = vld [vmem:[#allocation8 + $0x710] sm:$0xff]  ;;  %v5506_v7 = vcombine.low %v956_v63, %v960_v1  ;;  %v5371_v8 = vcombine.high %v820_v37, %v824_v40 }
 0x217   :  { %v952_v4 = vld [vmem:[#allocation8 + $0x730] sm:$0xff] }
 0x218   :  { %4175 = vmatpush1.bf16.msra.mxu0 %v5290_v20  ;;  %v5499_v9 = vcombine.high %v948_v42, %v952_v4  ;;  %v812_v11 = vld [vmem:[#allocation8 + $0x2d0] sm:$0xff] }
 0x219   :  { %4216 = vmatpush1.bf16.msra.mxu1 %v5418_v21  ;;  %4176 = vmatprep.subr.bf16.mxu0 %v5283_v22  ;;  %v816_v19 = vld [vmem:[#allocation8 + $0x2f0] sm:$0xff]  ;;  %v5370_v22 = vcombine.low %v820_v37, %v824_v40 }
 0x21a   :  { %4217 = vmatprep.subr.bf16.mxu1 %v5411_v15  ;;  %v940_v20 = vld [vmem:[#allocation8 + $0x6d0] sm:$0xff]  ;;  %v5498_v15 = vcombine.low %v948_v42, %v952_v4  ;;  %v5363_v23 = vcombine.high %v812_v11, %v816_v19 }
 0x21b   :  { %v944_v21 = vld [vmem:[#allocation8 + $0x6f0] sm:$0xff] }
 0x21c   :  { %4177 = vmatpush1.bf16.msra.mxu0 %v5282_v26  ;;  %v5491_v14 = vcombine.high %v940_v20, %v944_v21  ;;  %v804_v24 = vld [vmem:[#allocation8 + $0x290] sm:$0xff] }
 0x21d   :  { %4218 = vmatpush1.bf16.msra.mxu1 %v5410_v17  ;;  %4178 = vmatprep.subr.bf16.mxu0 %v5275_v27  ;;  %v808_v25 = vld [vmem:[#allocation8 + $0x2b0] sm:$0xff]  ;;  %v5362_v27 = vcombine.low %v812_v11, %v816_v19 }
 0x21e   :  { %4219 = vmatprep.subr.bf16.mxu1 %v5403_v30  ;;  %v932_v26 = vld [vmem:[#allocation8 + $0x690] sm:$0xff]  ;;  %v5490_v30 = vcombine.low %v940_v20, %v944_v21  ;;  %v5355_v32 = vcombine.high %v804_v24, %v808_v25 }
 0x21f   :  { %v936_v17 = vld [vmem:[#allocation8 + $0x6b0] sm:$0xff] }
 0x220   :  { %4179 = vmatpush1.bf16.msra.mxu0 %v5274_v12  ;;  %v5483_v54 = vcombine.high %v932_v26, %v936_v17  ;;  %v796_v33 = vld [vmem:[#allocation8 + $0x250] sm:$0xff] }
 0x221   :  { %4220 = vmatpush1.bf16.msra.mxu1 %v5402_v34  ;;  %4180 = vmatprep.subr.bf16.mxu0 %v5395_v39  ;;  %v800_v45 = vld [vmem:[#allocation8 + $0x270] sm:$0xff]  ;;  %v5354_v39 = vcombine.low %v804_v24, %v808_v25 }
 0x222   :  { %4221 = vmatprep.subr.bf16.mxu1 %v5523_v43  ;;  %v924_v12 = vld [vmem:[#allocation8 + $0x650] sm:$0xff]  ;;  %v5482_v43 = vcombine.low %v932_v26, %v936_v17  ;;  %v5347_v48 = vcombine.high %v796_v33, %v800_v45 }
 0x223   :  { %v928_v34 = vld [vmem:[#allocation8 + $0x670] sm:$0xff] }
 0x224   :  { %4181 = vmatpush2.bf16.msra.mxu0 %v5394_v55  ;;  %v5475_v51 = vcombine.high %v924_v12, %v928_v34  ;;  %v788_v52 = vld [vmem:[#allocation8 + $0x210] sm:$0xff] }
 0x225   :  { %4222 = vmatpush2.bf16.msra.mxu1 %v5522_v56  ;;  %4182 = vmatprep.subr.bf16.mxu0 %v5387_v57  ;;  %v792_v53 = vld [vmem:[#allocation8 + $0x230] sm:$0xff]  ;;  %v5346_v57 = vcombine.low %v796_v33, %v800_v45 }
 0x226   :  { %4223 = vmatprep.subr.bf16.mxu1 %v5515_v58  ;;  %v916_v55 = vld [vmem:[#allocation8 + $0x610] sm:$0xff]  ;;  %v5474_v58 = vcombine.low %v924_v12, %v928_v34  ;;  %v5339_v59 = vcombine.high %v788_v52, %v792_v53 }
 0x227   :  { %v920_v56 = vld [vmem:[#allocation8 + $0x630] sm:$0xff] }
 0x228   :  { %4183 = vmatpush2.bf16.msra.mxu0 %v5386_v2  ;;  %v5467_v61 = vcombine.high %v916_v55, %v920_v56  ;;  %v1036_v63 = vld [vmem:[#allocation8 + $0x9d0] sm:$0xff] }
 0x229   :  { %4224 = vmatpush2.bf16.msra.mxu1 %v5514_v35  ;;  %4184 = vmatprep.subr.bf16.mxu0 %v5379_v36  ;;  %v1040_v1 = vld [vmem:[#allocation8 + $0x9f0] sm:$0xff]  ;;  %v5338_v36 = vcombine.low %v788_v52, %v792_v53 }
 0x22a   :  { %4225 = vmatprep.subr.bf16.mxu1 %v5507_v3  ;;  %v1164_v2 = vld [vmem:[#allocation8 + $0xdd0] sm:$0xff]  ;;  %v5466_v3 = vcombine.low %v916_v55, %v920_v56  ;;  %v5587_v37 = vcombine.high %v1036_v63, %v1040_v1 }
 0x22b   :  { %v1168_v35 = vld [vmem:[#allocation8 + $0xdf0] sm:$0xff] }
 0x22c   :  { %4185 = vmatpush2.bf16.msra.mxu0 %v5378_v5  ;;  %v5715_v40 = vcombine.high %v1164_v2, %v1168_v35  ;;  %v1028_v42 = vld [vmem:[#allocation8 + $0x990] sm:$0xff]  ;;  %v5586_v5 = vcombine.low %v1036_v63, %v1040_v1 }
 0x22d   :  { %4226 = vmatpush2.bf16.msra.mxu1 %v5506_v7  ;;  %4186 = vmatprep.subr.bf16.mxu0 %v5371_v8  ;;  %v1032_v4 = vld [vmem:[#allocation8 + $0x9b0] sm:$0xff] }
 0x22e   :  { %4227 = vmatprep.subr.bf16.mxu1 %v5499_v9  ;;  %v1156_v7 = vld [vmem:[#allocation8 + $0xd90] sm:$0xff]  ;;  %v5714_v9 = vcombine.low %v1164_v2, %v1168_v35  ;;  %v5579_v11 = vcombine.high %v1028_v42, %v1032_v4  ;;  %v5578_v25 = vcombine.low %v1028_v42, %v1032_v4 }
 0x22f   :  { %v1160_v8 = vld [vmem:[#allocation8 + $0xdb0] sm:$0xff] }
 0x230   :  { %4187 = vmatpush2.bf16.msra.mxu0 %v5370_v22  ;;  %v1020_v19 = vld [vmem:[#allocation8 + $0x950] sm:$0xff]  ;;  %v5707_v22 = vcombine.high %v1156_v7, %v1160_v8  ;;  %v5706_v17 = vcombine.low %v1156_v7, %v1160_v8 }
 0x231   :  { %4228 = vmatpush2.bf16.msra.mxu1 %v5498_v15  ;;  %4188 = vmatprep.subr.bf16.mxu0 %v5363_v23  ;;  %v1024_v20 = vld [vmem:[#allocation8 + $0x970] sm:$0xff] }
 0x232   :  { %4229 = vmatprep.subr.bf16.mxu1 %v5491_v14  ;;  %v1148_v15 = vld [vmem:[#allocation8 + $0xd50] sm:$0xff] }
 0x233   :  { %v1152_v23 = vld [vmem:[#allocation8 + $0xd70] sm:$0xff] }
 0x234   :  { %4189 = vmatpush2.bf16.msra.mxu0 %v5362_v27  ;;  %v5571_v27 = vcombine.high %v1020_v19, %v1024_v20  ;;  %v1012_v33 = vld [vmem:[#allocation8 + $0x910] sm:$0xff]  ;;  %v5698_v53 = vcombine.low %v1148_v15, %v1152_v23 }
 0x235   :  { %4230 = vmatpush2.bf16.msra.mxu1 %v5490_v30  ;;  %4190 = vmatprep.subr.bf16.mxu0 %v5355_v32  ;;  %v1016_v45 = vld [vmem:[#allocation8 + $0x930] sm:$0xff] }
 0x236   :  { %4231 = vmatprep.subr.bf16.mxu1 %v5483_v54  ;;  %v1140_v34 = vld [vmem:[#allocation8 + $0xd10] sm:$0xff]  ;;  %v5563_v55 = vcombine.high %v1012_v33, %v1016_v45  ;;  %v5562_v63 = vcombine.low %v1012_v33, %v1016_v45 }
 0x237   :  { %v988_v8 = vld [vmem:[#allocation8 + $0x850] sm:$0xff] }
 0x238   :  { %4191 = vmatpush2.bf16.msra.mxu0 %v5354_v39  ;;  %v1144_v39 = vld [vmem:[#allocation8 + $0xd30] sm:$0xff] }
 0x239   :  { %4232 = vmatpush2.bf16.msra.mxu1 %v5482_v43  ;;  %4192 = vmatprep.subr.bf16.mxu0 %v5347_v48  ;;  %v5691_v56 = vcombine.high %v1140_v34, %v1144_v39  ;;  %v5690_v1 = vcombine.low %v1140_v34, %v1144_v39  ;;  %v1228_v33 = vld [vmem:[#allocation8 + $0xfd0] sm:$0xff] }
 0x23a   :  { %4233 = vmatprep.subr.bf16.mxu1 %v5475_v51  ;;  %v5570_v51 = vcombine.low %v1020_v19, %v1024_v20  ;;  %v1120_v19 = vld [vmem:[#allocation8 + $0xc70] sm:$0xff] }
 0x23b   :  { %v1232_v45 = vld [vmem:[#allocation8 + $0xff0] sm:$0xff] }
 0x23c   :  { %4193 = vmatpush2.bf16.msra.mxu0 %v5346_v57  ;;  %v1004_v57 = vld [vmem:[#allocation8 + $0x8d0] sm:$0xff] }
 0x23d   :  { %4234 = vmatpush2.bf16.msra.mxu1 %v5474_v58  ;;  %4194 = vmatprep.subr.bf16.mxu0 %v5339_v59  ;;  %v1008_v58 = vld [vmem:[#allocation8 + $0x8f0] sm:$0xff] }
 0x23e   :  { %4235 = vmatprep.subr.bf16.mxu1 %v5467_v61  ;;  %v1132_v59 = vld [vmem:[#allocation8 + $0xcd0] sm:$0xff]  ;;  %v5555_v2 = vcombine.high %v1004_v57, %v1008_v58  ;;  %v5554_v42 = vcombine.low %v1004_v57, %v1008_v58 }
 0x23f   :  { %v1136_v61 = vld [vmem:[#allocation8 + $0xcf0] sm:$0xff] }
 0x240   :  { %4195 = vmatpush2.bf16.msra.mxu0 %v5338_v36  ;;  %v5683_v35 = vcombine.high %v1132_v59, %v1136_v61  ;;  %v996_v36 = vld [vmem:[#allocation8 + $0x890] sm:$0xff]  ;;  %v5682_v4 = vcombine.low %v1132_v59, %v1136_v61 }
 0x241   :  { %4236 = vmatpush2.bf16.msra.mxu1 %v5466_v3  ;;  %4246 = vmatprep.subr.bf16.mxu0 %v5587_v37  ;;  %v1000_v3 = vld [vmem:[#allocation8 + $0x8b0] sm:$0xff] }
 0x242   :  { %4287 = vmatprep.subr.bf16.mxu1 %v5715_v40  ;;  %v1124_v37 = vld [vmem:[#allocation8 + $0xc90] sm:$0xff]  ;;  %v5546_v20 = vcombine.low %v996_v36, %v1000_v3 }
 0x243   :  { %v3952_v21 = vpop.f32.mrf.mxu0  ;;  %4197 = vmatmul.mubr.bf16.vlgmr.msra.gmra.mxu0 %v6307_v49  ;;  %v3993_v24 = vpop.f32.mrf.mxu1  ;;  %v1128_v40 = vld [vmem:[#allocation8 + $0xcb0] sm:$0xff] }
 0x244   :  { %v3953_v14 = vadd.f32 %v3952_v21, %v6372_v29  ;;  %4238 = vmatmul.mubr.bf16.vlgmr.msra.gmra.mxu1 %v6303_v46  ;;  %4247 = vmatpush1.bf16.msra.mxu0 %v5586_v5  ;;  %v5699_v29 = vcombine.high %v1148_v15, %v1152_v23  ;;  %v5547_v5 = vcombine.high %v996_v36, %v1000_v3  ;;  %v980_v23 = vld [vmem:[#allocation8 + $0x810] sm:$0xff] }
 0x245   :  { %4278 = vmatprep.mubr.bf16.mxu0 %v6333_v6  ;;  %4288 = vmatpush1.bf16.msra.mxu1 %v5714_v9  ;;  %v3954_v26 = vpop.f32.mrf.mxu0  ;;  %v3995_v54 = vpop.f32.mrf.mxu1  ;;  %v5675_v7 = vcombine.high %v1124_v37, %v1128_v40  ;;  %v992_v9 = vld [vmem:[#allocation8 + $0x870] sm:$0xff]  ;;  %v5674_v21 = vcombine.low %v1124_v37, %v1128_v40 }
 0x246   :  { %v6381_v30 = vadd.f32 %v3993_v24, %v3953_v14  ;;  %4319 = vmatprep.mubr.bf16.mxu1 %v6335_v10  ;;  %v3955_v32 = vadd.f32 %v3954_v26, %v6375_v0  ;;  %4248 = vmatprep.subr.bf16.mxu0 %v5579_v11  ;;  %v1116_v11 = vld [vmem:[#allocation8 + $0xc50] sm:$0xff]  ;;  %v5538_v26 = vcombine.low %v988_v8, %v992_v9 }
 0x247   :  { %v3956_v12 = vpop.f32.mrf.mxu0  ;;  %4289 = vmatprep.subr.bf16.mxu1 %v5707_v22  ;;  %v3997_v48 = vpop.f32.mrf.mxu1  ;;  %v5539_v22 = vcombine.high %v988_v8, %v992_v9  ;;  %v5667_v15 = vcombine.high %v1116_v11, %v1120_v19  ;;  %v984_v14 = vld [vmem:[#allocation8 + $0x830] sm:$0xff] }
 0x248   :  { %v6385_v43 = vadd.f32 %v3995_v54, %v3955_v32  ;;  %4249 = vmatpush1.bf16.msra.mxu0 %v5578_v25  ;;  %v1108_v24 = vld [vmem:[#allocation8 + $0xc10] sm:$0xff]  ;;  %v5530_v12 = vcombine.low %v980_v23, %v984_v14  ;;  %v5779_v48 = vcombine.high %v1228_v33, %v1232_v45 }
 0x249   :  { %4290 = vmatpush1.bf16.msra.mxu1 %v5706_v17  ;;  %v3957_v52 = vpop.f32.mrf.mxu0  ;;  %4250 = vmatprep.subr.bf16.mxu0 %v5571_v27  ;;  %v3998_v0 = vpop.f32.mrf.mxu1  ;;  %v1112_v25 = vld [vmem:[#allocation8 + $0xc30] sm:$0xff]  ;;  %v5666_v17 = vcombine.low %v1116_v11, %v1120_v19  ;;  %v5531_v27 = vcombine.high %v980_v23, %v984_v14 }
 0x24a   :  { %4291 = vmatprep.subr.bf16.mxu1 %v5699_v29  ;;  %v5659_v32 = vcombine.high %v1108_v24, %v1112_v25  ;;  %v1100_v54 = vld [vmem:[#allocation8 + $0xbd0] sm:$0xff]  ;;  %v5658_v34 = vcombine.low %v1108_v24, %v1112_v25 }
 0x24b   :  { %v1104_v29 = vld [vmem:[#allocation8 + $0xbf0] sm:$0xff] }
 0x24c   :  { %4251 = vmatpush1.bf16.msra.mxu0 %v5570_v51  ;;  %v5651_v39 = vcombine.high %v1100_v54, %v1104_v29  ;;  %v1092_v51 = vld [vmem:[#allocation8 + $0xb90] sm:$0xff]  ;;  %v5650_v0 = vcombine.low %v1100_v54, %v1104_v29 }
 0x24d   :  { %4292 = vmatpush1.bf16.msra.mxu1 %v5698_v53  ;;  %4252 = vmatprep.subr.bf16.mxu0 %v5563_v55  ;;  %v1096_v52 = vld [vmem:[#allocation8 + $0xbb0] sm:$0xff] }
 0x24e   :  { %4293 = vmatprep.subr.bf16.mxu1 %v5691_v56  ;;  %v1220_v53 = vld [vmem:[#allocation8 + $0xf90] sm:$0xff]  ;;  %v5778_v56 = vcombine.low %v1228_v33, %v1232_v45  ;;  %v5643_v57 = vcombine.high %v1092_v51, %v1096_v52 }
 0x24f   :  { %v1224_v55 = vld [vmem:[#allocation8 + $0xfb0] sm:$0xff] }
 0x250   :  { %4253 = vmatpush1.bf16.msra.mxu0 %v5562_v63  ;;  %v5771_v58 = vcombine.high %v1220_v53, %v1224_v55  ;;  %v1084_v59 = vld [vmem:[#allocation8 + $0xb50] sm:$0xff] }
 0x251   :  { %4294 = vmatpush1.bf16.msra.mxu1 %v5690_v1  ;;  %4254 = vmatprep.subr.bf16.mxu0 %v5555_v2  ;;  %v1088_v61 = vld [vmem:[#allocation8 + $0xb70] sm:$0xff]  ;;  %v5642_v2 = vcombine.low %v1092_v51, %v1096_v52 }
 0x252   :  { %4295 = vmatprep.subr.bf16.mxu1 %v5683_v35  ;;  %v1212_v63 = vld [vmem:[#allocation8 + $0xf50] sm:$0xff]  ;;  %v5770_v35 = vcombine.low %v1220_v53, %v1224_v55  ;;  %v5635_v36 = vcombine.high %v1084_v59, %v1088_v61 }
 0x253   :  { %v1216_v1 = vld [vmem:[#allocation8 + $0xf70] sm:$0xff] }
 0x254   :  { %4255 = vmatpush1.bf16.msra.mxu0 %v5554_v42  ;;  %v5763_v3 = vcombine.high %v1212_v63, %v1216_v1  ;;  %v1076_v37 = vld [vmem:[#allocation8 + $0xb10] sm:$0xff] }
 0x255   :  { %4296 = vmatpush1.bf16.msra.mxu1 %v5682_v4  ;;  %4256 = vmatprep.subr.bf16.mxu0 %v5547_v5  ;;  %v1080_v40 = vld [vmem:[#allocation8 + $0xb30] sm:$0xff]  ;;  %v5634_v5 = vcombine.low %v1084_v59, %v1088_v61 }
 0x256   :  { %4297 = vmatprep.subr.bf16.mxu1 %v5675_v7  ;;  %v1204_v42 = vld [vmem:[#allocation8 + $0xf10] sm:$0xff]  ;;  %v5762_v7 = vcombine.low %v1212_v63, %v1216_v1  ;;  %v5627_v8 = vcombine.high %v1076_v37, %v1080_v40  ;;  %v781_v63 = vld [vmem:[#allocation8 + $0x1d8] sm:$0xff] }
 0x257   :  { %v1208_v4 = vld [vmem:[#allocation8 + $0xf30] sm:$0xff]  ;;  %v785_v1 = vld [vmem:[#allocation8 + $0x1f8] sm:$0xff] }
 0x258   :  { %4257 = vmatpush1.bf16.msra.mxu0 %v5546_v20  ;;  %v5755_v9 = vcombine.high %v1204_v42, %v1208_v4  ;;  %v1068_v11 = vld [vmem:[#allocation8 + $0xad0] sm:$0xff] }
 0x259   :  { %4298 = vmatpush1.bf16.msra.mxu1 %v5674_v21  ;;  %4258 = vmatprep.subr.bf16.mxu0 %v5539_v22  ;;  %v1072_v19 = vld [vmem:[#allocation8 + $0xaf0] sm:$0xff]  ;;  %v5626_v22 = vcombine.low %v1076_v37, %v1080_v40  ;;  %v5333_v37 = vcombine.high %v781_v63, %v785_v1 }
 0x25a   :  { %4299 = vmatprep.subr.bf16.mxu1 %v5667_v15  ;;  %v1196_v20 = vld [vmem:[#allocation8 + $0xed0] sm:$0xff]  ;;  %v5754_v15 = vcombine.low %v1204_v42, %v1208_v4  ;;  %v5619_v23 = vcombine.high %v1068_v11, %v1072_v19  ;;  %v773_v42 = vld [vmem:[#allocation8 + $0x198] sm:$0xff] }
 0x25b   :  { %v1200_v21 = vld [vmem:[#allocation8 + $0xef0] sm:$0xff]  ;;  %v777_v4 = vld [vmem:[#allocation8 + $0x1b8] sm:$0xff] }
 0x25c   :  { %4259 = vmatpush1.bf16.msra.mxu0 %v5538_v26  ;;  %v5747_v14 = vcombine.high %v1196_v20, %v1200_v21  ;;  %v1060_v24 = vld [vmem:[#allocation8 + $0xa90] sm:$0xff] }
 0x25d   :  { %4300 = vmatpush1.bf16.msra.mxu1 %v5666_v17  ;;  %4260 = vmatprep.subr.bf16.mxu0 %v5531_v27  ;;  %v1064_v25 = vld [vmem:[#allocation8 + $0xab0] sm:$0xff]  ;;  %v5618_v27 = vcombine.low %v1068_v11, %v1072_v19  ;;  %v1251_v19 = vrot.slane %v6361_v41, %v196_v18 }
 0x25e   :  { %4301 = vmatprep.subr.bf16.mxu1 %v5659_v32  ;;  %v1188_v26 = vld [vmem:[#allocation8 + $0xe90] sm:$0xff]  ;;  %v5746_v32 = vcombine.low %v1196_v20, %v1200_v21  ;;  %v5611_v54 = vcombine.high %v1060_v24, %v1064_v25  ;;  %v5325_v20 = vcombine.high %v773_v42, %v777_v4  ;;  %v765_v21 = vld [vmem:[#allocation8 + $0x158] sm:$0xff] }
 0x25f   :  { %v1192_v17 = vld [vmem:[#allocation8 + $0xeb0] sm:$0xff] }
 0x260   :  { %4261 = vmatpush1.bf16.msra.mxu0 %v5530_v12  ;;  %v5739_v29 = vcombine.high %v1188_v26, %v1192_v17  ;;  %v1052_v33 = vld [vmem:[#allocation8 + $0xa50] sm:$0xff] }
 0x261   :  { %4302 = vmatpush1.bf16.msra.mxu1 %v5658_v34  ;;  %4262 = vmatprep.subr.bf16.mxu0 %v5651_v39  ;;  %v1056_v45 = vld [vmem:[#allocation8 + $0xa70] sm:$0xff]  ;;  %v5610_v39 = vcombine.low %v1060_v24, %v1064_v25 }
 0x262   :  { %4303 = vmatprep.subr.bf16.mxu1 %v5779_v48  ;;  %v1180_v12 = vld [vmem:[#allocation8 + $0xe50] sm:$0xff]  ;;  %v5738_v48 = vcombine.low %v1188_v26, %v1192_v17  ;;  %v5603_v51 = vcombine.high %v1052_v33, %v1056_v45  ;;  %v5324_v26 = vcombine.low %v773_v42, %v777_v4 }
 0x263   :  { %v1184_v34 = vld [vmem:[#allocation8 + $0xe70] sm:$0xff] }
 0x264   :  { %4263 = vmatpush2.bf16.msra.mxu0 %v5650_v0  ;;  %v5731_v52 = vcombine.high %v1180_v12, %v1184_v34  ;;  %v1044_v53 = vld [vmem:[#allocation8 + $0xa10] sm:$0xff] }
 0x265   :  { %4304 = vmatpush2.bf16.msra.mxu1 %v5778_v56  ;;  %4264 = vmatprep.subr.bf16.mxu0 %v5643_v57  ;;  %v1048_v55 = vld [vmem:[#allocation8 + $0xa30] sm:$0xff]  ;;  %v5602_v57 = vcombine.low %v1052_v33, %v1056_v45  ;;  %v757_v33 = vld [vmem:[#allocation8 + $0x118] sm:$0xff] }
 0x266   :  { %4305 = vmatprep.subr.bf16.mxu1 %v5771_v58  ;;  %v1172_v0 = vld [vmem:[#allocation8 + $0xe10] sm:$0xff]  ;;  %v5730_v58 = vcombine.low %v1180_v12, %v1184_v34  ;;  %v5595_v59 = vcombine.high %v1044_v53, %v1048_v55  ;;  %v761_v45 = vld [vmem:[#allocation8 + $0x138] sm:$0xff] }
 0x267   :  { %v1176_v56 = vld [vmem:[#allocation8 + $0xe30] sm:$0xff]  ;;  %v885_v34 = vld [vmem:[#allocation8 + $0x518] sm:$0xff] }
 0x268   :  { %4265 = vmatpush2.bf16.msra.mxu0 %v5642_v2  ;;  %v5723_v61 = vcombine.high %v1172_v0, %v1176_v56  ;;  %v909_v2 = vld [vmem:[#allocation8 + $0x5d8] sm:$0xff] }
 0x269   :  { %4306 = vmatpush2.bf16.msra.mxu1 %v5770_v35  ;;  %4266 = vmatprep.subr.bf16.mxu0 %v5635_v36  ;;  %v913_v35 = vld [vmem:[#allocation8 + $0x5f8] sm:$0xff]  ;;  %v5594_v36 = vcombine.low %v1044_v53, %v1048_v55 }
 0x26a   :  { %4307 = vmatprep.subr.bf16.mxu1 %v5763_v3  ;;  %v5722_v3 = vcombine.low %v1172_v0, %v1176_v56  ;;  %v5461_v40 = vcombine.high %v909_v2, %v913_v35  ;;  %v5460_v11 = vcombine.low %v909_v2, %v913_v35  ;;  %v749_v56 = vld [vmem:[#allocation8 + $0xd8] sm:$0xff] }
 0x26b   :  { %v741_v35 = vld [vmem:[#allocation8 + $0x98] sm:$0xff] }
 0x26c   :  { %4267 = vmatpush2.bf16.msra.mxu0 %v5634_v5  ;;  %v1247_v5 = vrot.slane %v6361_v41, %v192_v16  ;;  %v897_v16 = vld [vmem:[#allocation8 + $0x578] sm:$0xff] }
 0x26d   :  { %4308 = vmatpush2.bf16.msra.mxu1 %v5762_v7  ;;  %4268 = vmatprep.subr.bf16.mxu0 %v5627_v8  ;;  %v5332_v7 = vcombine.low %v781_v63, %v785_v1  ;;  %v901_v8 = vld [vmem:[#allocation8 + $0x598] sm:$0xff] }
 0x26e   :  { %4309 = vmatprep.subr.bf16.mxu1 %v5755_v9  ;;  %v905_v9 = vld [vmem:[#allocation8 + $0x5b8] sm:$0xff] }
 0x26f   :  { %v5452_v18 = vcombine.low %v901_v8, %v905_v9 }
 0x270   :  { %4269 = vmatpush2.bf16.msra.mxu0 %v5626_v22  ;;  %v769_v22 = vld [vmem:[#allocation8 + $0x178] sm:$0xff] }
 0x271   :  { %4310 = vmatpush2.bf16.msra.mxu1 %v5754_v15  ;;  %4270 = vmatprep.subr.bf16.mxu0 %v5619_v23  ;;  %v5453_v23 = vcombine.high %v901_v8, %v905_v9  ;;  %v5317_v41 = vcombine.high %v765_v21, %v769_v22  ;;  %v737_v8 = vld [vmem:[#allocation8 + $0x78] sm:$0xff] }
 0x272   :  { %4311 = vmatprep.subr.bf16.mxu1 %v5747_v14  ;;  %v893_v14 = vld [vmem:[#allocation8 + $0x558] sm:$0xff] }
 0x273   :  { %v5444_v53 = vcombine.low %v893_v14, %v897_v16  ;;  %v861_v9 = vld [vmem:[#allocation8 + $0x458] sm:$0xff] }
 0x274   :  { %4271 = vmatpush2.bf16.msra.mxu0 %v5618_v27 }
 0x275   :  { %4312 = vmatpush2.bf16.msra.mxu1 %v5746_v32  ;;  %4272 = vmatprep.subr.bf16.mxu0 %v5611_v54 }
 0x276   :  { %4313 = vmatprep.subr.bf16.mxu1 %v5739_v29  ;;  %v5445_v29 = vcombine.high %v893_v14, %v897_v16  ;;  %v853_v14 = vld [vmem:[#allocation8 + $0x418] sm:$0xff] }
 0x277   :  { %v857_v16 = vld [vmem:[#allocation8 + $0x438] sm:$0xff] }
 0x278   :  { %4273 = vmatpush2.bf16.msra.mxu0 %v5610_v39  ;;  %v889_v39 = vld [vmem:[#allocation8 + $0x538] sm:$0xff] }
 0x279   :  { %4314 = vmatpush2.bf16.msra.mxu1 %v5738_v48  ;;  %4274 = vmatprep.subr.bf16.mxu0 %v5603_v51  ;;  %v5316_v51 = vcombine.low %v765_v21, %v769_v22  ;;  %v5437_v0 = vcombine.high %v885_v34, %v889_v39  ;;  %v5436_v63 = vcombine.low %v885_v34, %v889_v39  ;;  %v837_v34 = vld [vmem:[#allocation8 + $0x398] sm:$0xff] }
 0x27a   :  { %4315 = vmatprep.subr.bf16.mxu1 %v5731_v52  ;;  %v841_v39 = vld [vmem:[#allocation8 + $0x3b8] sm:$0xff] }
 0x27c   :  { %4275 = vmatpush2.bf16.msra.mxu0 %v5602_v57  ;;  %v753_v57 = vld [vmem:[#allocation8 + $0xf8] sm:$0xff] }
 0x27d   :  { %4316 = vmatpush2.bf16.msra.mxu1 %v5730_v58  ;;  %4276 = vmatprep.subr.bf16.mxu0 %v5595_v59  ;;  %v877_v58 = vld [vmem:[#allocation8 + $0x4d8] sm:$0xff]  ;;  %v5301_v1 = vcombine.high %v749_v56, %v753_v57 }
 0x27e   :  { %4317 = vmatprep.subr.bf16.mxu1 %v5723_v61  ;;  %v881_v59 = vld [vmem:[#allocation8 + $0x4f8] sm:$0xff]  ;;  %v5308_v61 = vcombine.low %v757_v33, %v761_v45 }
 0x27f   :  { %v5429_v2 = vcombine.high %v877_v58, %v881_v59  ;;  %v5428_v42 = vcombine.low %v877_v58, %v881_v59  ;;  %v961_v58 = vld [vmem:[#allocation8 + $0x778] sm:$0xff]  ;;  %v5388_v59 = vcombine.low %v837_v34, %v841_v39 }
 0x280   :  { %4277 = vmatpush2.bf16.msra.mxu0 %v5594_v36  ;;  %v745_v36 = vld [vmem:[#allocation8 + $0xb8] sm:$0xff] }
 0x281   :  { %4318 = vmatpush2.bf16.msra.mxu1 %v5722_v3  ;;  %4328 = vmatprep.subr.bf16.mxu0 %v5333_v37  ;;  %v869_v3 = vld [vmem:[#allocation8 + $0x498] sm:$0xff]  ;;  %v5293_v4 = vcombine.high %v741_v35, %v745_v36 }
 0x282   :  { %4369 = vmatprep.subr.bf16.mxu1 %v5461_v40  ;;  %v873_v37 = vld [vmem:[#allocation8 + $0x4b8] sm:$0xff]  ;;  %v5300_v40 = vcombine.low %v749_v56, %v753_v57 }
 0x283   :  { %v4034_v15 = vpop.f32.mrf.mxu0  ;;  %4279 = vmatmul.mubr.bf16.vlgmr.msra.gmra.mxu0 %v6351_v44  ;;  %v833_v56 = vld [vmem:[#allocation8 + $0x378] sm:$0xff] }
 0x284   :  { %v4035_v24 = vadd.f32 %v4034_v15, %v1247_v5  ;;  %v4075_v25 = vpop.f32.mrf.mxu1  ;;  %4320 = vmatmul.mubr.bf16.vlgmr.msra.gmra.mxu1 %v6349_v38  ;;  %4329 = vmatpush1.bf16.msra.mxu0 %v5332_v7  ;;  %v5421_v5 = vcombine.high %v869_v3, %v873_v37  ;;  %v733_v7 = vld [vmem:[#allocation8 + $0x58] sm:$0xff] }
 0x285   :  { %4360 = vmatprep.mubr.bf16.mxu0 %v6305_v47  ;;  %4370 = vmatpush1.bf16.msra.mxu1 %v5460_v11  ;;  %v4036_v17 = vpop.f32.mrf.mxu0  ;;  %v865_v11 = vld [vmem:[#allocation8 + $0x478] sm:$0xff]  ;;  %v5285_v21 = vcombine.high %v733_v7, %v737_v8 }
 0x286   :  { %v6396_v27 = vadd.f32 %v4075_v25, %v4035_v24  ;;  %4401 = vmatprep.mubr.bf16.mxu1 %v6309_v50  ;;  %v4037_v32 = vadd.f32 %v4036_v17, %v1251_v19  ;;  %v4077_v54 = vpop.f32.mrf.mxu1  ;;  %4330 = vmatprep.subr.bf16.mxu0 %v5325_v20  ;;  %v5309_v50 = vcombine.high %v757_v33, %v761_v45  ;;  %v725_v15 = vld [vmem:[#allocation8 + $0x18] sm:$0xff] }
 0x287   :  { %v4038_v12 = vpop.f32.mrf.mxu0  ;;  %4371 = vmatprep.subr.bf16.mxu1 %v5453_v23  ;;  %v5292_v19 = vcombine.low %v741_v35, %v745_v36  ;;  %v5420_v20 = vcombine.low %v869_v3, %v873_v37  ;;  %v5413_v22 = vcombine.high %v861_v9, %v865_v11  ;;  %v729_v23 = vld [vmem:[#allocation8 + $0x38] sm:$0xff]  ;;  %v5284_v24 = vcombine.low %v733_v7, %v737_v8 }
 0x288   :  { %v6399_v48 = vadd.f32 %v4077_v54, %v4037_v32  ;;  %v4079_v47 = vpop.f32.mrf.mxu1  ;;  %4331 = vmatpush1.bf16.msra.mxu0 %v5324_v26  ;;  %v5412_v25 = vcombine.low %v861_v9, %v865_v11  ;;  %v5277_v26 = vcombine.high %v725_v15, %v729_v23  ;;  %v5405_v17 = vcombine.high %v853_v14, %v857_v16  ;;  %v973_v32 = vld [vmem:[#allocation8 + $0x7d8] sm:$0xff] }
 0x289   :  { %4372 = vmatpush1.bf16.msra.mxu1 %v5452_v18  ;;  %v4039_v52 = vpop.f32.mrf.mxu0  ;;  %4332 = vmatprep.subr.bf16.mxu0 %v5317_v41  ;;  %v845_v18 = vld [vmem:[#allocation8 + $0x3d8] sm:$0xff]  ;;  %v5404_v33 = vcombine.low %v853_v14, %v857_v16 }
 0x28a   :  { %v4080_v55 = vpop.f32.mrf.mxu1  ;;  %4373 = vmatprep.subr.bf16.mxu1 %v5445_v29  ;;  %v849_v41 = vld [vmem:[#allocation8 + $0x3f8] sm:$0xff]  ;;  %v5276_v29 = vcombine.low %v725_v15, %v729_v23 }
 0x28b   :  { %v977_v54 = vld [vmem:[#allocation8 + $0x7f8] sm:$0xff]  ;;  %v5397_v45 = vcombine.high %v845_v18, %v849_v41  ;;  %v5396_v52 = vcombine.low %v845_v18, %v849_v41 }
 0x28c   :  { %4333 = vmatpush1.bf16.msra.mxu0 %v5316_v51  ;;  %v5525_v12 = vcombine.high %v973_v32, %v977_v54  ;;  %v965_v47 = vld [vmem:[#allocation8 + $0x798] sm:$0xff] }
 0x28d   :  { %4374 = vmatpush1.bf16.msra.mxu1 %v5444_v53  ;;  %4334 = vmatprep.subr.bf16.mxu0 %v5309_v50  ;;  %v969_v51 = vld [vmem:[#allocation8 + $0x7b8] sm:$0xff]  ;;  %v5524_v53 = vcombine.low %v973_v32, %v977_v54  ;;  %v5389_v50 = vcombine.high %v837_v34, %v841_v39 }
 0x28e   :  { %4375 = vmatprep.subr.bf16.mxu1 %v5437_v0  ;;  %v5517_v55 = vcombine.high %v965_v47, %v969_v51  ;;  %v829_v0 = vld [vmem:[#allocation8 + $0x358] sm:$0xff] }
 0x28f   :  { %v957_v57 = vld [vmem:[#allocation8 + $0x758] sm:$0xff]  ;;  %v5380_v37 = vcombine.low %v829_v0, %v833_v56 }
 0x290   :  { %4335 = vmatpush1.bf16.msra.mxu0 %v5308_v61  ;;  %v5516_v61 = vcombine.low %v965_v47, %v969_v51  ;;  %v825_v35 = vld [vmem:[#allocation8 + $0x338] sm:$0xff] }
 0x291   :  { %4376 = vmatpush1.bf16.msra.mxu1 %v5436_v63  ;;  %4336 = vmatprep.subr.bf16.mxu0 %v5301_v1  ;;  %v5381_v63 = vcombine.high %v829_v0, %v833_v56  ;;  %v5509_v1 = vcombine.high %v957_v57, %v961_v58  ;;  %v949_v36 = vld [vmem:[#allocation8 + $0x718] sm:$0xff] }
 0x292   :  { %4377 = vmatprep.subr.bf16.mxu1 %v5429_v2  ;;  %v821_v2 = vld [vmem:[#allocation8 + $0x318] sm:$0xff] }
 0x293   :  { %v953_v3 = vld [vmem:[#allocation8 + $0x738] sm:$0xff]  ;;  %v5372_v11 = vcombine.low %v821_v2, %v825_v35 }
 0x294   :  { %4337 = vmatpush1.bf16.msra.mxu0 %v5300_v40  ;;  %v5508_v40 = vcombine.low %v957_v57, %v961_v58  ;;  %v817_v7 = vld [vmem:[#allocation8 + $0x2f8] sm:$0xff] }
 0x295   :  { %4378 = vmatpush1.bf16.msra.mxu1 %v5428_v42  ;;  %4338 = vmatprep.subr.bf16.mxu0 %v5293_v4  ;;  %v5373_v42 = vcombine.high %v821_v2, %v825_v35  ;;  %v5501_v4 = vcombine.high %v949_v36, %v953_v3  ;;  %v941_v8 = vld [vmem:[#allocation8 + $0x6d8] sm:$0xff] }
 0x296   :  { %4379 = vmatprep.subr.bf16.mxu1 %v5421_v5  ;;  %v813_v5 = vld [vmem:[#allocation8 + $0x2d8] sm:$0xff] }
 0x297   :  { %v945_v9 = vld [vmem:[#allocation8 + $0x6f8] sm:$0xff]  ;;  %v5364_v16 = vcombine.low %v813_v5, %v817_v7 }
 0x298   :  { %4339 = vmatpush1.bf16.msra.mxu0 %v5292_v19  ;;  %v5500_v19 = vcombine.low %v949_v36, %v953_v3  ;;  %v809_v15 = vld [vmem:[#allocation8 + $0x2b8] sm:$0xff] }
 0x299   :  { %4380 = vmatpush1.bf16.msra.mxu1 %v5420_v20  ;;  %4340 = vmatprep.subr.bf16.mxu0 %v5285_v21  ;;  %v5365_v20 = vcombine.high %v813_v5, %v817_v7  ;;  %v5493_v21 = vcombine.high %v941_v8, %v945_v9  ;;  %v933_v23 = vld [vmem:[#allocation8 + $0x698] sm:$0xff] }
 0x29a   :  { %4381 = vmatprep.subr.bf16.mxu1 %v5413_v22  ;;  %v805_v22 = vld [vmem:[#allocation8 + $0x298] sm:$0xff] }
 0x29b   :  { %v937_v14 = vld [vmem:[#allocation8 + $0x6b8] sm:$0xff]  ;;  %v5356_v54 = vcombine.low %v805_v22, %v809_v15 }
 0x29c   :  { %4341 = vmatpush1.bf16.msra.mxu0 %v5284_v24  ;;  %v5492_v24 = vcombine.low %v941_v8, %v945_v9  ;;  %v801_v18 = vld [vmem:[#allocation8 + $0x278] sm:$0xff] }
 0x29d   :  { %4382 = vmatpush1.bf16.msra.mxu1 %v5412_v25  ;;  %4342 = vmatprep.subr.bf16.mxu0 %v5277_v26  ;;  %v5357_v25 = vcombine.high %v805_v22, %v809_v15  ;;  %v5485_v26 = vcombine.high %v933_v23, %v937_v14  ;;  %v925_v41 = vld [vmem:[#allocation8 + $0x658] sm:$0xff] }
 0x29e   :  { %4383 = vmatprep.subr.bf16.mxu1 %v5405_v17  ;;  %v797_v17 = vld [vmem:[#allocation8 + $0x258] sm:$0xff] }
 0x29f   :  { %v929_v32 = vld [vmem:[#allocation8 + $0x678] sm:$0xff]  ;;  %v5348_v51 = vcombine.low %v797_v17, %v801_v18 }
 0x2a0   :  { %4343 = vmatpush1.bf16.msra.mxu0 %v5276_v29  ;;  %v5484_v29 = vcombine.low %v933_v23, %v937_v14  ;;  %v793_v34 = vld [vmem:[#allocation8 + $0x238] sm:$0xff] }
 0x2a1   :  { %4384 = vmatpush1.bf16.msra.mxu1 %v5404_v33  ;;  %4344 = vmatprep.subr.bf16.mxu0 %v5397_v45  ;;  %v5349_v33 = vcombine.high %v797_v17, %v801_v18  ;;  %v5477_v45 = vcombine.high %v925_v41, %v929_v32  ;;  %v917_v39 = vld [vmem:[#allocation8 + $0x618] sm:$0xff] }
 0x2a2   :  { %4385 = vmatprep.subr.bf16.mxu1 %v5525_v12  ;;  %v789_v12 = vld [vmem:[#allocation8 + $0x218] sm:$0xff] }
 0x2a3   :  { %v921_v47 = vld [vmem:[#allocation8 + $0x638] sm:$0xff]  ;;  %v5340_v58 = vcombine.low %v789_v12, %v793_v34 }
 0x2a4   :  { %4345 = vmatpush2.bf16.msra.mxu0 %v5396_v52  ;;  %v5476_v52 = vcombine.low %v925_v41, %v929_v32  ;;  %v1041_v0 = vld [vmem:[#allocation8 + $0x9f8] sm:$0xff] }
 0x2a5   :  { %4386 = vmatpush2.bf16.msra.mxu1 %v5524_v53  ;;  %4346 = vmatprep.subr.bf16.mxu0 %v5389_v50  ;;  %v5341_v53 = vcombine.high %v789_v12, %v793_v34  ;;  %v5469_v50 = vcombine.high %v917_v39, %v921_v47  ;;  %v1165_v56 = vld [vmem:[#allocation8 + $0xdd8] sm:$0xff] }
 0x2a6   :  { %4387 = vmatprep.subr.bf16.mxu1 %v5517_v55  ;;  %v1037_v55 = vld [vmem:[#allocation8 + $0x9d8] sm:$0xff] }
 0x2a7   :  { %v1169_v57 = vld [vmem:[#allocation8 + $0xdf8] sm:$0xff]  ;;  %v5588_v35 = vcombine.low %v1037_v55, %v1041_v0 }
 0x2a8   :  { %4347 = vmatpush2.bf16.msra.mxu0 %v5388_v59  ;;  %v5468_v59 = vcombine.low %v917_v39, %v921_v47  ;;  %v1033_v2 = vld [vmem:[#allocation8 + $0x9b8] sm:$0xff] }
 0x2a9   :  { %4388 = vmatpush2.bf16.msra.mxu1 %v5516_v61  ;;  %4348 = vmatprep.subr.bf16.mxu0 %v5381_v63  ;;  %v5589_v61 = vcombine.high %v1037_v55, %v1041_v0  ;;  %v5717_v63 = vcombine.high %v1165_v56, %v1169_v57  ;;  %v1157_v36 = vld [vmem:[#allocation8 + $0xd98] sm:$0xff] }
 0x2aa   :  { %4389 = vmatprep.subr.bf16.mxu1 %v5509_v1  ;;  %v1029_v1 = vld [vmem:[#allocation8 + $0x998] sm:$0xff] }
 0x2ab   :  { %v1161_v3 = vld [vmem:[#allocation8 + $0xdb8] sm:$0xff] }
 0x2ac   :  { %4349 = vmatpush2.bf16.msra.mxu0 %v5380_v37  ;;  %v5716_v37 = vcombine.low %v1165_v56, %v1169_v57  ;;  %v5709_v7 = vcombine.high %v1157_v36, %v1161_v3  ;;  %v1149_v8 = vld [vmem:[#allocation8 + $0xd58] sm:$0xff]  ;;  %v5708_v22 = vcombine.low %v1157_v36, %v1161_v3 }
 0x2ad   :  { %4390 = vmatpush2.bf16.msra.mxu1 %v5508_v40  ;;  %4350 = vmatprep.subr.bf16.mxu0 %v5373_v42  ;;  %v5581_v40 = vcombine.high %v1029_v1, %v1033_v2  ;;  %v1021_v42 = vld [vmem:[#allocation8 + $0x958] sm:$0xff] }
 0x2ae   :  { %4391 = vmatprep.subr.bf16.mxu1 %v5501_v4  ;;  %v1025_v4 = vld [vmem:[#allocation8 + $0x978] sm:$0xff] }
 0x2af   :  { %v1153_v9 = vld [vmem:[#allocation8 + $0xd78] sm:$0xff]  ;;  %v5573_v15 = vcombine.high %v1021_v42, %v1025_v4 }
 0x2b0   :  { %4351 = vmatpush2.bf16.msra.mxu0 %v5372_v11  ;;  %v1013_v14 = vld [vmem:[#allocation8 + $0x918] sm:$0xff]  ;;  %v5700_v18 = vcombine.low %v1149_v8, %v1153_v9 }
 0x2b1   :  { %4392 = vmatpush2.bf16.msra.mxu1 %v5500_v19  ;;  %4352 = vmatprep.subr.bf16.mxu0 %v5365_v20  ;;  %v5580_v20 = vcombine.low %v1029_v1, %v1033_v2  ;;  %v981_v3 = vld [vmem:[#allocation8 + $0x818] sm:$0xff] }
 0x2b2   :  { %4393 = vmatprep.subr.bf16.mxu1 %v5493_v21 }
 0x2b4   :  { %4353 = vmatpush2.bf16.msra.mxu0 %v5364_v16  ;;  %v1017_v16 = vld [vmem:[#allocation8 + $0x938] sm:$0xff] }
 0x2b5   :  { %4394 = vmatpush2.bf16.msra.mxu1 %v5492_v24  ;;  %4354 = vmatprep.subr.bf16.mxu0 %v5357_v25  ;;  %v1141_v24 = vld [vmem:[#allocation8 + $0xd18] sm:$0xff]  ;;  %v5565_v41 = vcombine.high %v1013_v14, %v1017_v16  ;;  %v5564_v12 = vcombine.low %v1013_v14, %v1017_v16 }
 0x2b6   :  { %4395 = vmatprep.subr.bf16.mxu1 %v5485_v26  ;;  %v1145_v25 = vld [vmem:[#allocation8 + $0xd38] sm:$0xff]  ;;  %v5572_v26 = vcombine.low %v1021_v42, %v1025_v4 }
 0x2b7   :  { %v5692_v34 = vcombine.low %v1141_v24, %v1145_v25  ;;  %v1113_v42 = vld [vmem:[#allocation8 + $0xc38] sm:$0xff] }
 0x2b8   :  { %4355 = vmatpush2.bf16.msra.mxu0 %v5356_v54  ;;  %v1005_v54 = vld [vmem:[#allocation8 + $0x8d8] sm:$0xff] }
 0x2b9   :  { %4396 = vmatpush2.bf16.msra.mxu1 %v5484_v29  ;;  %4356 = vmatprep.subr.bf16.mxu0 %v5349_v33  ;;  %v1009_v29 = vld [vmem:[#allocation8 + $0x8f8] sm:$0xff] }
 0x2ba   :  { %4397 = vmatprep.subr.bf16.mxu1 %v5477_v45  ;;  %v1133_v33 = vld [vmem:[#allocation8 + $0xcd8] sm:$0xff]  ;;  %v5557_v39 = vcombine.high %v1005_v54, %v1009_v29  ;;  %v5556_v55 = vcombine.low %v1005_v54, %v1009_v29 }
 0x2bb   :  { %v1137_v45 = vld [vmem:[#allocation8 + $0xcf8] sm:$0xff] }
 0x2bc   :  { %4357 = vmatpush2.bf16.msra.mxu0 %v5348_v51  ;;  %v5685_v47 = vcombine.high %v1133_v33, %v1137_v45  ;;  %v997_v51 = vld [vmem:[#allocation8 + $0x898] sm:$0xff]  ;;  %v5684_v0 = vcombine.low %v1133_v33, %v1137_v45 }
 0x2bd   :  { %4398 = vmatpush2.bf16.msra.mxu1 %v5476_v52  ;;  %4358 = vmatprep.subr.bf16.mxu0 %v5341_v53  ;;  %v1001_v52 = vld [vmem:[#allocation8 + $0x8b8] sm:$0xff] }
 0x2be   :  { %4399 = vmatprep.subr.bf16.mxu1 %v5469_v50  ;;  %v1125_v53 = vld [vmem:[#allocation8 + $0xc98] sm:$0xff]  ;;  %v5549_v56 = vcombine.high %v997_v51, %v1001_v52  ;;  %v5548_v1 = vcombine.low %v997_v51, %v1001_v52 }
 0x2bf   :  { %v1129_v50 = vld [vmem:[#allocation8 + $0xcb8] sm:$0xff] }
 0x2c0   :  { %4359 = vmatpush2.bf16.msra.mxu0 %v5340_v58  ;;  %v5677_v57 = vcombine.high %v1125_v53, %v1129_v50  ;;  %v989_v58 = vld [vmem:[#allocation8 + $0x858] sm:$0xff]  ;;  %v5676_v2 = vcombine.low %v1125_v53, %v1129_v50 }
 0x2c1   :  { %4400 = vmatpush2.bf16.msra.mxu1 %v5468_v59  ;;  %4410 = vmatprep.subr.bf16.mxu0 %v5589_v61  ;;  %v993_v59 = vld [vmem:[#allocation8 + $0x878] sm:$0xff] }
 0x2c2   :  { %4451 = vmatprep.subr.bf16.mxu1 %v5717_v63  ;;  %v1117_v61 = vld [vmem:[#allocation8 + $0xc58] sm:$0xff]  ;;  %v5540_v4 = vcombine.low %v989_v58, %v993_v59 }
 0x2c3   :  { %v4116_v5 = vpop.f32.mrf.mxu0  ;;  %4361 = vmatmul.mubr.bf16.vlgmr.msra.gmra.mxu0 %v6307_v49  ;;  %v1121_v63 = vld [vmem:[#allocation8 + $0xc78] sm:$0xff] }
 0x2c4   :  { %v4117_v11 = vadd.f32 %v4116_v5, %v6396_v27  ;;  %v4157_v19 = vpop.f32.mrf.mxu1  ;;  %4402 = vmatmul.mubr.bf16.vlgmr.msra.gmra.mxu1 %v6303_v46  ;;  %4411 = vmatpush1.bf16.msra.mxu0 %v5588_v35  ;;  %v5701_v27 = vcombine.high %v1149_v8, %v1153_v9  ;;  %v5541_v35 = vcombine.high %v989_v58, %v993_v59  ;;  %v1101_v9 = vld [vmem:[#allocation8 + $0xbd8] sm:$0xff] }
 0x2c5   :  { %4442 = vmatprep.mubr.bf16.mxu0 %v6333_v6  ;;  %4452 = vmatpush1.bf16.msra.mxu1 %v5716_v37  ;;  %v6405_v21 = vpop.f32.mrf.mxu0  ;;  %v5669_v36 = vcombine.high %v1117_v61, %v1121_v63  ;;  %v985_v37 = vld [vmem:[#allocation8 + $0x838] sm:$0xff]  ;;  %v5668_v5 = vcombine.low %v1117_v61, %v1121_v63 }
 0x2c6   :  { %v6407_v23 = vadd.f32 %v4157_v19, %v4117_v11  ;;  %4483 = vmatprep.mubr.bf16.mxu1 %v6335_v10  ;;  %v6410_v49 = vpop.f32.mrf.mxu1  ;;  %4412 = vmatprep.subr.bf16.mxu0 %v5581_v40  ;;  %v5693_v10 = vcombine.high %v1141_v24, %v1145_v25  ;;  %v1109_v40 = vld [vmem:[#allocation8 + $0xc18] sm:$0xff] }
 0x2c7   :  { %v4120_v46 = vpop.f32.mrf.mxu0  ;;  %4453 = vmatprep.subr.bf16.mxu1 %v5709_v7  ;;  %v5533_v7 = vcombine.high %v981_v3, %v985_v37  ;;  %v5661_v8 = vcombine.high %v1109_v40, %v1113_v42  ;;  %v1105_v11 = vld [vmem:[#allocation8 + $0xbf8] sm:$0xff] }
 0x2c8   :  { %v4161_v6 = vpop.f32.mrf.mxu1  ;;  %4413 = vmatpush1.bf16.msra.mxu0 %v5580_v20  ;;  %v1229_v19 = vld [vmem:[#allocation8 + $0xfd8] sm:$0xff] }
 0x2c9   :  { %4454 = vmatpush1.bf16.msra.mxu1 %v5708_v22  ;;  %v4121_v17 = vpop.f32.mrf.mxu0  ;;  %4414 = vmatprep.subr.bf16.mxu0 %v5573_v15  ;;  %v1233_v20 = vld [vmem:[#allocation8 + $0xff8] sm:$0xff]  ;;  %v5532_v22 = vcombine.low %v981_v3, %v985_v37  ;;  %v5660_v15 = vcombine.low %v1109_v40, %v1113_v42  ;;  %v5652_v6 = vcombine.low %v1101_v9, %v1105_v11 }
 0x2ca   :  { %v4162_v32 = vpop.f32.mrf.mxu1  ;;  %4455 = vmatprep.subr.bf16.mxu1 %v5701_v27  ;;  %v5653_v27 = vcombine.high %v1101_v9, %v1105_v11  ;;  %v5781_v14 = vcombine.high %v1229_v19, %v1233_v20  ;;  %v1093_v16 = vld [vmem:[#allocation8 + $0xb98] sm:$0xff] }
 0x2cb   :  { %v1097_v46 = vld [vmem:[#allocation8 + $0xbb8] sm:$0xff] }
 0x2cc   :  { %4415 = vmatpush1.bf16.msra.mxu0 %v5572_v26  ;;  %v1221_v24 = vld [vmem:[#allocation8 + $0xf98] sm:$0xff]  ;;  %v5780_v26 = vcombine.low %v1229_v19, %v1233_v20  ;;  %v5645_v17 = vcombine.high %v1093_v16, %v1097_v46  ;;  %v5644_v29 = vcombine.low %v1093_v16, %v1097_v46  ;;  %v4119_v46 = vadd.f32 %v6405_v21, %v6399_v48 }
 0x2cd   :  { %4456 = vmatpush1.bf16.msra.mxu1 %v5700_v18  ;;  %4416 = vmatprep.subr.bf16.mxu0 %v5565_v41  ;;  %v1225_v25 = vld [vmem:[#allocation8 + $0xfb8] sm:$0xff]  ;;  %v4493_v48 = vmax.f32 %v6385_v43, 0.0 }
 0x2ce   :  { %4457 = vmatprep.subr.bf16.mxu1 %v5693_v10  ;;  %v5773_v18 = vcombine.high %v1221_v24, %v1225_v25  ;;  %v1085_v41 = vld [vmem:[#allocation8 + $0xb58] sm:$0xff]  ;;  %v5772_v33 = vcombine.low %v1221_v24, %v1225_v25 }
 0x2cf   :  { %v1089_v32 = vld [vmem:[#allocation8 + $0xb78] sm:$0xff] }
 0x2d0   :  { %4417 = vmatpush1.bf16.msra.mxu0 %v5564_v12  ;;  %v1213_v10 = vld [vmem:[#allocation8 + $0xf58] sm:$0xff]  ;;  %v5637_v45 = vcombine.high %v1085_v41, %v1089_v32  ;;  %v5636_v52 = vcombine.low %v1085_v41, %v1089_v32  ;;  %v5948_v32 = vld [vmem:[#allocation11 + $0x78] sm:$0xff]  }
 0x2d1   :  { %4458 = vmatpush1.bf16.msra.mxu1 %v5692_v34  ;;  %4418 = vmatprep.subr.bf16.mxu0 %v5557_v39  ;;  %v1217_v54 = vld [vmem:[#allocation8 + $0xf78] sm:$0xff] }
 0x2d2   :  { %4459 = vmatprep.subr.bf16.mxu1 %v5685_v47  ;;  %v5765_v12 = vcombine.high %v1213_v10, %v1217_v54  ;;  %v1077_v34 = vld [vmem:[#allocation8 + $0xb18] sm:$0xff]  ;;  %v5764_v53 = vcombine.low %v1213_v10, %v1217_v54  ;;  %v5949_v10 = vld [vmem:[#allocation11 + $0xf8] sm:$0xff]  }
 0x2d3   :  { %v1081_v39 = vld [vmem:[#allocation8 + $0xb38] sm:$0xff]  ;;  %v5950_v54 = vld [vmem:[#allocation11 + $0x38] sm:$0xff]  }
 0x2d4   :  { %4419 = vmatpush1.bf16.msra.mxu0 %v5556_v55  ;;  %v1205_v47 = vld [vmem:[#allocation8 + $0xf18] sm:$0xff]  ;;  %v5629_v50 = vcombine.high %v1077_v34, %v1081_v39  ;;  %v5628_v59 = vcombine.low %v1077_v34, %v1081_v39 }
 0x2d5   :  { %4460 = vmatpush1.bf16.msra.mxu1 %v5684_v0  ;;  %4420 = vmatprep.subr.bf16.mxu0 %v5549_v56  ;;  %v1209_v51 = vld [vmem:[#allocation8 + $0xf38] sm:$0xff] }
 0x2d6   :  { %4461 = vmatprep.subr.bf16.mxu1 %v5677_v57  ;;  %v5757_v55 = vcombine.high %v1205_v47, %v1209_v51  ;;  %v1069_v0 = vld [vmem:[#allocation8 + $0xad8] sm:$0xff]  ;;  %v5756_v61 = vcombine.low %v1205_v47, %v1209_v51 }
 0x2d7   :  { %v1073_v56 = vld [vmem:[#allocation8 + $0xaf8] sm:$0xff] }
 0x2d8   :  { %4421 = vmatpush1.bf16.msra.mxu0 %v5548_v1  ;;  %v1197_v57 = vld [vmem:[#allocation8 + $0xed8] sm:$0xff]  ;;  %v5621_v63 = vcombine.high %v1069_v0, %v1073_v56  ;;  %v5620_v37 = vcombine.low %v1069_v0, %v1073_v56  ;;  %v5958_v0 = vld [vmem:[#allocation11 + $0x28] sm:$0xff]  }
 0x2d9   :  { %4462 = vmatpush1.bf16.msra.mxu1 %v5676_v2  ;;  %4422 = vmatprep.subr.bf16.mxu0 %v5541_v35  ;;  %v1201_v58 = vld [vmem:[#allocation8 + $0xef8] sm:$0xff]  ;;  %v5959_v56 = vld [vmem:[#allocation11 + $0xa8] sm:$0xff]  }
 0x2da   :  { %4463 = vmatprep.subr.bf16.mxu1 %v5669_v36  ;;  %v5749_v1 = vcombine.high %v1197_v57, %v1201_v58  ;;  %v1061_v2 = vld [vmem:[#allocation8 + $0xa98] sm:$0xff]  ;;  %v5748_v40 = vcombine.low %v1197_v57, %v1201_v58  ;;  %v5960_v57 = vld [vmem:[#allocation11 + $0x60] sm:$0xff]  }
 0x2db   :  { %v1065_v35 = vld [vmem:[#allocation8 + $0xab8] sm:$0xff] }
 0x2dc   :  { %4423 = vmatpush1.bf16.msra.mxu0 %v5540_v4  ;;  %v1189_v36 = vld [vmem:[#allocation8 + $0xe98] sm:$0xff]  ;;  %v5613_v42 = vcombine.high %v1061_v2, %v1065_v35  ;;  %v5612_v11 = vcombine.low %v1061_v2, %v1065_v35  ;;  %v5965_v2 = vld [vmem:[#allocation11 + $0xd8] sm:$0xff]  }
 0x2dd   :  { %4464 = vmatpush1.bf16.msra.mxu1 %v5668_v5  ;;  %4424 = vmatprep.subr.bf16.mxu0 %v5533_v7  ;;  %v1193_v3 = vld [vmem:[#allocation8 + $0xeb8] sm:$0xff]  ;;  %v5966_v35 = vld [vmem:[#allocation11 + $0x18] sm:$0xff]  }
 0x2de   :  { %4465 = vmatprep.subr.bf16.mxu1 %v5661_v8  ;;  %v5741_v4 = vcombine.high %v1189_v36, %v1193_v3  ;;  %v1053_v5 = vld [vmem:[#allocation8 + $0xa58] sm:$0xff]  ;;  %v5740_v19 = vcombine.low %v1189_v36, %v1193_v3  ;;  %v5967_v36 = vld [vmem:[#allocation11 + $0x98] sm:$0xff]  }
 0x2df   :  { %v1057_v7 = vld [vmem:[#allocation8 + $0xa78] sm:$0xff] }
 0x2e0   :  { %4425 = vmatpush1.bf16.msra.mxu0 %v5532_v22  ;;  %v1181_v8 = vld [vmem:[#allocation8 + $0xe58] sm:$0xff]  ;;  %v5605_v20 = vcombine.high %v1053_v5, %v1057_v7  ;;  %v5604_v24 = vcombine.low %v1053_v5, %v1057_v7  ;;  %v5973_v5 = vld [vmem:[#allocation11 + $0xc8] sm:$0xff]  }
 0x2e1   :  { %4466 = vmatpush1.bf16.msra.mxu1 %v5660_v15  ;;  %4426 = vmatprep.subr.bf16.mxu0 %v5653_v27  ;;  %v1185_v9 = vld [vmem:[#allocation8 + $0xe78] sm:$0xff]  ;;  %v5974_v7 = vld [vmem:[#allocation11 + $0x8] sm:$0xff]  }
 0x2e2   :  { %4467 = vmatprep.subr.bf16.mxu1 %v5781_v14  ;;  %v5733_v22 = vcombine.high %v1181_v8, %v1185_v9  ;;  %v1045_v15 = vld [vmem:[#allocation8 + $0xa18] sm:$0xff]  ;;  %v5732_v25 = vcombine.low %v1181_v8, %v1185_v9  ;;  %v5975_v8 = vld [vmem:[#allocation11 + $0x88] sm:$0xff]   ;;  %v5976_v9 = vld [vmem:[#allocation11 + $0x40] sm:$0xff]  }
 0x2e3   :  { %v1049_v27 = vld [vmem:[#allocation8 + $0xa38] sm:$0xff] }
 0x2e4   :  { %4427 = vmatpush2.bf16.msra.mxu0 %v5652_v6  ;;  %v1173_v14 = vld [vmem:[#allocation8 + $0xe18] sm:$0xff]  ;;  %v5597_v6 = vcombine.high %v1045_v15, %v1049_v27 }
 0x2e5   :  { %4468 = vmatpush2.bf16.msra.mxu1 %v5780_v26  ;;  %4428 = vmatprep.subr.bf16.mxu0 %v5645_v17  ;;  %v1177_v16 = vld [vmem:[#allocation8 + $0xe38] sm:$0xff]  ;;  %v4160_v17 = vadd.f32 %v6410_v49, %v4119_v46 }
 0x2e6   :  { %4469 = vmatprep.subr.bf16.mxu1 %v5773_v18  ;;  %v5725_v26 = vcombine.high %v1173_v14, %v1177_v16  ;;  %v5596_v18 = vcombine.low %v1045_v15, %v1049_v27  ;;  %v5724_v41 = vcombine.low %v1173_v14, %v1177_v16  ;;  %v5954_v43 = vld [vmem:[#allocation11 + $0x30] sm:$0xff]   ;;  %v5980_v15 = vld [vmem:[#allocation11 + $0x178] sm:$0xff]   ;;  %v4494_v27 = vmax.f32 %v6407_v23, 0.0 }
 0x2e7   :  { %v4495_v21 = vmax.f32 %v4160_v17, 0.0  ;;  %v5955_v51 = vld [vmem:[#allocation11 + $0xb0] sm:$0xff]   ;;  %v5996_v14 = vld [vmem:[#allocation11 + $0x1f8] sm:$0xff]   ;;  %v5984_v17 = vld [vmem:[#allocation11 + $0x168] sm:$0xff]  }
 0x2e8   :  { %4429 = vmatpush2.bf16.msra.mxu0 %v5644_v29  ;;  %v5951_v29 = vld [vmem:[#allocation11 + $0xb8] sm:$0xff]   ;;  %v5968_v3 = vld [vmem:[#allocation11 + $0x50] sm:$0xff]  }
 0x2e9   :  { %4470 = vmatpush2.bf16.msra.mxu1 %v5772_v33  ;;  %4430 = vmatprep.subr.bf16.mxu0 %v5637_v45  ;;  %v5952_v33 = vld [vmem:[#allocation11 + $0x70] sm:$0xff]   ;;  %v4501_v45 = vpack.c.bf16 %v4493_v48, %v4493_v48  ;;  %v4503_v34 = vpack.c.bf16 %v4495_v21, %v4495_v21  ;;  %v5981_v16 = vld [vmem:[#allocation11 + $0x138] sm:$0xff]   ;;  %v6002_v48 = vld [vmem:[#allocation11 + $0x1e0] sm:$0xff]  }
 0x2ea   :  { %4471 = vmatprep.subr.bf16.mxu1 %v5765_v12  ;;  %v5953_v12 = vld [vmem:[#allocation11 + $0xf0] sm:$0xff]   ;;  %v5987_v21 = vld [vmem:[#allocation11 + $0x120] sm:$0xff]  }
 0x2eb   :  { %v5999_v23 = vld [vmem:[#allocation11 + $0x1b0] sm:$0xff]  }
 0x2ec   :  { %4431 = vmatpush2.bf16.msra.mxu0 %v5636_v52  ;;  %v5956_v52 = vld [vmem:[#allocation11 + $0x68] sm:$0xff]  }
 0x2ed   :  { %4472 = vmatpush2.bf16.msra.mxu1 %v5764_v53  ;;  %4432 = vmatprep.subr.bf16.mxu0 %v5629_v50  ;;  %v5957_v50 = vld [vmem:[#allocation11 + $0xe8] sm:$0xff]  }
 0x2ee   :  { %4473 = vmatprep.subr.bf16.mxu1 %v5757_v55 }
 0x2f0   :  { %4433 = vmatpush2.bf16.msra.mxu0 %v5628_v59  ;;  %v5961_v59 = vld [vmem:[#allocation11 + $0xe0] sm:$0xff]  }
 0x2f1   :  { %4474 = vmatpush2.bf16.msra.mxu1 %v5756_v61  ;;  %4434 = vmatprep.subr.bf16.mxu0 %v5621_v63  ;;  %v5962_v61 = vld [vmem:[#allocation11 + $0x20] sm:$0xff]  }
 0x2f2   :  { %4475 = vmatprep.subr.bf16.mxu1 %v5749_v1  ;;  %v5963_v63 = vld [vmem:[#allocation11 + $0xa0] sm:$0xff]   ;;  %v5964_v1 = vld [vmem:[#allocation11 + $0x58] sm:$0xff]  }
 0x2f4   :  { %4435 = vmatpush2.bf16.msra.mxu0 %v5620_v37  ;;  %v5969_v37 = vld [vmem:[#allocation11 + $0xd0] sm:$0xff]  }
 0x2f5   :  { %4476 = vmatpush2.bf16.msra.mxu1 %v5748_v40  ;;  %4436 = vmatprep.subr.bf16.mxu0 %v5613_v42  ;;  %v5970_v40 = vld [vmem:[#allocation11 + $0x10] sm:$0xff]  }
 0x2f6   :  { %4477 = vmatprep.subr.bf16.mxu1 %v5741_v4  ;;  %v5971_v42 = vld [vmem:[#allocation11 + $0x90] sm:$0xff]   ;;  %v5972_v4 = vld [vmem:[#allocation11 + $0x48] sm:$0xff]  }
 0x2f8   :  { %4437 = vmatpush2.bf16.msra.mxu0 %v5612_v11  ;;  %v5977_v11 = vld [vmem:[#allocation11 + $0xc0] sm:$0xff]  }
 0x2f9   :  { %4478 = vmatpush2.bf16.msra.mxu1 %v5740_v19  ;;  %4438 = vmatprep.subr.bf16.mxu0 %v5605_v20  ;;  %v5978_v19 = vld [vmem:[#allocation11] sm:$0xff]   ;;  %v4492_v20 = vmax.f32 %v6381_v30, 0.0  ;;  %v5983_v30 = vld [vmem:[#allocation11 + $0x130] sm:$0xff]  }
 0x2fa   :  { %4479 = vmatprep.subr.bf16.mxu1 %v5733_v22  ;;  %v5979_v22 = vld [vmem:[#allocation11 + $0x80] sm:$0xff]  }
 0x2fb   :  { %v4500_v46 = vpack.c.bf16 %v4492_v20, %v4492_v20 }
 0x2fc   :  { %4439 = vmatpush2.bf16.msra.mxu0 %v5604_v24  ;;  %v5982_v24 = vld [vmem:[#allocation11 + $0x170] sm:$0xff]  }
 0x2fd   :  { %4480 = vmatpush2.bf16.msra.mxu1 %v5732_v25  ;;  %4440 = vmatprep.subr.bf16.mxu0 %v5597_v6  ;;  %v5997_v25 = vld [vmem:[#allocation11 + $0x1b8] sm:$0xff]   ;;  %v4502_v6 = vpack.c.bf16 %v4494_v27, %v4494_v27 }
 0x2fe   :  { %4481 = vmatprep.subr.bf16.mxu1 %v5725_v26  ;;  %v5998_v26 = vld [vmem:[#allocation11 + $0x1f0] sm:$0xff]  }
 0x300   :  { %4441 = vmatpush2.bf16.msra.mxu0 %v5596_v18  ;;  %v6000_v18 = vld [vmem:[#allocation11 + $0x1e8] sm:$0xff]  }
 0x301   :  { %4482 = vmatpush2.bf16.msra.mxu1 %v5724_v41  ;;  %5847 = vmatprep.subr.bf16.mxu0 %v5948_v32  ;;  %v5985_v41 = vld [vmem:[#allocation11 + $0x128] sm:$0xff]   ;;  %v5986_v32 = vld [vmem:[#allocation11 + $0x160] sm:$0xff]  }
 0x302   :  { %5869 = vmatprep.subr.bf16.mxu1 %v5949_v10  ;;  %v6001_v10 = vld [vmem:[#allocation11 + $0x1a8] sm:$0xff]  }
 0x303   :  { %v6416_v49 = vpop.f32.mrf.mxu0  ;;  %4443 = vmatmul.mubr.bf16.vlgmr.msra.gmra.mxu0 %v6351_v44 }
 0x304   :  { %v6419_v39 = vpop.f32.mrf.mxu1  ;;  %4484 = vmatmul.mubr.bf16.vlgmr.msra.gmra.mxu1 %v6349_v38  ;;  %5848 = vmatpush3.bf16.msra.mxu0 %v5950_v54  ;;  %v5988_v54 = vld [vmem:[#allocation11 + $0x158] sm:$0xff]  }
 0x305   :  { %5059 = vmatprep.mubr.bf16.mxu0 %v4501_v45  ;;  %5870 = vmatpush3.bf16.msra.mxu1 %v5951_v29  ;;  %v6422_v47 = vpop.f32.mrf.mxu0  ;;  %v6003_v29 = vld [vmem:[#allocation11 + $0x1a0] sm:$0xff]   ;;  %v5989_v45 = vld [vmem:[#allocation11 + $0x118] sm:$0xff]  }
 0x306   :  { %5099 = vmatprep.mubr.bf16.mxu1 %v4503_v34  ;;  %v6424_v53 = vpop.f32.mrf.mxu1  ;;  %5849 = vmatprep.subr.bf16.mxu0 %v5952_v33  ;;  %v6004_v33 = vld [vmem:[#allocation11 + $0x1d8] sm:$0xff]  }
 0x307   :  { %v4202_v44 = vpop.f32.mrf.mxu0  ;;  %5871 = vmatprep.subr.bf16.mxu1 %v5953_v12  ;;  %v5990_v12 = vld [vmem:[#allocation11 + $0x150] sm:$0xff]   ;;  %v6005_v34 = vld [vmem:[#allocation11 + $0x198] sm:$0xff]  }
 0x308   :  { %v4243_v55 = vpop.f32.mrf.mxu1  ;;  %5850 = vmatpush3.bf16.msra.mxu0 %v5954_v43  ;;  %v5991_v43 = vld [vmem:[#allocation11 + $0x110] sm:$0xff]   ;;  %v6012_v44 = vld [vmem:[#allocation10] sm:$0xff] }
 0x309   :  { %5872 = vmatpush3.bf16.msra.mxu1 %v5955_v51  ;;  %v4203_v38 = vpop.f32.mrf.mxu0  ;;  %5851 = vmatprep.subr.bf16.mxu0 %v5956_v52  ;;  %v5992_v51 = vld [vmem:[#allocation11 + $0x148] sm:$0xff]   ;;  %v1255_v55 = vrot.slane %v6012_v44, %v200_v62  ;;  %v6007_v62 = vld [vmem:[#allocation11 + $0x190] sm:$0xff]  }
 0x30a   :  { %v4244_v58 = vpop.f32.mrf.mxu1  ;;  %5873 = vmatprep.subr.bf16.mxu1 %v5957_v50  ;;  %v5993_v52 = vld [vmem:[#allocation11 + $0x108] sm:$0xff]   ;;  %v5994_v50 = vld [vmem:[#allocation11 + $0x140] sm:$0xff]  }
 0x30b   :  { %v5995_v38 = vld [vmem:[#allocation11 + $0x100] sm:$0xff]  }
 0x30c   :  { %5852 = vmatpush3.bf16.msra.mxu0 %v5958_v0  ;;  %v1259_v0 = vrot.slane %v6012_v44, %v204_v28 }
 0x30d   :  { %5874 = vmatpush3.bf16.msra.mxu1 %v5959_v56  ;;  %5853 = vmatprep.subr.bf16.mxu0 %v5960_v57  ;;  %v4199_v56 = vadd.f32 %v6416_v49, %v1255_v55  ;;  %v6008_v49 = vld [vmem:[#allocation11 + $0x1c8] sm:$0xff]  }
 0x30e   :  { %5875 = vmatprep.subr.bf16.mxu1 %v5961_v59  ;;  %v4201_v57 = vadd.f32 %v6422_v47, %v1259_v0 }
 0x30f   :  { %v4240_v58 = vadd.f32 %v6419_v39, %v4199_v56 }
 0x310   :  { %5854 = vmatpush3.bf16.msra.mxu0 %v5962_v61  ;;  %v6006_v61 = vld [vmem:[#allocation11 + $0x1d0] sm:$0xff]  }
 0x311   :  { %5876 = vmatpush3.bf16.msra.mxu1 %v5963_v63  ;;  %5855 = vmatprep.subr.bf16.mxu0 %v5964_v1  ;;  %v4242_v63 = vadd.f32 %v6424_v53, %v4201_v57  ;;  %v6010_v53 = vld [vmem:[#allocation11 + $0x1c0] sm:$0xff]  }
 0x312   :  { %5877 = vmatprep.subr.bf16.mxu1 %v5965_v2 }
 0x314   :  { %5856 = vmatpush3.bf16.msra.mxu0 %v5966_v35 }
 0x315   :  { %5878 = vmatpush3.bf16.msra.mxu1 %v5967_v36  ;;  %5857 = vmatprep.subr.bf16.mxu0 %v5968_v3 }
 0x316   :  { %5879 = vmatprep.subr.bf16.mxu1 %v5969_v37 }
 0x318   :  { %5858 = vmatpush3.bf16.msra.mxu0 %v5970_v40 }
 0x319   :  { %5880 = vmatpush3.bf16.msra.mxu1 %v5971_v42  ;;  %5859 = vmatprep.subr.bf16.mxu0 %v5972_v4  ;;  %v6009_v42 = vld [vmem:[#allocation11 + $0x188] sm:$0xff]  }
 0x31a   :  { %5881 = vmatprep.subr.bf16.mxu1 %v5973_v5 }
 0x31c   :  { %5860 = vmatpush3.bf16.msra.mxu0 %v5974_v7 }
 0x31d   :  { %5882 = vmatpush3.bf16.msra.mxu1 %v5975_v8  ;;  %5861 = vmatprep.subr.bf16.mxu0 %v5976_v9  ;;  %v6011_v9 = vld [vmem:[#allocation11 + $0x180] sm:$0xff]  }
 0x31e   :  { %5883 = vmatprep.subr.bf16.mxu1 %v5977_v11 }
 0x320   :  { %5862 = vmatpush3.bf16.msra.mxu0 %v5978_v19 }
 0x321   :  { %5884 = vmatpush3.bf16.msra.mxu1 %v5979_v22  ;;  %5891 = vmatprep.subr.bf16.mxu0 %v5980_v15 }
 0x322   :  { %5913 = vmatprep.subr.bf16.mxu1 %v5996_v14 }
 0x323   :  { %5060 = vmatmul.mubr.bf16.vlgmr.msra.gmra.mxu0 %v4500_v46 }
 0x324   :  { %5100 = vmatmul.mubr.bf16.vlgmr.msra.gmra.mxu1 %v4502_v6  ;;  %5892 = vmatpush3.bf16.msra.mxu0 %v5981_v16 }
 0x325   :  { %5893 = vmatprep.subr.bf16.mxu0 %v5982_v24  ;;  %5914 = vmatpush3.bf16.msra.mxu1 %v5997_v25  ;;  %v1263_v24 = vrot.slane %v6012_v44, %v208_v60  ;;  %v1267_v25 = vrot.slane %v6012_v44, %v212_v31 }
 0x326   :  { %5915 = vmatprep.subr.bf16.mxu1 %v5998_v26 }
 0x328   :  { %5894 = vmatpush3.bf16.msra.mxu0 %v5983_v30 }
 0x329   :  { %5895 = vmatprep.subr.bf16.mxu0 %v5984_v17  ;;  %5916 = vmatpush3.bf16.msra.mxu1 %v5999_v23 }
 0x32a   :  { %5917 = vmatprep.subr.bf16.mxu1 %v6000_v18 }
 0x32c   :  { %5896 = vmatpush3.bf16.msra.mxu0 %v5985_v41 }
 0x32d   :  { %5897 = vmatprep.subr.bf16.mxu0 %v5986_v32  ;;  %5918 = vmatpush3.bf16.msra.mxu1 %v6001_v10 }
 0x32e   :  { %5919 = vmatprep.subr.bf16.mxu1 %v6002_v48 }
 0x330   :  { %5898 = vmatpush3.bf16.msra.mxu0 %v5987_v21 }
 0x331   :  { %5899 = vmatprep.subr.bf16.mxu0 %v5988_v54  ;;  %5920 = vmatpush3.bf16.msra.mxu1 %v6003_v29 }
 0x332   :  { %5921 = vmatprep.subr.bf16.mxu1 %v6004_v33 }
 0x334   :  { %5900 = vmatpush3.bf16.msra.mxu0 %v5989_v45 }
 0x335   :  { %5901 = vmatprep.subr.bf16.mxu0 %v5990_v12  ;;  %5922 = vmatpush3.bf16.msra.mxu1 %v6005_v34 }
 0x336   :  { %5923 = vmatprep.subr.bf16.mxu1 %v6006_v61 }
 0x338   :  { %5902 = vmatpush3.bf16.msra.mxu0 %v5991_v43 }
 0x339   :  { %5903 = vmatprep.subr.bf16.mxu0 %v5992_v51  ;;  %5924 = vmatpush3.bf16.msra.mxu1 %v6007_v62 }
 0x33a   :  { %5925 = vmatprep.subr.bf16.mxu1 %v6008_v49 }
 0x33c   :  { %5904 = vmatpush3.bf16.msra.mxu0 %v5993_v52  ;;  %v5782_v52 = vld [vmem:[#allocation13] ss:$0 sm:$0xff] }
 0x33d   :  { %5905 = vmatprep.subr.bf16.mxu0 %v5994_v50  ;;  %5926 = vmatpush3.bf16.msra.mxu1 %v6009_v42 }
 0x33e   :  { %5927 = vmatprep.subr.bf16.mxu1 %v6010_v53 }
 0x340   :  { %5906 = vmatpush3.bf16.msra.mxu0 %v5995_v38 }
 0x341   :  { %5928 = vmatpush3.bf16.msra.mxu1 %v6011_v9 }
 0x343   :  { %v4280_v59 = vpop.f32.mrf.mxu0 }
 0x344   :  { %v4281_v1 = vadd.f32 %v4280_v59, %v4240_v58  ;;  %v4321_v2 = vpop.f32.mrf.mxu1 }
 0x345   :  { %v4282_v35 = vpop.f32.mrf.mxu0 }
 0x346   :  { %v4322_v28 = vadd.f32 %v4321_v2, %v4281_v1  ;;  %v4283_v36 = vadd.f32 %v4282_v35, %v4242_v63  ;;  %v4323_v3 = vpop.f32.mrf.mxu1 }
 0x347   :  { %v4284_v37 = vpop.f32.mrf.mxu0 }
 0x348   :  { %v4324_v40 = vadd.f32 %v4323_v3, %v4283_v36  ;;  %v4325_v47 = vpop.f32.mrf.mxu1  ;;  %v4496_v4 = vmax.f32 %v4322_v28, 0.0 }
 0x349   :  { %v4285_v39 = vpop.f32.mrf.mxu0 }
 0x34a   :  { %v4497_v5 = vmax.f32 %v4324_v40, 0.0  ;;  %v4326_v7 = vpop.f32.mrf.mxu1  ;;  %v4504_v11 = vpack.c.bf16 %v4496_v4, %v4496_v4 }
 0x34c   :  { %v4505_v8 = vpack.c.bf16 %v4497_v5, %v4497_v5 }
 0x34e   :  { %5139 = vmatprep.mubr.bf16.mxu0 %v4505_v8 }
 0x34f   :  { %5140 = vmatmul.mubr.bf16.vlgmr.msra.gmra.mxu0 %v4504_v11 }
 0x383   :  { %v4362_v19 = vpop.f32.mrf.mxu0 }
 0x384   :  { %v4403_v20 = vpop.f32.mrf.mxu1  ;;  %v4363_v6 = vadd.f32 %v4362_v19, %v1263_v24 }
 0x385   :  { %v4364_v22 = vpop.f32.mrf.mxu0 }
 0x386   :  { %v4405_v15 = vpop.f32.mrf.mxu1  ;;  %v4365_v26 = vadd.f32 %v4364_v22, %v1267_v25  ;;  %v4404_v30 = vadd.f32 %v4403_v20, %v4363_v6 }
 0x387   :  { %v4366_v27 = vpop.f32.mrf.mxu0 }
 0x388   :  { %v4407_v14 = vpop.f32.mrf.mxu1  ;;  %v4406_v23 = vadd.f32 %v4405_v15, %v4365_v26 }
 0x389   :  { %v4367_v16 = vpop.f32.mrf.mxu0 }
 0x38a   :  { %v4408_v46 = vpop.f32.mrf.mxu1 }
 0x3c3   :  { %v4444_v17 = vpop.f32.mrf.mxu0 }
 0x3c4   :  { %v4445_v18 = vadd.f32 %v4444_v17, %v4404_v30  ;;  %v4485_v41 = vpop.f32.mrf.mxu1 }
 0x3c5   :  { %v4446_v32 = vpop.f32.mrf.mxu0 }
 0x3c6   :  { %v4486_v10 = vadd.f32 %v4485_v41, %v4445_v18  ;;  %v4447_v48 = vadd.f32 %v4446_v32, %v4406_v23  ;;  %v4487_v21 = vpop.f32.mrf.mxu1 }
 0x3c7   :  { %v4448_v54 = vpop.f32.mrf.mxu0 }
 0x3c8   :  { %v4488_v29 = vadd.f32 %v4487_v21, %v4447_v48  ;;  %v4489_v33 = vpop.f32.mrf.mxu1  ;;  %v4498_v45 = vmax.f32 %v4486_v10, 0.0 }
 0x3c9   :  { %v4449_v12 = vpop.f32.mrf.mxu0 }
 0x3ca   :  { %v4499_v60 = vmax.f32 %v4488_v29, 0.0  ;;  %v4490_v34 = vpop.f32.mrf.mxu1  ;;  %v4506_v31 = vpack.c.bf16 %v4498_v45, %v4498_v45 }
 0x3cc   :  { %v4507_v13 = vpack.c.bf16 %v4499_v60, %v4499_v60 }
 0x3ce   :  { %5179 = vmatprep.mubr.bf16.mxu1 %v4507_v13 }
 0x3cf   :  { %5180 = vmatmul.mubr.bf16.vlgmr.msra.gmra.mxu1 %v4506_v31 }
 0x3e3   :  { %v5863_v43 = vpop.f32.mrf.mxu0 }
 0x3e4   :  { %v5885_v51 = vpop.f32.mrf.mxu1 }
 0x3e5   :  { %v5864_v50 = vpop.f32.mrf.mxu0 }
 0x3e6   :  { %v5865_v44 = vadd.f32 %v5864_v50, %v5863_v43  ;;  %v5886_v55 = vpop.f32.mrf.mxu1 }
 0x3e7   :  { %v5887_v0 = vadd.f32 %v5886_v55, %v5885_v51  ;;  %v5866_v38 = vpop.f32.mrf.mxu0 }
 0x3e8   :  { %v5062_v56 = vadd.f32 %v5865_v44, %v5782_v52  ;;  %v5888_v57 = vpop.f32.mrf.mxu1 }
 0x3e9   :  { %v5867_v58 = vpop.f32.mrf.mxu0 }
 0x3ea   :  { %v5102_v59 = vadd.f32 %v5887_v0, %v5062_v56  ;;  %v5889_v61 = vpop.f32.mrf.mxu1 }
 0x40f   :  { %v5907_v63 = vpop.f32.mrf.mxu0 }
 0x411   :  { %v5908_v1 = vpop.f32.mrf.mxu0 }
 0x412   :  { %v5909_v2 = vadd.f32 %v5908_v1, %v5907_v63 }
 0x413   :  { %v5910_v62 = vpop.f32.mrf.mxu0 }
 0x414   :  { %v5142_v35 = vadd.f32 %v5909_v2, %v5102_v59 }
 0x415   :  { %v5911_v28 = vpop.f32.mrf.mxu0 }
 0x48f   :  { %v5929_v36 = vpop.f32.mrf.mxu1 }
 0x491   :  { %v5930_v3 = vpop.f32.mrf.mxu1 }
 0x492   :  { %v5931_v37 = vadd.f32 %v5930_v3, %v5929_v36 }
 0x493   :  { %v5932_v49 = vpop.f32.mrf.mxu1 }
 0x494   :  { %v5182_v40 = vadd.f32 %v5931_v37, %v5142_v35 }
 0x495   :  { %v5933_v47 = vpop.f32.mrf.mxu1 }
 0x496   :  { %5187 = vst [vmem:[#allocation14] sm:$0xff] %v5182_v40 }
 0x497   :  { %6164 = shalt.err (!%p6161_p11)
}
 0x498   :  { %5197 = dma.vmem_to_hbm [thread:$0]  %s5195_s6, 128, %s6450_s7, [#allocation4]  }
 0x499   :  { %6181 = dma.done.wait [#allocation4], 128  }
 0x49a   :  { %6182 = vsyncadd [#allocation4], 4294967168 }
 0x49b   :  { %5201 = vsyncpa [#allocation3], 1 }
 0x49c   :  { %5202 = vsyncpa [#allocation6], 1 }
 0x49d   :  { %5203 = vsyncpa [#allocation9], 1 }
 0x49e   :  { %5204 = vsyncpa [#allocation12], 1 }
 0x49f   :  { %5205 = vsyncpa [#allocation4], 1 }

</bundles_post_ra>
